<compile_context>
chip_gen: v7x
topology: tpu7x:2x2x1
jax: 0.10.0
libtpu: 0.0.40
codegen_flags: <defaults>
</compile_context>

<pallas_src>
import functools
import math

import jax
import jax.numpy as jnp
from jax import lax
from jax.experimental import pallas as pl
from jax.experimental.pallas import tpu as pltpu


# Left pad of the padded-conv1 scratch along W so the interior store lands on
# a bf16 sublane-tile boundary (bf16 tiling is (16, 128)).
PADL = 16


# ---------------------------------------------------------------------------
# Fused Bottleneck kernel (block_n batch elements per grid step).
# ---------------------------------------------------------------------------
def bottleneck_kernel(x_ref, w1_ref, s1_ref, b1_ref,
                      w2_ref, s2_ref, b2_ref,
                      w3_ref, s3_ref, b3_ref,
                      o_ref, h1p_ref, *, H, W, width):
    # x_ref:   (B, H, W, Cin)              bf16 input slab (Cin == Cout)
    # w1_ref:  (Cin, width)                bf16
    # w2_ref:  (9, width, width)           bf16, weight-standardized,
    #                                      block-diag over groups, tap-major
    # w3_ref:  (width, Cout)               bf16
    # s*/b*:   (1, C)                      f32 folded BN scale / bias
    # o_ref:   (B, H, W, Cout)             bf16
    # h1p_ref: (B, H+2, PADL+W+1, width)   bf16 padded conv1-output scratch
    B = x_ref.shape[0]
    cin = x_ref.shape[-1]
    cout = o_ref.shape[-1]
    M = B * H * W

    # ---- conv1 (1x1) + BN + ReLU --------------------------------------
    x = x_ref[...].reshape(M, cin)                                   # bf16
    h1 = jnp.dot(x, w1_ref[...], preferred_element_type=jnp.float32)
    h1 = jnp.maximum(h1 * s1_ref[...] + b1_ref[...], 0.0)            # f32
    # (x is not used again: residual is re-read from x_ref at the end.)

    # ---- zero the 1-px halo border only (interior is fully rewritten) --
    zrow = jnp.zeros((B, 1, W + 2, width), h1p_ref.dtype)
    zcol = jnp.zeros((B, H, 1, width), h1p_ref.dtype)
    h1p_ref[:, 0:1, PADL - 1:PADL + W + 1, :] = zrow                 # top
    h1p_ref[:, H + 1:H + 2, PADL - 1:PADL + W + 1, :] = zrow         # bottom
    h1p_ref[:, 1:1 + H, PADL - 1:PADL, :] = zcol                     # left
    h1p_ref[:, 1:1 + H, PADL + W:PADL + W + 1, :] = zcol             # right

    # ---- bf16 interior write, sublane-aligned at W offset PADL ---------
    h1p_ref[:, 1:1 + H, PADL:PADL + W, :] = (
        h1.reshape(B, H, W, width).astype(jnp.bfloat16))

    # ---- ConvWS 3x3 (grouped) + BN + ReLU: tap accumulation ------------
    h2 = jnp.zeros((M, width), jnp.float32)
    for t in range(9):
        kh, kw = t // 3, t % 3
        c0 = PADL - 1 + kw
        tap = h1p_ref[:, kh:kh + H, c0:c0 + W, :]                    # bf16
        h2 = h2 + jnp.dot(tap.reshape(M, width), w2_ref[t],
                          preferred_element_type=jnp.float32)
    h2 = jnp.maximum(h2 * s2_ref[...] + b2_ref[...], 0.0)            # f32

    # ---- conv3 (1x1) + BN + residual + ReLU -----------------------------
    y = jnp.dot(h2.astype(jnp.bfloat16), w3_ref[...],
                preferred_element_type=jnp.float32)
    y = y * s3_ref[...] + b3_ref[...]
    res = x_ref[...].reshape(M, cin).astype(jnp.float32)             # re-load
    y = jnp.maximum(y + res, 0.0)
    o_ref[...] = y.reshape(B, H, W, cout).astype(o_ref.dtype)


# ---------------------------------------------------------------------------
# NHWC bf16 entry point (primary) and NCHW module-interface wrapper.
# ---------------------------------------------------------------------------
def bottleneck_forward_nhwc(x_nhwc, kparams, *, width, block_n=1):
    w1, s1, b1, w2, s2, b2, w3, s3, b3 = kparams
    N, H, W, cin = x_nhwc.shape
    cout = w3.shape[-1]
    assert cin == cout, "identity residual requires inplanes == planes * 4"
    assert N % block_n == 0

    kern = functools.partial(bottleneck_kernel, H=H, W=W, width=width)

    # VMEM budget: scratch + double-buffered activation blocks + weights,
    # clamped to 48 MiB so it also fits v7x (64 MiB physical per TC).
    scratch_b = block_n * (H + 2) * (PADL + W + 1) * width * 2
    io_b = 2 * block_n * H * W * (cin + cout) * 2
    w_b = 2 * (cin * width + 9 * width * width + width * cout) * 2
    vmem_bytes = int(min(max(2 * (scratch_b + io_b + w_b), 16 * 1024 * 1024),
                         48 * 1024 * 1024))

    out = pl.pallas_call(
        kern,
        out_shape=jax.ShapeDtypeStruct((N, H, W, cout), jnp.bfloat16),
        grid=(N // block_n,),
        in_specs=[
            pl.BlockSpec((block_n, H, W, cin), lambda b: (b, 0, 0, 0)),
            pl.BlockSpec((cin, width), lambda b: (0, 0)),
            pl.BlockSpec((1, width), lambda b: (0, 0)),
            pl.BlockSpec((1, width), lambda b: (0, 0)),
            pl.BlockSpec((9, width, width), lambda b: (0, 0, 0)),
            pl.BlockSpec((1, width), lambda b: (0, 0)),
            pl.BlockSpec((1, width), lambda b: (0, 0)),
            pl.BlockSpec((width, cout), lambda b: (0, 0)),
            pl.BlockSpec((1, cout), lambda b: (0, 0)),
            pl.BlockSpec((1, cout), lambda b: (0, 0)),
        ],
        out_specs=pl.BlockSpec((block_n, H, W, cout), lambda b: (b, 0, 0, 0)),
        scratch_shapes=[
            pltpu.VMEM((block_n, H + 2, PADL + W + 1, width), jnp.bfloat16),
        ],
        compiler_params=pltpu.CompilerParams(
            dimension_semantics=("parallel",),
            vmem_limit_bytes=vmem_bytes),
    )(x_nhwc, w1, s1, b1, w2, s2, b2, w3, s3, b3)
    return out


def bottleneck_forward(x_nchw, kparams, *, width, block_n=1):
    # Thin NCHW/f32 wrapper matching the PyTorch module interface; real
    # pipelines should stay NHWC/bf16 end-to-end via bottleneck_forward_nhwc.
    x = jnp.transpose(x_nchw, (0, 2, 3, 1)).astype(jnp.bfloat16)
    y = bottleneck_forward_nhwc(x, kparams, width=width, block_n=block_n)
    return jnp.transpose(y, (0, 3, 1, 2)).astype(jnp.float32)


# ---------------------------------------------------------------------------
# Parameter construction / host-side folding.
# ---------------------------------------------------------------------------
def _bn_params(key, c):
    kg, kb, km, kv = jax.random.split(key, 4)
    gamma = 1.0 + 0.1 * jax.random.normal(kg, (c,), jnp.float32)
    beta = 0.1 * jax.random.normal(kb, (c,), jnp.float32)
    mean = 0.1 * jax.random.normal(km, (c,), jnp.float32)
    var = 1.0 + 0.1 * jax.random.uniform(kv, (c,), jnp.float32)
    return (gamma, beta, mean, var)


def init_bottleneck_params(key, inplanes, planes, groups, base_width):
    if groups == 1:
        width = planes
    else:
        width = math.floor(planes * (base_width / 64)) * groups
    cout = planes * 4
    ks = jax.random.split(key, 6)
    w1 = jax.random.normal(ks[0], (width, inplanes, 1, 1), jnp.float32)
    w1 = w1 / math.sqrt(inplanes)
    w2 = jax.random.normal(ks[1], (width, width // groups, 3, 3), jnp.float32)
    w2 = w2 / math.sqrt((width // groups) * 9)
    w3 = jax.random.normal(ks[2], (cout, width, 1, 1), jnp.float32)
    w3 = w3 / math.sqrt(width)
    return {
        "w1": w1, "bn1": _bn_params(ks[3], width),
        "w2": w2, "bn2": _bn_params(ks[4], width),
        "w3": w3, "bn3": _bn_params(ks[5], cout),
        "groups": groups, "width": width,
    }


def fold_bn(bn, eps=1e-5):
    gamma, beta, mean, var = bn
    scale = gamma / jnp.sqrt(var + eps)
    bias = beta - mean * scale
    return scale.reshape(1, -1), bias.reshape(1, -1)


def weight_standardize(w, eps=1e-5):
    # conv_ws_2d: per-output-filter (w - mean) / (std_unbiased + eps),
    # matching torch's Tensor.std (ddof=1) and the (std + eps) convention.
    c = w.shape[0]
    flat = w.reshape(c, -1)
    mean = flat.mean(axis=1).reshape(c, 1, 1, 1)
    std = jnp.std(flat, axis=1, ddof=1).reshape(c, 1, 1, 1)
    return (w - mean) / (std + eps)


def prepare_kernel_params(params):
    groups, width = params["groups"], params["width"]
    wg = width // groups

    w1 = params["w1"][:, :, 0, 0].T.astype(jnp.bfloat16)          # (Cin, width)
    s1, b1 = fold_bn(params["bn1"])

    # ConvWS + grouped conv packed as dense block-diagonal tap matrices.
    # TODO(synk): per-group matmuls for large group counts (groups=32).
    w2_ws = weight_standardize(params["w2"])                      # (width, wg, 3, 3)
    w2_full = jnp.zeros((width, width, 3, 3), jnp.float32)
    for g in range(groups):
        w2_full = w2_full.at[g * wg:(g + 1) * wg,
                             g * wg:(g + 1) * wg].set(w2_ws[g * wg:(g + 1) * wg])
    # (kh, kw, cin, cout) -> (9, width_in, width_out); tap t = kh*3 + kw.
    w2_taps = jnp.transpose(w2_full, (2, 3, 1, 0)).reshape(9, width, width)
    w2_taps = w2_taps.astype(jnp.bfloat16)
    s2, b2 = fold_bn(params["bn2"])

    w3 = params["w3"][:, :, 0, 0].T.astype(jnp.bfloat16)          # (width, cout)
    s3, b3 = fold_bn(params["bn3"])
    return (w1, s1, b1, w2_taps, s2, b2, w3, s3, b3)


# ---------------------------------------------------------------------------
# Pure-XLA f32 reference (eval-mode PyTorch semantics) for a sanity check.
# ---------------------------------------------------------------------------
def bottleneck_ref(x_nchw, params):
    def bn(y, p):
        gamma, beta, mean, var = p
        s = gamma / jnp.sqrt(var + 1e-5)
        return y * s.reshape(1, -1, 1, 1) + (beta - mean * s).reshape(1, -1, 1, 1)

    dn = ("NCHW", "OIHW", "NCHW")
    out = lax.conv_general_dilated(x_nchw, params["w1"], (1, 1), "VALID",
                                   dimension_numbers=dn)
    out = jax.nn.relu(bn(out, params["bn1"]))
    out = lax.conv_general_dilated(out, weight_standardize(params["w2"]),
                                   (1, 1), ((1, 1), (1, 1)),
                                   dimension_numbers=dn,
                                   feature_group_count=params["groups"])
    out = jax.nn.relu(bn(out, params["bn2"]))
    out = lax.conv_general_dilated(out, params["w3"], (1, 1), "VALID",
                                   dimension_numbers=dn)
    out = bn(out, params["bn3"])
    return jax.nn.relu(out + x_nchw)


# ---------------------------------------------------------------------------
if __name__ == "__main__":
    # inplanes == planes * 4 (identity residual), stride = 1, groups = 2.
    N, inplanes, H, W = 2, 128, 16, 16
    planes, groups, base_width = 32, 2, 64          # -> width = 64, Cout = 128

    key = jax.random.PRNGKey(0)
    k_x, k_p = jax.random.split(key)
    x = jax.random.normal(k_x, (N, inplanes, H, W), jnp.float32)

    params = init_bottleneck_params(k_p, inplanes, planes, groups, base_width)
    kparams = prepare_kernel_params(params)

    # block_n=1 keeps grid=(2,) "parallel" (both v7x TensorCores busy);
    # on v5e/v6e block_n=2 packs both batch elements into one grid step.
    fwd = jax.jit(functools.partial(bottleneck_forward,
                                    width=params["width"], block_n=1))
    y = jax.block_until_ready(fwd(x, kparams))

    assert y.shape == (N, planes * 4, H, W), y.shape
    assert bool(jnp.all(jnp.isfinite(y)))

    # bf16-matmul / bf16-output kernel vs f32 reference: loose rel tolerance.
    y_ref = bottleneck_ref(x, params)
    rel_err = float(jnp.max(jnp.abs(y - y_ref)) / (jnp.max(jnp.abs(y_ref)) + 1e-6))
    assert rel_err < 5e-2, rel_err

    print("KERNEL_OK")
</pallas_src>

<mosaic_0001>
module attributes {stable_mosaic.version = 11 : i64} {
  func.func @bottleneck_kernel(%arg0: i32, %arg1: memref<1x16x16x128xbf16, #tpu.memory_space<vmem>>, %arg2: memref<128x64xbf16, #tpu.memory_space<vmem>>, %arg3: memref<1x64xf32, #tpu.memory_space<vmem>>, %arg4: memref<1x64xf32, #tpu.memory_space<vmem>>, %arg5: memref<9x64x64xbf16, #tpu.memory_space<vmem>>, %arg6: memref<1x64xf32, #tpu.memory_space<vmem>>, %arg7: memref<1x64xf32, #tpu.memory_space<vmem>>, %arg8: memref<64x128xbf16, #tpu.memory_space<vmem>>, %arg9: memref<1x128xf32, #tpu.memory_space<vmem>>, %arg10: memref<1x128xf32, #tpu.memory_space<vmem>>, %arg11: memref<1x16x16x128xbf16, #tpu.memory_space<vmem>>, %arg12: memref<1x18x33x64xbf16, #tpu.memory_space<vmem>>) attributes {dimension_semantics = [#tpu.dimension_semantics<parallel>], iteration_bounds = array<i64: 2>, scalar_prefetch = 0 : i64, scratch_operands = 1 : i64, tpu.core_type = #tpu.core_type<tc>, window_params = [{transform_indices = @transform_0, window_bounds = array<i64: 1, 16, 16, 128>}, {pipeline_mode = #tpu.pipeline_mode<synchronous>, transform_indices = @transform_1, window_bounds = array<i64: 128, 64>}, {pipeline_mode = #tpu.pipeline_mode<synchronous>, transform_indices = @transform_2, window_bounds = array<i64: 1, 64>}, {pipeline_mode = #tpu.pipeline_mode<synchronous>, transform_indices = @transform_3, window_bounds = array<i64: 1, 64>}, {pipeline_mode = #tpu.pipeline_mode<synchronous>, transform_indices = @transform_4, window_bounds = array<i64: 9, 64, 64>}, {pipeline_mode = #tpu.pipeline_mode<synchronous>, transform_indices = @transform_5, window_bounds = array<i64: 1, 64>}, {pipeline_mode = #tpu.pipeline_mode<synchronous>, transform_indices = @transform_6, window_bounds = array<i64: 1, 64>}, {pipeline_mode = #tpu.pipeline_mode<synchronous>, transform_indices = @transform_7, window_bounds = array<i64: 64, 128>}, {pipeline_mode = #tpu.pipeline_mode<synchronous>, transform_indices = @transform_8, window_bounds = array<i64: 1, 128>}, {pipeline_mode = #tpu.pipeline_mode<synchronous>, transform_indices = @transform_9, window_bounds = array<i64: 1, 128>}, {transform_indices = @transform_10, window_bounds = array<i64: 1, 16, 16, 128>}]} {
    %c0 = arith.constant 0 : index
    %c0_0 = arith.constant 0 : index
    %c0_1 = arith.constant 0 : index
    %c0_2 = arith.constant 0 : index
    %0 = vector.load %arg1[%c0, %c0_0, %c0_1, %c0_2] : memref<1x16x16x128xbf16, #tpu.memory_space<vmem>>, vector<1x16x16x128xbf16>
    %1 = vector.shape_cast %0 : vector<1x16x16x128xbf16> to vector<256x128xbf16>
    %c0_3 = arith.constant 0 : index
    %c0_4 = arith.constant 0 : index
    %2 = vector.load %arg2[%c0_3, %c0_4] : memref<128x64xbf16, #tpu.memory_space<vmem>>, vector<128x64xbf16>
    %cst = arith.constant dense<0.000000e+00> : vector<256x64xf32>
    %3 = tpu.matmul %1, %2, %cst {dimension_numbers = #tpu.dot_dimension_numbers<[1], [0], [0], [1], [0, 0, 1, 1], [], []>} : vector<256x128xbf16>, vector<128x64xbf16>, vector<256x64xf32> -> vector<256x64xf32>
    %c0_5 = arith.constant 0 : index
    %c0_6 = arith.constant 0 : index
    %4 = vector.load %arg3[%c0_5, %c0_6] : memref<1x64xf32, #tpu.memory_space<vmem>>, vector<1x64xf32>
    %5 = vector.broadcast %4 : vector<1x64xf32> to vector<256x64xf32>
    %6 = arith.mulf %3, %5 : vector<256x64xf32>
    %c0_7 = arith.constant 0 : index
    %c0_8 = arith.constant 0 : index
    %7 = vector.load %arg4[%c0_7, %c0_8] : memref<1x64xf32, #tpu.memory_space<vmem>>, vector<1x64xf32>
    %8 = vector.broadcast %7 : vector<1x64xf32> to vector<256x64xf32>
    %9 = arith.addf %6, %8 : vector<256x64xf32>
    %cst_9 = arith.constant 0.000000e+00 : f32
    %10 = vector.broadcast %cst_9 : f32 to vector<256x64xf32>
    %11 = arith.maximumf %9, %10 : vector<256x64xf32>
    %cst_10 = arith.constant 0.000000e+00 : bf16
    %12 = vector.broadcast %cst_10 : bf16 to vector<1x1x18x64xbf16>
    %cst_11 = arith.constant 0.000000e+00 : bf16
    %13 = vector.broadcast %cst_11 : bf16 to vector<1x16x1x64xbf16>
    %c0_12 = arith.constant 0 : index
    %c0_13 = arith.constant 0 : index
    %c15 = arith.constant 15 : index
    %c0_14 = arith.constant 0 : index
    %14 = vector.load %arg12[%c0_12, %c0_13, %c15, %c0_14] : memref<1x18x33x64xbf16, #tpu.memory_space<vmem>>, vector<1x1x18x64xbf16>
    tpu.vector_store %arg12[%c0_12, %c0_13, %c15, %c0_14], %12 {strides = array<i32>} : memref<1x18x33x64xbf16, #tpu.memory_space<vmem>>, vector<1x1x18x64xbf16>,
    %c0_15 = arith.constant 0 : index
    %c17 = arith.constant 17 : index
    %c15_16 = arith.constant 15 : index
    %c0_17 = arith.constant 0 : index
    %15 = vector.load %arg12[%c0_15, %c17, %c15_16, %c0_17] : memref<1x18x33x64xbf16, #tpu.memory_space<vmem>>, vector<1x1x18x64xbf16>
    tpu.vector_store %arg12[%c0_15, %c17, %c15_16, %c0_17], %12 {strides = array<i32>} : memref<1x18x33x64xbf16, #tpu.memory_space<vmem>>, vector<1x1x18x64xbf16>,
    %c0_18 = arith.constant 0 : index
    %c1 = arith.constant 1 : index
    %c15_19 = arith.constant 15 : index
    %c0_20 = arith.constant 0 : index
    %16 = vector.load %arg12[%c0_18, %c1, %c15_19, %c0_20] : memref<1x18x33x64xbf16, #tpu.memory_space<vmem>>, vector<1x16x1x64xbf16>
    tpu.vector_store %arg12[%c0_18, %c1, %c15_19, %c0_20], %13 {strides = array<i32>} : memref<1x18x33x64xbf16, #tpu.memory_space<vmem>>, vector<1x16x1x64xbf16>,
    %c0_21 = arith.constant 0 : index
    %c1_22 = arith.constant 1 : index
    %c32 = arith.constant 32 : index
    %c0_23 = arith.constant 0 : index
    %17 = vector.load %arg12[%c0_21, %c1_22, %c32, %c0_23] : memref<1x18x33x64xbf16, #tpu.memory_space<vmem>>, vector<1x16x1x64xbf16>
    tpu.vector_store %arg12[%c0_21, %c1_22, %c32, %c0_23], %13 {strides = array<i32>} : memref<1x18x33x64xbf16, #tpu.memory_space<vmem>>, vector<1x16x1x64xbf16>,
    %18 = vector.shape_cast %11 : vector<256x64xf32> to vector<1x16x16x64xf32>
    %19 = arith.truncf %18 : vector<1x16x16x64xf32> to vector<1x16x16x64xbf16>
    %c0_24 = arith.constant 0 : index
    %c1_25 = arith.constant 1 : index
    %c16 = arith.constant 16 : index
    %c0_26 = arith.constant 0 : index
    %20 = vector.load %arg12[%c0_24, %c1_25, %c16, %c0_26] : memref<1x18x33x64xbf16, #tpu.memory_space<vmem>>, vector<1x16x16x64xbf16>
    tpu.vector_store %arg12[%c0_24, %c1_25, %c16, %c0_26], %19 {strides = array<i32>} : memref<1x18x33x64xbf16, #tpu.memory_space<vmem>>, vector<1x16x16x64xbf16>,
    %cst_27 = arith.constant 0.000000e+00 : f32
    %21 = vector.broadcast %cst_27 : f32 to vector<256x64xf32>
    %c0_28 = arith.constant 0 : index
    %c0_29 = arith.constant 0 : index
    %c15_30 = arith.constant 15 : index
    %c0_31 = arith.constant 0 : index
    %22 = vector.load %arg12[%c0_28, %c0_29, %c15_30, %c0_31] : memref<1x18x33x64xbf16, #tpu.memory_space<vmem>>, vector<1x16x16x64xbf16>
    %23 = vector.shape_cast %22 : vector<1x16x16x64xbf16> to vector<256x64xbf16>
    %c0_32 = arith.constant 0 : index
    %c0_33 = arith.constant 0 : index
    %c0_34 = arith.constant 0 : index
    %24 = vector.load %arg5[%c0_32, %c0_33, %c0_34] : memref<9x64x64xbf16, #tpu.memory_space<vmem>>, vector<1x64x64xbf16>
    %25 = vector.shape_cast %24 : vector<1x64x64xbf16> to vector<64x64xbf16>
    %cst_35 = arith.constant dense<0.000000e+00> : vector<256x64xf32>
    %26 = tpu.matmul %23, %25, %cst_35 {dimension_numbers = #tpu.dot_dimension_numbers<[1], [0], [0], [1], [0, 0, 1, 1], [], []>} : vector<256x64xbf16>, vector<64x64xbf16>, vector<256x64xf32> -> vector<256x64xf32>
    %27 = arith.addf %21, %26 : vector<256x64xf32>
    %c0_36 = arith.constant 0 : index
    %c0_37 = arith.constant 0 : index
    %c16_38 = arith.constant 16 : index
    %c0_39 = arith.constant 0 : index
    %28 = vector.load %arg12[%c0_36, %c0_37, %c16_38, %c0_39] : memref<1x18x33x64xbf16, #tpu.memory_space<vmem>>, vector<1x16x16x64xbf16>
    %29 = vector.shape_cast %28 : vector<1x16x16x64xbf16> to vector<256x64xbf16>
    %c1_40 = arith.constant 1 : index
    %c0_41 = arith.constant 0 : index
    %c0_42 = arith.constant 0 : index
    %30 = vector.load %arg5[%c1_40, %c0_41, %c0_42] : memref<9x64x64xbf16, #tpu.memory_space<vmem>>, vector<1x64x64xbf16>
    %31 = vector.shape_cast %30 : vector<1x64x64xbf16> to vector<64x64xbf16>
    %cst_43 = arith.constant dense<0.000000e+00> : vector<256x64xf32>
    %32 = tpu.matmul %29, %31, %cst_43 {dimension_numbers = #tpu.dot_dimension_numbers<[1], [0], [0], [1], [0, 0, 1, 1], [], []>} : vector<256x64xbf16>, vector<64x64xbf16>, vector<256x64xf32> -> vector<256x64xf32>
    %33 = arith.addf %27, %32 : vector<256x64xf32>
    %c0_44 = arith.constant 0 : index
    %c0_45 = arith.constant 0 : index
    %c17_46 = arith.constant 17 : index
    %c0_47 = arith.constant 0 : index
    %34 = vector.load %arg12[%c0_44, %c0_45, %c17_46, %c0_47] : memref<1x18x33x64xbf16, #tpu.memory_space<vmem>>, vector<1x16x16x64xbf16>
    %35 = vector.shape_cast %34 : vector<1x16x16x64xbf16> to vector<256x64xbf16>
    %c2 = arith.constant 2 : index
    %c0_48 = arith.constant 0 : index
    %c0_49 = arith.constant 0 : index
    %36 = vector.load %arg5[%c2, %c0_48, %c0_49] : memref<9x64x64xbf16, #tpu.memory_space<vmem>>, vector<1x64x64xbf16>
    %37 = vector.shape_cast %36 : vector<1x64x64xbf16> to vector<64x64xbf16>
    %cst_50 = arith.constant dense<0.000000e+00> : vector<256x64xf32>
    %38 = tpu.matmul %35, %37, %cst_50 {dimension_numbers = #tpu.dot_dimension_numbers<[1], [0], [0], [1], [0, 0, 1, 1], [], []>} : vector<256x64xbf16>, vector<64x64xbf16>, vector<256x64xf32> -> vector<256x64xf32>
    %39 = arith.addf %33, %38 : vector<256x64xf32>
    %c0_51 = arith.constant 0 : index
    %c1_52 = arith.constant 1 : index
    %c15_53 = arith.constant 15 : index
    %c0_54 = arith.constant 0 : index
    %40 = vector.load %arg12[%c0_51, %c1_52, %c15_53, %c0_54] : memref<1x18x33x64xbf16, #tpu.memory_space<vmem>>, vector<1x16x16x64xbf16>
    %41 = vector.shape_cast %40 : vector<1x16x16x64xbf16> to vector<256x64xbf16>
    %c3 = arith.constant 3 : index
    %c0_55 = arith.constant 0 : index
    %c0_56 = arith.constant 0 : index
    %42 = vector.load %arg5[%c3, %c0_55, %c0_56] : memref<9x64x64xbf16, #tpu.memory_space<vmem>>, vector<1x64x64xbf16>
    %43 = vector.shape_cast %42 : vector<1x64x64xbf16> to vector<64x64xbf16>
    %cst_57 = arith.constant dense<0.000000e+00> : vector<256x64xf32>
    %44 = tpu.matmul %41, %43, %cst_57 {dimension_numbers = #tpu.dot_dimension_numbers<[1], [0], [0], [1], [0, 0, 1, 1], [], []>} : vector<256x64xbf16>, vector<64x64xbf16>, vector<256x64xf32> -> vector<256x64xf32>
    %45 = arith.addf %39, %44 : vector<256x64xf32>
    %c0_58 = arith.constant 0 : index
    %c1_59 = arith.constant 1 : index
    %c16_60 = arith.constant 16 : index
    %c0_61 = arith.constant 0 : index
    %46 = vector.load %arg12[%c0_58, %c1_59, %c16_60, %c0_61] : memref<1x18x33x64xbf16, #tpu.memory_space<vmem>>, vector<1x16x16x64xbf16>
    %47 = vector.shape_cast %46 : vector<1x16x16x64xbf16> to vector<256x64xbf16>
    %c4 = arith.constant 4 : index
    %c0_62 = arith.constant 0 : index
    %c0_63 = arith.constant 0 : index
    %48 = vector.load %arg5[%c4, %c0_62, %c0_63] : memref<9x64x64xbf16, #tpu.memory_space<vmem>>, vector<1x64x64xbf16>
    %49 = vector.shape_cast %48 : vector<1x64x64xbf16> to vector<64x64xbf16>
    %cst_64 = arith.constant dense<0.000000e+00> : vector<256x64xf32>
    %50 = tpu.matmul %47, %49, %cst_64 {dimension_numbers = #tpu.dot_dimension_numbers<[1], [0], [0], [1], [0, 0, 1, 1], [], []>} : vector<256x64xbf16>, vector<64x64xbf16>, vector<256x64xf32> -> vector<256x64xf32>
    %51 = arith.addf %45, %50 : vector<256x64xf32>
    %c0_65 = arith.constant 0 : index
    %c1_66 = arith.constant 1 : index
    %c17_67 = arith.constant 17 : index
    %c0_68 = arith.constant 0 : index
    %52 = vector.load %arg12[%c0_65, %c1_66, %c17_67, %c0_68] : memref<1x18x33x64xbf16, #tpu.memory_space<vmem>>, vector<1x16x16x64xbf16>
    %53 = vector.shape_cast %52 : vector<1x16x16x64xbf16> to vector<256x64xbf16>
    %c5 = arith.constant 5 : index
    %c0_69 = arith.constant 0 : index
    %c0_70 = arith.constant 0 : index
    %54 = vector.load %arg5[%c5, %c0_69, %c0_70] : memref<9x64x64xbf16, #tpu.memory_space<vmem>>, vector<1x64x64xbf16>
    %55 = vector.shape_cast %54 : vector<1x64x64xbf16> to vector<64x64xbf16>
    %cst_71 = arith.constant dense<0.000000e+00> : vector<256x64xf32>
    %56 = tpu.matmul %53, %55, %cst_71 {dimension_numbers = #tpu.dot_dimension_numbers<[1], [0], [0], [1], [0, 0, 1, 1], [], []>} : vector<256x64xbf16>, vector<64x64xbf16>, vector<256x64xf32> -> vector<256x64xf32>
    %57 = arith.addf %51, %56 : vector<256x64xf32>
    %c0_72 = arith.constant 0 : index
    %c2_73 = arith.constant 2 : index
    %c15_74 = arith.constant 15 : index
    %c0_75 = arith.constant 0 : index
    %58 = vector.load %arg12[%c0_72, %c2_73, %c15_74, %c0_75] : memref<1x18x33x64xbf16, #tpu.memory_space<vmem>>, vector<1x16x16x64xbf16>
    %59 = vector.shape_cast %58 : vector<1x16x16x64xbf16> to vector<256x64xbf16>
    %c6 = arith.constant 6 : index
    %c0_76 = arith.constant 0 : index
    %c0_77 = arith.constant 0 : index
    %60 = vector.load %arg5[%c6, %c0_76, %c0_77] : memref<9x64x64xbf16, #tpu.memory_space<vmem>>, vector<1x64x64xbf16>
    %61 = vector.shape_cast %60 : vector<1x64x64xbf16> to vector<64x64xbf16>
    %cst_78 = arith.constant dense<0.000000e+00> : vector<256x64xf32>
    %62 = tpu.matmul %59, %61, %cst_78 {dimension_numbers = #tpu.dot_dimension_numbers<[1], [0], [0], [1], [0, 0, 1, 1], [], []>} : vector<256x64xbf16>, vector<64x64xbf16>, vector<256x64xf32> -> vector<256x64xf32>
    %63 = arith.addf %57, %62 : vector<256x64xf32>
    %c0_79 = arith.constant 0 : index
    %c2_80 = arith.constant 2 : index
    %c16_81 = arith.constant 16 : index
    %c0_82 = arith.constant 0 : index
    %64 = vector.load %arg12[%c0_79, %c2_80, %c16_81, %c0_82] : memref<1x18x33x64xbf16, #tpu.memory_space<vmem>>, vector<1x16x16x64xbf16>
    %65 = vector.shape_cast %64 : vector<1x16x16x64xbf16> to vector<256x64xbf16>
    %c7 = arith.constant 7 : index
    %c0_83 = arith.constant 0 : index
    %c0_84 = arith.constant 0 : index
    %66 = vector.load %arg5[%c7, %c0_83, %c0_84] : memref<9x64x64xbf16, #tpu.memory_space<vmem>>, vector<1x64x64xbf16>
    %67 = vector.shape_cast %66 : vector<1x64x64xbf16> to vector<64x64xbf16>
    %cst_85 = arith.constant dense<0.000000e+00> : vector<256x64xf32>
    %68 = tpu.matmul %65, %67, %cst_85 {dimension_numbers = #tpu.dot_dimension_numbers<[1], [0], [0], [1], [0, 0, 1, 1], [], []>} : vector<256x64xbf16>, vector<64x64xbf16>, vector<256x64xf32> -> vector<256x64xf32>
    %69 = arith.addf %63, %68 : vector<256x64xf32>
    %c0_86 = arith.constant 0 : index
    %c2_87 = arith.constant 2 : index
    %c17_88 = arith.constant 17 : index
    %c0_89 = arith.constant 0 : index
    %70 = vector.load %arg12[%c0_86, %c2_87, %c17_88, %c0_89] : memref<1x18x33x64xbf16, #tpu.memory_space<vmem>>, vector<1x16x16x64xbf16>
    %71 = vector.shape_cast %70 : vector<1x16x16x64xbf16> to vector<256x64xbf16>
    %c8 = arith.constant 8 : index
    %c0_90 = arith.constant 0 : index
    %c0_91 = arith.constant 0 : index
    %72 = vector.load %arg5[%c8, %c0_90, %c0_91] : memref<9x64x64xbf16, #tpu.memory_space<vmem>>, vector<1x64x64xbf16>
    %73 = vector.shape_cast %72 : vector<1x64x64xbf16> to vector<64x64xbf16>
    %cst_92 = arith.constant dense<0.000000e+00> : vector<256x64xf32>
    %74 = tpu.matmul %71, %73, %cst_92 {dimension_numbers = #tpu.dot_dimension_numbers<[1], [0], [0], [1], [0, 0, 1, 1], [], []>} : vector<256x64xbf16>, vector<64x64xbf16>, vector<256x64xf32> -> vector<256x64xf32>
    %75 = arith.addf %69, %74 : vector<256x64xf32>
    %c0_93 = arith.constant 0 : index
    %c0_94 = arith.constant 0 : index
    %76 = vector.load %arg6[%c0_93, %c0_94] : memref<1x64xf32, #tpu.memory_space<vmem>>, vector<1x64xf32>
    %77 = vector.broadcast %76 : vector<1x64xf32> to vector<256x64xf32>
    %78 = arith.mulf %75, %77 : vector<256x64xf32>
    %c0_95 = arith.constant 0 : index
    %c0_96 = arith.constant 0 : index
    %79 = vector.load %arg7[%c0_95, %c0_96] : memref<1x64xf32, #tpu.memory_space<vmem>>, vector<1x64xf32>
    %80 = vector.broadcast %79 : vector<1x64xf32> to vector<256x64xf32>
    %81 = arith.addf %78, %80 : vector<256x64xf32>
    %cst_97 = arith.constant 0.000000e+00 : f32
    %82 = vector.broadcast %cst_97 : f32 to vector<256x64xf32>
    %83 = arith.maximumf %81, %82 : vector<256x64xf32>
    %84 = arith.truncf %83 : vector<256x64xf32> to vector<256x64xbf16>
    %c0_98 = arith.constant 0 : index
    %c0_99 = arith.constant 0 : index
    %85 = vector.load %arg8[%c0_98, %c0_99] : memref<64x128xbf16, #tpu.memory_space<vmem>>, vector<64x128xbf16>
    %cst_100 = arith.constant dense<0.000000e+00> : vector<256x128xf32>
    %86 = tpu.matmul %84, %85, %cst_100 {dimension_numbers = #tpu.dot_dimension_numbers<[1], [0], [0], [1], [0, 0, 1, 1], [], []>} : vector<256x64xbf16>, vector<64x128xbf16>, vector<256x128xf32> -> vector<256x128xf32>
    %c0_101 = arith.constant 0 : index
    %c0_102 = arith.constant 0 : index
    %87 = vector.load %arg9[%c0_101, %c0_102] : memref<1x128xf32, #tpu.memory_space<vmem>>, vector<1x128xf32>
    %88 = vector.broadcast %87 : vector<1x128xf32> to vector<256x128xf32>
    %89 = arith.mulf %86, %88 : vector<256x128xf32>
    %c0_103 = arith.constant 0 : index
    %c0_104 = arith.constant 0 : index
    %90 = vector.load %arg10[%c0_103, %c0_104] : memref<1x128xf32, #tpu.memory_space<vmem>>, vector<1x128xf32>
    %91 = vector.broadcast %90 : vector<1x128xf32> to vector<256x128xf32>
    %92 = arith.addf %89, %91 : vector<256x128xf32>
    %c0_105 = arith.constant 0 : index
    %c0_106 = arith.constant 0 : index
    %c0_107 = arith.constant 0 : index
    %c0_108 = arith.constant 0 : index
    %93 = vector.load %arg1[%c0_105, %c0_106, %c0_107, %c0_108] : memref<1x16x16x128xbf16, #tpu.memory_space<vmem>>, vector<1x16x16x128xbf16>
    %94 = vector.shape_cast %93 : vector<1x16x16x128xbf16> to vector<256x128xbf16>
    %95 = arith.extf %94 : vector<256x128xbf16> to vector<256x128xf32>
    %96 = arith.addf %92, %95 : vector<256x128xf32>
    %cst_109 = arith.constant 0.000000e+00 : f32
    %97 = vector.broadcast %cst_109 : f32 to vector<256x128xf32>
    %98 = arith.maximumf %96, %97 : vector<256x128xf32>
    %99 = vector.shape_cast %98 : vector<256x128xf32> to vector<1x16x16x128xf32>
    %100 = arith.truncf %99 : vector<1x16x16x128xf32> to vector<1x16x16x128xbf16>
    %c0_110 = arith.constant 0 : index
    %c0_111 = arith.constant 0 : index
    %c0_112 = arith.constant 0 : index
    %c0_113 = arith.constant 0 : index
    %101 = vector.load %arg11[%c0_110, %c0_111, %c0_112, %c0_113] : memref<1x16x16x128xbf16, #tpu.memory_space<vmem>>, vector<1x16x16x128xbf16>
    tpu.vector_store %arg11[%c0_110, %c0_111, %c0_112, %c0_113], %100 {strides = array<i32>} : memref<1x16x16x128xbf16, #tpu.memory_space<vmem>>, vector<1x16x16x128xbf16>,
    return
  }
  func.func @transform_0(%arg0: i32) -> (i32, i32, i32, i32) {
    %c0_i32 = arith.constant 0 : i32
    %c0_i32_0 = arith.constant 0 : i32
    %c0_i32_1 = arith.constant 0 : i32
    %c0_i32_2 = arith.constant 0 : i32
    return %arg0, %c0_i32, %c0_i32_0, %c0_i32_1 : i32, i32, i32, i32
  }
  func.func @transform_1(%arg0: i32) -> (i32, i32) {
    %c0_i32 = arith.constant 0 : i32
    %c0_i32_0 = arith.constant 0 : i32
    %c0_i32_1 = arith.constant 0 : i32
    return %c0_i32, %c0_i32_0 : i32, i32
  }
  func.func @transform_2(%arg0: i32) -> (i32, i32) {
    %c0_i32 = arith.constant 0 : i32
    %c0_i32_0 = arith.constant 0 : i32
    %c0_i32_1 = arith.constant 0 : i32
    return %c0_i32, %c0_i32_0 : i32, i32
  }
  func.func @transform_3(%arg0: i32) -> (i32, i32) {
    %c0_i32 = arith.constant 0 : i32
    %c0_i32_0 = arith.constant 0 : i32
    %c0_i32_1 = arith.constant 0 : i32
    return %c0_i32, %c0_i32_0 : i32, i32
  }
  func.func @transform_4(%arg0: i32) -> (i32, i32, i32) {
    %c0_i32 = arith.constant 0 : i32
    %c0_i32_0 = arith.constant 0 : i32
    %c0_i32_1 = arith.constant 0 : i32
    %c0_i32_2 = arith.constant 0 : i32
    return %c0_i32, %c0_i32_0, %c0_i32_1 : i32, i32, i32
  }
  func.func @transform_5(%arg0: i32) -> (i32, i32) {
    %c0_i32 = arith.constant 0 : i32
    %c0_i32_0 = arith.constant 0 : i32
    %c0_i32_1 = arith.constant 0 : i32
    return %c0_i32, %c0_i32_0 : i32, i32
  }
  func.func @transform_6(%arg0: i32) -> (i32, i32) {
    %c0_i32 = arith.constant 0 : i32
    %c0_i32_0 = arith.constant 0 : i32
    %c0_i32_1 = arith.constant 0 : i32
    return %c0_i32, %c0_i32_0 : i32, i32
  }
  func.func @transform_7(%arg0: i32) -> (i32, i32) {
    %c0_i32 = arith.constant 0 : i32
    %c0_i32_0 = arith.constant 0 : i32
    %c0_i32_1 = arith.constant 0 : i32
    return %c0_i32, %c0_i32_0 : i32, i32
  }
  func.func @transform_8(%arg0: i32) -> (i32, i32) {
    %c0_i32 = arith.constant 0 : i32
    %c0_i32_0 = arith.constant 0 : i32
    %c0_i32_1 = arith.constant 0 : i32
    return %c0_i32, %c0_i32_0 : i32, i32
  }
  func.func @transform_9(%arg0: i32) -> (i32, i32) {
    %c0_i32 = arith.constant 0 : i32
    %c0_i32_0 = arith.constant 0 : i32
    %c0_i32_1 = arith.constant 0 : i32
    return %c0_i32, %c0_i32_0 : i32, i32
  }
  func.func @transform_10(%arg0: i32) -> (i32, i32, i32, i32) {
    %c0_i32 = arith.constant 0 : i32
    %c0_i32_0 = arith.constant 0 : i32
    %c0_i32_1 = arith.constant 0 : i32
    %c0_i32_2 = arith.constant 0 : i32
    return %arg0, %c0_i32, %c0_i32_0, %c0_i32_1 : i32, i32, i32, i32
  }
}

</mosaic_0001>

<bundles_post_ra>
// kernel: bottleneck_forward.1
= control target key start
LH: loop header
LB: loop body
LE: loop exit
PB: predicated region body
PF: predicated region fallthrough
CT: control target
= control target key end

     0   :  { %s9250_s13 = smov 0   ;;  %s11398_s0 = inlined_call_operand.vmem [shape: bf16[2,16,16,128], index: 0, kind: input, shape index: {}]   ;;  %s11399_s1 = inlined_call_operand.vmem [shape: bf16[128,64], index: 1, kind: input, shape index: {}]   ;;  %s11400_s2 = inlined_call_operand.vmem [shape: f32[1,64], index: 2, kind: input, shape index: {}]   ;;  %s11401_s3 = inlined_call_operand.vmem [shape: f32[1,64], index: 3, kind: input, shape index: {}]   ;;  %s11402_s4 = inlined_call_operand.vmem [shape: bf16[9,64,64], index: 4, kind: input, shape index: {}]   ;;  %s11403_s5 = inlined_call_operand.vmem [shape: f32[1,64], index: 5, kind: input, shape index: {}]   ;;  %s11404_s6 = inlined_call_operand.vmem [shape: f32[1,64], index: 6, kind: input, shape index: {}]   ;;  %s11405_s7 = inlined_call_operand.vmem [shape: bf16[64,128], index: 7, kind: input, shape index: {}]   ;;  %s11406_s8 = inlined_call_operand.vmem [shape: f32[1,128], index: 8, kind: input, shape index: {}]   ;;  %s11407_s9 = inlined_call_operand.vmem [shape: f32[1,128], index: 9, kind: input, shape index: {}]   ;;  %s11408_s10 = inlined_call_operand.vmem [shape: bf16[2,16,16,128], index: 10, kind: output, shape index: {}]  }
   0x1 LB: > { %s7325_s14 = sadd.s32 4294967295, %s9192_s13   ;;  %p7329_p0 = scmp.ge.s32.totalorder %s9192_s13, 1  ;;  %s9192_s13 = sphi %s9250_s13, %s20_s13  }
   0x2   : > { %p312_p1 = scmp.lt.s32.totalorder %s9192_s13, 3 }
   0x4   : > { %p313_p2 = pnand %p7329_p0, %p312_p1 }
   0x6   : > { %316 = sbr.rel (%p313_p2) target bundleno = 1201 (0x4b1), region = 60 }
   0xd   : > { %v9071_v0 = vld [vmem:[%s11399_s1] sm:$0xff]   ;;  %p350_p3 = scmp.lt.s32.totalorder %s7325_s14, 1  ;;  %v9072_v1 = vld [vmem:[%s11399_s1 + $0x8] sm:$0xff]   ;;  %v9073_v2 = vld [vmem:[%s11399_s1 + $0x10] sm:$0xff]   ;;  %vm830_vm0 = vcmask 519168   ;;  %v9194_v26 = vmov 0  }
   0xe   : > { %8350 = vmatprep.subr.bf16.mxu0 %v9071_v0  ;;  %v9074_v3 = vld [vmem:[%s11399_s1 + $0x18] sm:$0xff]   ;;  %v9075_v5 = vld [vmem:[%s11399_s1 + $0x20] sm:$0xff]   ;;  %v9076_v6 = vld [vmem:[%s11399_s1 + $0x28] sm:$0xff]   ;;  %831 = vst.msk [vmem:[#allocation2 + $0x8] sm:$0xf] %vm830_vm0, %v9194_v26  ;;  %vm1628_vm1 = vcmask 523264  }
   0xf   : > { %s11667_s14 = smov (!%p350_p3, %s7325_s14), 1  ;;  %8351 = vmatpush3.bf16.msra.mxu0 %v9071_v0  ;;  %v9077_v7 = vld [vmem:[%s11399_s1 + $0x30] sm:$0xff]   ;;  %v9078_v8 = vld [vmem:[%s11399_s1 + $0x38] sm:$0xff]   ;;  %v9095_v24 = vld [vmem:[%s11402_s4 + $0x20] sm:$0xff]   ;;  %832 = vst.msk [vmem:[#allocation2 + $0xc] sm:$0xf] %vm830_vm0, %v9194_v26 }
  0x10   : > { %8352 = vmatprep.subr.bf16.mxu0 %v9072_v1  ;;  %s7886_s21 = sshll.u32 %s11667_s14, 7  ;;  %v9096_v25 = vld [vmem:[%s11402_s4 + $0x28] sm:$0xff]   ;;  %843 = vst.msk [vmem:[#allocation2 + $0x15c] sm:$0xf] %vm830_vm0, %v9194_v26  ;;  %844 = vst.msk [vmem:[#allocation2 + $0x160] sm:$0xf] %vm830_vm0, %v9194_v26 }
  0x11   : > { %s9275_s24 = scalar_lea.vmem %s11398_s0, %s7886_s21  ;;  %v9097_v27 = vld [vmem:[%s11402_s4 + $0x30] sm:$0xff]   ;;  %v9098_v28 = vld [vmem:[%s11402_s4 + $0x38] sm:$0xff]   ;;  %vm824_vm2 = vcmask 519171   ;;  %vm825_vm3 = vsmask.f32 7950  ;;  %v11472_v32 = vmov 0  ;;  %s11310_s27 = scalar_lea.vmem %s11408_s10, %s7886_s21 }
  0x12   : > { %v9079_v4 = vld [vmem:[%s9275_s24] sm:$0xff]   ;;  %v9080_v9 = vld [vmem:[%s9275_s24 + $0x8] sm:$0xff]   ;;  %v9081_v10 = vld [vmem:[%s9275_s24 + $0x10] sm:$0xff]   ;;  %vm1153_vm5 = vsmask.f32 4368  ;;  %vm833_vm7 = vcmask 516096  }
  0x13   : > { %8353 = vmatpush3.bf16.msra.mxu0 %v9072_v1  ;;  %8366 = vmatprep.mubr.bf16.mxu0 %v9079_v4  ;;  %v9082_v11 = vld [vmem:[%s9275_s24 + $0x18] sm:$0xff]   ;;  %v9083_v12 = vld [vmem:[%s9275_s24 + $0x20] sm:$0xff]   ;;  %v9084_v13 = vld [vmem:[%s9275_s24 + $0x28] sm:$0xff]   ;;  %vm834_vm6 = vsmask.f32 256 }
  0x14   : > { %8354 = vmatprep.subr.bf16.mxu0 %v9073_v2  ;;  %v9085_v14 = vld [vmem:[%s9275_s24 + $0x30] sm:$0xff]   ;;  %v9086_v15 = vld [vmem:[%s9275_s24 + $0x38] sm:$0xff]   ;;  %v9087_v16 = vld [vmem:[%s9275_s24 + $0x40] sm:$0xff]   ;;  %vm2167_vm10 = vsmask.f32 3328 }
  0x15   : > { %v9088_v17 = vld [vmem:[%s9275_s24 + $0x48] sm:$0xff]   ;;  %v9089_v18 = vld [vmem:[%s9275_s24 + $0x50] sm:$0xff]   ;;  %v9090_v19 = vld [vmem:[%s9275_s24 + $0x58] sm:$0xff]   ;;  %vm2168_vm11 = vsmask.f32 7440 }
  0x16   : > { %v9091_v20 = vld [vmem:[%s9275_s24 + $0x60] sm:$0xff]   ;;  %v9092_v21 = vld [vmem:[%s9275_s24 + $0x68] sm:$0xff]   ;;  %v9093_v22 = vld [vmem:[%s9275_s24 + $0x70] sm:$0xff]  }
  0x17   : > { %8355 = vmatpush3.bf16.msra.mxu0 %v9073_v2  ;;  %v9094_v23 = vld [vmem:[%s9275_s24 + $0x78] sm:$0xff]   ;;  %v9324_v29 = vld [vmem:[#allocation2 + $0x8] sm:$0xf]  ;;  %v9326_v30 = vld [vmem:[#allocation2 + $0xc] sm:$0xf] }
  0x18   : > { %8356 = vmatprep.subr.bf16.mxu0 %v9074_v3  ;;  %v7416_v31 = vcombine.low %v9324_v29, %v9326_v30  ;;  %vm9331_vm4 = vmand %vm824_vm2, %vm825_vm3  ;;  %v849_v33 = vld [vmem:[#allocation2 + $0x18] sm:$0x8]  ;;  %v867_v35 = vld [vmem:[#allocation2 + $0x90] sm:$0x8]  ;;  %v1161_v60 = vshrl.u32 %v9324_v29, 16  ;;  %v1170_v61 = vshrl.u32 %v9326_v30, 16 }
  0x19   : > { %v11473_v32 = vsel %vm9331_vm4, 4294967295, %v11472_v32  ;;  %v850_v34 = vsel %vm9331_vm4, 0, %v849_v33  ;;  %v868_v36 = vsel %vm9331_vm4, 0, %v867_v35  ;;  %v870_v37 = vld [vmem:[#allocation2 + $0xa4] sm:$0x8]  ;;  %v9107_v40 = vld [vmem:[%s11402_s4 + $0x68] sm:$0xff]   ;;  %vm9387_vm8 = vmor %vm834_vm6, %vm1153_vm5 }
  0x1a   : > { %11474 = vst [vmem:[#allocation3_spill] sm:$0xff] %v11473_v32  ;;  %851 = vst [vmem:[#allocation2 + $0x18] sm:$0x8] %v850_v34  ;;  %v9104_v38 = vld [vmem:[%s11402_s4 + $0x60] sm:$0xff]   ;;  %v871_v39 = vsel %vm9331_vm4, 0, %v870_v37  ;;  %v9108_v41 = vld [vmem:[%s11402_s4 + $0x70] sm:$0xff]  }
  0x1b   : > { %8357 = vmatpush3.bf16.msra.mxu0 %v9074_v3  ;;  %869 = vst [vmem:[#allocation2 + $0x90] sm:$0x8] %v868_v36  ;;  %872 = vst [vmem:[#allocation2 + $0xa4] sm:$0x8] %v871_v39  ;;  %8798 = vmatprep.subr.bf16.mxu1 %v9104_v38  ;;  %v9111_v42 = vld [vmem:[%s11402_s4 + $0x78] sm:$0xff]   ;;  %v9360_v47 = vld [vmem:[%s11402_s4 + $0x80] sm:$0xff]  }
  0x1c   : > { %8358 = vmatprep.subr.bf16.mxu0 %v9075_v5  ;;  %8802 = vmatpush3.bf16.msra.mxu1 %v9104_v38  ;;  %v876_v43 = vld [vmem:[#allocation2 + $0xcc] sm:$0x8]  ;;  %v873_v44 = vld [vmem:[#allocation2 + $0xb8] sm:$0x8]  ;;  %v882_v48 = vld [vmem:[#allocation2 + $0xf4] sm:$0x8] }
  0x1d   : > { %8799 = vmatprep.subr.bf16.mxu1 %v9107_v40  ;;  %v877_v45 = vsel %vm9331_vm4, 0, %v876_v43  ;;  %v874_v46 = vsel %vm9331_vm4, 0, %v873_v44  ;;  %v879_v49 = vld [vmem:[#allocation2 + $0xe0] sm:$0x8]  ;;  %v883_v50 = vsel %vm9331_vm4, 0, %v882_v48  ;;  %v1163_v1 = vrot.slane %v1161_v60, 7  ;;  %vm9391_vm9 = vmand %vm833_vm7, %vm834_vm6 }
  0x1e   : > { %878 = vst [vmem:[#allocation2 + $0xcc] sm:$0x8] %v877_v45  ;;  %875 = vst [vmem:[#allocation2 + $0xb8] sm:$0x8] %v874_v46  ;;  %v880_v51 = vsel %vm9331_vm4, 0, %v879_v49  ;;  %v9376_v58 = vld [vmem:[%s11402_s4] sm:$0xff]  }
  0x1f   : > { %8359 = vmatpush3.bf16.msra.mxu0 %v9075_v5  ;;  %884 = vst [vmem:[#allocation2 + $0xf4] sm:$0x8] %v883_v50  ;;  %881 = vst [vmem:[#allocation2 + $0xe0] sm:$0x8] %v880_v51  ;;  %v852_v52 = vld [vmem:[#allocation2 + $0x2c] sm:$0x8] }
  0x20   : > { %8360 = vmatprep.subr.bf16.mxu0 %v9076_v6  ;;  %8803 = vmatpush3.bf16.msra.mxu1 %v9107_v40  ;;  %v853_v53 = vsel %vm9331_vm4, 0, %v852_v52  ;;  %v888_v54 = vld [vmem:[#allocation2 + $0x11c] sm:$0x8]  ;;  %v885_v55 = vld [vmem:[#allocation2 + $0x108] sm:$0x8]  ;;  %v1172_v2 = vrot.slane %v1170_v61, 7  ;;  %vm10338_vm12 = vmor %vm2167_vm10, %vm2168_vm11 }
  0x21   : > { %8800 = vmatprep.subr.bf16.mxu1 %v9108_v41  ;;  %854 = vst [vmem:[#allocation2 + $0x2c] sm:$0x8] %v853_v53  ;;  %v889_v56 = vsel %vm9331_vm4, 0, %v888_v54  ;;  %v886_v57 = vsel %vm9331_vm4, 0, %v885_v55  ;;  %v891_v59 = vld [vmem:[#allocation2 + $0x130] sm:$0x8] }
  0x22   : > { %890 = vst [vmem:[#allocation2 + $0x11c] sm:$0x8] %v889_v56  ;;  %887 = vst [vmem:[#allocation2 + $0x108] sm:$0x8] %v886_v57  ;;  %v892_v62 = vsel %vm9331_vm4, 0, %v891_v59  ;;  %v1173_v3 = vshll.u32 %v9326_v30, 16 }
  0x23   : > { %8361 = vmatpush3.bf16.msra.mxu0 %v9076_v6  ;;  %v827_v63 = vld [vmem:[#allocation2 + $0x4] sm:$0x8]  ;;  %893 = vst [vmem:[#allocation2 + $0x130] sm:$0x8] %v892_v62  ;;  %v1164_v4 = vshll.u32 %v9324_v29, 16  ;;  %v1168_v6 = vrot.slane %v1163_v1, 4 }
  0x24   : > { %8362 = vmatprep.subr.bf16.mxu0 %v9077_v7  ;;  %8804 = vmatpush3.bf16.msra.mxu1 %v9108_v41  ;;  %v828_v0 = vsel %vm9331_vm4, 0, %v827_v63  ;;  %v2894_v29 = vld [vmem:[#allocation2 + $0x90] sm:$0x8]  ;;  %v2897_v30 = vld [vmem:[#allocation2 + $0xa4] sm:$0x8] }
  0x25   : > { %8801 = vmatprep.subr.bf16.mxu1 %v9111_v42  ;;  %829 = vst [vmem:[#allocation2 + $0x4] sm:$0x8] %v828_v0  ;;  %v2900_v33 = vld [vmem:[#allocation2 + $0xb8] sm:$0x8]  ;;  %v3057_v38 = vshrl.u32 %v2894_v29, 16  ;;  %v3079_v39 = vshrl.u32 %v2897_v30, 16 }
  0x26   : > { %v2909_v34 = vld [vmem:[#allocation2 + $0xf4] sm:$0x8]  ;;  %v2906_v35 = vld [vmem:[#allocation2 + $0xe0] sm:$0x8]  ;;  %v9416_v45 = vld [vmem:[%s11400_s2] ss:$0 sm:$0xff] }
  0x27   : > { %8363 = vmatpush3.bf16.msra.mxu0 %v9077_v7  ;;  %v1175_v7 = vor.u32 %v1173_v3, %v1172_v2  ;;  %v3167_v43 = vshrl.u32 %v2909_v34, 16  ;;  %v3145_v46 = vshrl.u32 %v2906_v35, 16  ;;  %v9421_v50 = vld [vmem:[%s11401_s3] ss:$0 sm:$0xff]  ;;  %v9425_v55 = vrot.slane %v3057_v38, 11  ;;  %v9168_v5 = vld [vmem:[%s11402_s4 + $0x110] sm:$0xff]  }
  0x28   : > { %8364 = vmatprep.subr.bf16.mxu0 %v9078_v8  ;;  %8805 = vmatpush3.bf16.msra.mxu1 %v9111_v42  ;;  %v1111_v37 = vld [vmem:[#allocation2 + $0x2c] sm:$0x8]  ;;  %v3101_v42 = vshrl.u32 %v2900_v33, 16  ;;  %v9427_v56 = vrot.slane %v3079_v39, 11  ;;  %v1126_v34 = vld [vmem:[#allocation2 + $0x90] sm:$0x8] }
  0x29   : > { %8558 = vmatprep.subr.bf16.mxu1 %v9360_v47  ;;  %v2915_v41 = vld [vmem:[#allocation2 + $0x11c] sm:$0x8]  ;;  %v2912_v44 = vld [vmem:[#allocation2 + $0x108] sm:$0x8]  ;;  %v1200_v49 = vshrl.u32 %v1111_v37, 16  ;;  %v9434_v63 = vrot.slane %v3167_v43, 11 }
  0x2a   : > { %v2918_v48 = vld [vmem:[#allocation2 + $0x130] sm:$0x8]  ;;  %v3211_v51 = vshrl.u32 %v2915_v41, 16  ;;  %v3189_v59 = vshrl.u32 %v2912_v44, 16  ;;  %v9432_v62 = vrot.slane %v3101_v42, 11  ;;  %v9437_v3 = vrot.slane %v3145_v46, 11 }
  0x2b   : > { %8365 = vmatpush3.bf16.msra.mxu0 %v9078_v8  ;;  %v894_v8 = vld [vmem:[#allocation2 + $0x144] sm:$0x8]  ;;  %v3233_v0 = vshrl.u32 %v2918_v48, 16  ;;  %v1132_v39 = vld [vmem:[#allocation2 + $0xb8] sm:$0x8] }
  0x2c   : > { %8398 = vmatprep.subr.bf16.mxu0 %v9095_v24  ;;  %v1129_v35 = vld [vmem:[#allocation2 + $0xa4] sm:$0x8] }
  0x2e   : > { %8367 = vmatmul.mubr.bf16.vlgmr.msra.gmra.mrb[0].mxu0 %v9080_v9  ;;  %v855_v9 = vld [vmem:[#allocation2 + $0x40] sm:$0x8] }
  0x2f   : > { %8370 = vmatprep.mubr.bf16.mxu0 %v9081_v10  ;;  %8399 = vmatpush3.bf16.msra.mxu0 %v9095_v24  ;;  %v11477_v10 = vmov 0  ;;  %v864_v24 = vld [vmem:[#allocation2 + $0x7c] sm:$0x8] }
  0x30   : > { %8400 = vmatprep.subr.bf16.mxu0 %v9096_v25  ;;  %v11478_v10 = vsel %vm9391_vm9, 4294967295, %v11477_v10 }
  0x31   : > { %11479 = vst [vmem:[#allocation4_spill] sm:$0xff] %v11478_v10 }
  0x33   : > { %8401 = vmatpush3.bf16.msra.mxu0 %v9096_v25  ;;  %v861_v25 = vld [vmem:[#allocation2 + $0x68] sm:$0x8] }
  0x34   : > { %8402 = vmatprep.subr.bf16.mxu0 %v9097_v27  ;;  %v862_v26 = vsel %vm9331_vm4, 0, %v861_v25 }
  0x35   : > { %863 = vst [vmem:[#allocation2 + $0x68] sm:$0x8] %v862_v26 }
  0x36   : > { %8371 = vmatmul.mubr.bf16.gmra.mrb[4].mxu0 %v9082_v11  ;;  %v1105_v11 = vld [vmem:[#allocation2 + $0x4] sm:$0x8] }
  0x37   : > { %8374 = vmatprep.mubr.bf16.mxu0 %v9083_v12  ;;  %8403 = vmatpush3.bf16.msra.mxu0 %v9097_v27  ;;  %v1176_v12 = vsel %vm9387_vm8, %v1168_v6, %v1175_v7  ;;  %v865_v27 = vsel %vm9331_vm4, 0, %v864_v24  ;;  %v9439_v6 = vrot.slane %v1200_v49, 11 }
  0x38   : > { %8404 = vmatprep.subr.bf16.mxu0 %v9098_v28  ;;  %866 = vst [vmem:[#allocation2 + $0x7c] sm:$0x8] %v865_v27 }
  0x3b   : > { %8405 = vmatpush3.bf16.msra.mxu0 %v9098_v28  ;;  %v1108_v28 = vld [vmem:[#allocation2 + $0x18] sm:$0x8] }
  0x3c   : > { %8438 = vmatprep.subr.bf16.mxu0 %v9376_v58  ;;  %v1178_v36 = vshrl.u32 %v1108_v28, 16 }
  0x3e   : > { %8375 = vmatmul.mubr.bf16.gmra.mrb[8].mxu0 %v9084_v13  ;;  %v895_v13 = vsel %vm9331_vm4, 0, %v894_v8  ;;  %v9423_v52 = vrot.slane %v1178_v36, 11 }
  0x3f   : > { %8378 = vmatprep.mubr.bf16.mxu0 %v9085_v14  ;;  %v856_v14 = vsel %vm9331_vm4, 0, %v855_v9  ;;  %896 = vst [vmem:[#allocation2 + $0x144] sm:$0x8] %v895_v13  ;;  %v1123_v29 = vld [vmem:[#allocation2 + $0x7c] sm:$0x8] }
  0x40   : > { %857 = vst [vmem:[#allocation2 + $0x40] sm:$0x8] %v856_v14  ;;  %v900_v14 = vld [vmem:[#allocation2 + $0x38] sm:$0x1]  ;;  %v1288_v46 = vshrl.u32 %v1123_v29, 16 }
  0x46   : > { %8379 = vmatmul.mubr.bf16.gmra.mrb[12].mxu0 %v9086_v15  ;;  %v897_v15 = vld [vmem:[#allocation2 + $0x24] sm:$0x1]  ;;  %v2921_v53 = vld [vmem:[#allocation2 + $0x144] sm:$0x8] }
  0x47   : > { %8382 = vmatprep.mubr.bf16.mxu0 %v9087_v16  ;;  %v1156_v16 = vshrl.u32 %v1105_v11, 16  ;;  %v1114_v7 = vld [vmem:[#allocation2 + $0x40] sm:$0x8] }
  0x48   : > { %v1222_v24 = vshrl.u32 %v1114_v7, 16 }
  0x4a   : > { %v9459_v44 = vrot.slane %v1222_v24, 11 }
  0x4e   : > { %8383 = vmatmul.mubr.bf16.gmra.mrb[16].mxu0 %v9088_v17  ;;  %v1166_v17 = vor.u32 %v1164_v4, %v1163_v1  ;;  %v3255_v4 = vshrl.u32 %v2921_v53, 16  ;;  %v1310_v53 = vshrl.u32 %v1126_v34, 16 }
  0x4f   : > { %8386 = vmatprep.mubr.bf16.mxu0 %v9089_v18  ;;  %v898_v18 = vsel %vm9391_vm9, 0, %v897_v15 }
  0x50   : > { %899 = vst [vmem:[#allocation2 + $0x24] sm:$0x1] %v898_v18  ;;  %v1120_v18 = vld [vmem:[#allocation2 + $0x68] sm:$0x8]  ;;  %v9455_v27 = vrot.slane %v3255_v4, 11 }
  0x51   : > { %v1266_v33 = vshrl.u32 %v1120_v18, 16 }
  0x56   : > { %8387 = vmatmul.mubr.bf16.gmra.mrb[20].mxu0 %v9090_v19  ;;  %v858_v19 = vld [vmem:[#allocation2 + $0x54] sm:$0x8] }
  0x57   : > { %8390 = vmatprep.mubr.bf16.mxu0 %v9091_v20  ;;  %v7392_v20 = vrot.slane %v1156_v16, 11 }
  0x5e   : > { %8391 = vmatmul.mubr.bf16.gmra.mrb[24].mxu0 %v9092_v21  ;;  %v859_v21 = vsel %vm9331_vm4, 0, %v858_v19  ;;  %v901_v19 = vsel %vm9391_vm9, 0, %v900_v14  ;;  %v9474_v14 = vrot.slane %v1288_v46, 11 }
  0x5f   : > { %8394 = vmatprep.mubr.bf16.mxu0 %v9093_v22  ;;  %860 = vst [vmem:[#allocation2 + $0x54] sm:$0x8] %v859_v21  ;;  %v1167_v22 = vsel %vm9387_vm8, %v7392_v20, %v1166_v17  ;;  %v9447_v17 = vrot.slane %v3189_v59, 11  ;;  %902 = vst [vmem:[#allocation2 + $0x38] sm:$0x1] %v901_v19 }
  0x60   : > { %11480 = vst [vmem:[#allocation5_spill] sm:$0xff] %v9474_v14 }
  0x66   : > { %8395 = vmatmul.mubr.bf16.gmra.mrb[28].mxu0 %v9094_v23  ;;  %v9407_v23 = vcombine.low %v1167_v22, %v1176_v12  ;;  %v9443_v12 = vrot.slane %v3211_v51, 11  ;;  %v1117_v13 = vld [vmem:[#allocation2 + $0x54] sm:$0x8]  ;;  %v9452_v22 = vrot.slane %v3233_v0, 11  ;;  %v1354_v0 = vshrl.u32 %v1132_v39, 16 }
  0x67   : > { %8406 = vmatprep.mubr.msk.bf16.mxu0 %vm1628_vm1, %v7416_v31  ;;  %v2903_v31 = vld [vmem:[#allocation2 + $0xcc] sm:$0x8]  ;;  %v1244_v28 = vshrl.u32 %v1117_v13, 16 }
  0x68   : > { %v3123_v40 = vshrl.u32 %v2903_v31, 16 }
  0x69   : > { %v9469_v7 = vrot.slane %v1244_v28, 11 }
  0x6a   : > { %v9429_v57 = vrot.slane %v3123_v40, 11  ;;  %v1135_v40 = vld [vmem:[#allocation2 + $0xcc] sm:$0x8] }
 0x101   : > { %v8368_v54 = vpop.f32.mrb[0].mxu0 }
 0x102   : > { %v723_v60 = vmul.f32 %v8368_v54, %v9416_v45  ;;  %v587_v61 = vpop.f32.mrb[1].mxu0  ;;  %v1332_v54 = vshrl.u32 %v1129_v35, 16 }
 0x103   : > { %v721_v1 = vmul.f32 %v9416_v45, %v587_v61  ;;  %v8369_v2 = vpop.f32.mrb[2].mxu0 }
 0x104   : > { %v762_v8 = vadd.f32 %v9421_v50, %v723_v60  ;;  %v724_v9 = vmul.f32 %v8369_v2, %v9416_v45  ;;  %v590_v11 = vpop.f32.mrb[3].mxu0 }
 0x105   : > { %v760_v15 = vadd.f32 %v9421_v50, %v721_v1  ;;  %v722_v16 = vmul.f32 %v9416_v45, %v590_v11  ;;  %v1376_v1 = vshrl.u32 %v1135_v40, 16 }
 0x106   : > { %v794_v20 = vmax.f32 %v762_v8, 0.0  ;;  %v763_v21 = vadd.f32 %v9421_v50, %v724_v9  ;;  %v9471_v8 = vrot.slane %v1266_v33, 11  ;;  %v1138_v9 = vld [vmem:[#allocation2 + $0xe0] sm:$0x8] }
 0x107   : > { %v792_v25 = vmax.f32 %v760_v15, 0.0  ;;  %v761_v26 = vadd.f32 %v9421_v50, %v722_v16  ;;  %v1398_v15 = vshrl.u32 %v1138_v9, 16  ;;  %v9476_v16 = vld [vmem:[#allocation2 + $0x24] sm:$0x1]  ;;  %v9485_v28 = vrot.slane %v1376_v1, 11 }
 0x108   : > { %v7890_v30 = vpack.c.bf16 %v794_v20, %v794_v20  ;;  %v795_v31 = vmax.f32 %v763_v21, 0.0  ;;  %11481 = vst [vmem:[#allocation6_spill] sm:$0xff] %v9476_v16  ;;  %v9479_v20 = vrot.slane %v1310_v53, 11  ;;  %v9481_v21 = vrot.slane %v1332_v54, 11 }
 0x109   : > { %v7888_v36 = vpack.c.bf16 %v792_v25, %v792_v25  ;;  %v793_v37 = vmax.f32 %v761_v26, 0.0  ;;  %v8372_v38 = vpop.f32.mrb[4].mxu0  ;;  %v9483_v26 = vrot.slane %v1354_v0, 11  ;;  %11485 = vst [vmem:[#allocation10_spill] sm:$0xff] %v9485_v28  ;;  %v9489_v34 = vrot.slane %v1398_v15, 11 }
 0x10a   : > { %1075 = vst.msk [vmem:[#allocation2 + $0x30] sm:$0xf] %vm830_vm0, %v7890_v30  ;;  %v7891_v41 = vpack.c.bf16 %v795_v31, %v795_v31  ;;  %v727_v42 = vmul.f32 %v8372_v38, %v9416_v45  ;;  %v603_v43 = vpop.f32.mrb[5].mxu0  ;;  %11482 = vst [vmem:[#allocation7_spill] sm:$0xff] %v9479_v20 }
 0x10b   : > { %1073 = vst.msk [vmem:[#allocation2 + $0x1c] sm:$0xf] %vm830_vm0, %v7888_v36  ;;  %v7889_v48 = vpack.c.bf16 %v793_v37, %v793_v37  ;;  %v725_v49 = vmul.f32 %v9416_v45, %v603_v43  ;;  %v8373_v51 = vpop.f32.mrb[6].mxu0  ;;  %11483 = vst [vmem:[#allocation8_spill] sm:$0xff] %v9481_v21 }
 0x10c   : > { %1076 = vst.msk [vmem:[#allocation2 + $0x34] sm:$0xf] %vm830_vm0, %v7891_v41  ;;  %v766_v59 = vadd.f32 %v9421_v50, %v727_v42  ;;  %v728_v60 = vmul.f32 %v8373_v51, %v9416_v45  ;;  %v606_v61 = vpop.f32.mrb[7].mxu0  ;;  %11484 = vst [vmem:[#allocation9_spill] sm:$0xff] %v9483_v26 }
 0x10d   : > { %1074 = vst.msk [vmem:[#allocation2 + $0x20] sm:$0xf] %vm830_vm0, %v7889_v48  ;;  %v764_v2 = vadd.f32 %v9421_v50, %v725_v49  ;;  %v726_v4 = vmul.f32 %v9416_v45, %v606_v61  ;;  %11486 = vst [vmem:[#allocation11_spill] sm:$0xff] %v9489_v34 }
 0x10e   : > { %v798_v11 = vmax.f32 %v766_v59, 0.0  ;;  %v767_v13 = vadd.f32 %v9421_v50, %v728_v60 }
 0x10f   : > { %v796_v18 = vmax.f32 %v764_v2, 0.0  ;;  %v765_v19 = vadd.f32 %v9421_v50, %v726_v4 }
 0x110   : > { %v7894_v24 = vpack.c.bf16 %v798_v11, %v798_v11  ;;  %v799_v25 = vmax.f32 %v767_v13, 0.0 }
 0x111   : > { %v7892_v29 = vpack.c.bf16 %v796_v18, %v796_v18  ;;  %v797_v30 = vmax.f32 %v765_v19, 0.0  ;;  %v8376_v31 = vpop.f32.mrb[8].mxu0  ;;  %v9487_v33 = vld [vmem:[#allocation2 + $0x30] sm:$0xf]  ;;  %v9122_v19 = vld [vmem:[%s11402_s4 + $0x8] sm:$0xff]  }
 0x112   : > { %1079 = vst.msk [vmem:[#allocation2 + $0x58] sm:$0xf] %vm830_vm0, %v7894_v24  ;;  %v7895_v36 = vpack.c.bf16 %v799_v25, %v799_v25  ;;  %v731_v37 = vmul.f32 %v8376_v31, %v9416_v45  ;;  %v619_v38 = vpop.f32.mrb[9].mxu0  ;;  %v1109_v39 = vld [vmem:[#allocation2 + $0x1c] sm:$0xf]  ;;  %v1205_v40 = vshrl.u32 %v9487_v33, 16 }
 0x113   : > { %1077 = vst.msk [vmem:[#allocation2 + $0x44] sm:$0xf] %vm830_vm0, %v7892_v29  ;;  %v7893_v42 = vpack.c.bf16 %v797_v30, %v797_v30  ;;  %v729_v43 = vmul.f32 %v9416_v45, %v619_v38  ;;  %v8377_v46 = vpop.f32.mrb[10].mxu0  ;;  %v1183_v48 = vshrl.u32 %v1109_v39, 16  ;;  %v1186_v49 = vshll.u32 %v1109_v39, 16 }
 0x114   : > { %v9498_v51 = vld [vmem:[#allocation2 + $0x34] sm:$0xf]  ;;  %1080 = vst.msk [vmem:[#allocation2 + $0x5c] sm:$0xf] %vm830_vm0, %v7895_v36  ;;  %v770_v53 = vadd.f32 %v9421_v50, %v731_v37  ;;  %v732_v54 = vmul.f32 %v8377_v46, %v9416_v45  ;;  %v622_v59 = vpop.f32.mrb[11].mxu0  ;;  %v9505_v61 = vrot.slane %v1205_v40, 7 }
 0x115   : > { %v9503_v60 = vld [vmem:[#allocation2 + $0x20] sm:$0xf]  ;;  %v1214_v0 = vshrl.u32 %v9498_v51, 16  ;;  %1078 = vst.msk [vmem:[#allocation2 + $0x48] sm:$0xf] %vm830_vm0, %v7893_v42  ;;  %v768_v1 = vadd.f32 %v9421_v50, %v729_v43  ;;  %v730_v2 = vmul.f32 %v9416_v45, %v622_v59  ;;  %v9511_v4 = vrot.slane %v1183_v48, 7 }
 0x116   : > { %v1192_v9 = vshrl.u32 %v9503_v60, 16  ;;  %v802_v11 = vmax.f32 %v770_v53, 0.0  ;;  %v771_v13 = vadd.f32 %v9421_v50, %v732_v54  ;;  %v7417_v18 = vcombine.low %v1109_v39, %v9503_v60 }
 0x117   : > { %v800_v24 = vmax.f32 %v768_v1, 0.0  ;;  %v769_v25 = vadd.f32 %v9421_v50, %v730_v2  ;;  %v9523_v30 = vrot.slane %v1214_v0, 7  ;;  %v7418_v38 = vcombine.low %v9487_v33, %v9498_v51 }
 0x118   : > { %v9521_v29 = vrot.slane %v1192_v9, 7  ;;  %v7898_v31 = vpack.c.bf16 %v802_v11, %v802_v11  ;;  %v803_v36 = vmax.f32 %v771_v13, 0.0  ;;  %8407 = vmatmul.mubr.msk.bf16.vlgmr.msra.gmra.mrb[32].mxu0 %vm1628_vm1, %v7417_v18  ;;  %v9533_v46 = vor.u32 %v1186_v49, %v9511_v4 }
 0x119   : > { %v7896_v39 = vpack.c.bf16 %v800_v24, %v800_v24  ;;  %v801_v40 = vmax.f32 %v769_v25, 0.0  ;;  %v8380_v42 = vpop.f32.mrb[12].mxu0  ;;  %v9529_v43 = vld [vmem:[#allocation2 + $0x58] sm:$0xf]  ;;  %8439 = vmatpush3.bf16.msra.mxu0 %v9376_v58  ;;  %8410 = vmatprep.mubr.msk.bf16.mxu0 %vm1628_vm1, %v7418_v38  ;;  %v9124_v58 = vld [vmem:[%s11402_s4 + $0x10] sm:$0xff]  }
 0x11a   : > { %1083 = vst.msk [vmem:[#allocation2 + $0x80] sm:$0xf] %vm830_vm0, %v7898_v31  ;;  %v7899_v53 = vpack.c.bf16 %v803_v36, %v803_v36  ;;  %v735_v54 = vmul.f32 %v8380_v42, %v9416_v45  ;;  %v635_v59 = vpop.f32.mrb[13].mxu0  ;;  %v9539_v0 = vld [vmem:[#allocation2 + $0x44] sm:$0xf]  ;;  %v1249_v1 = vshrl.u32 %v9529_v43, 16  ;;  %8440 = vmatprep.subr.bf16.mxu0 %v9122_v19 }
 0x11b   : > { %1081 = vst.msk [vmem:[#allocation2 + $0x6c] sm:$0xf] %vm830_vm0, %v7896_v39  ;;  %v7897_v49 = vpack.c.bf16 %v801_v40, %v801_v40  ;;  %v733_v9 = vmul.f32 %v9416_v45, %v635_v59  ;;  %v8381_v11 = vpop.f32.mrb[14].mxu0  ;;  %v1227_v13 = vshrl.u32 %v9539_v0, 16  ;;  %v9550_v24 = vld [vmem:[#allocation2 + $0x5c] sm:$0xf] }
 0x11c   : > { %1084 = vst.msk [vmem:[#allocation2 + $0x84] sm:$0xf] %vm830_vm0, %v7899_v53  ;;  %v774_v25 = vadd.f32 %v9421_v50, %v735_v54  ;;  %v736_v31 = vmul.f32 %v8381_v11, %v9416_v45  ;;  %v638_v36 = vpop.f32.mrb[15].mxu0  ;;  %v9555_v38 = vld [vmem:[#allocation2 + $0x48] sm:$0xf]  ;;  %v9557_v39 = vrot.slane %v1249_v1, 7  ;;  %v7420_v2 = vcombine.low %v9529_v43, %v9550_v24 }
 0x11d   : > { %v1258_v40 = vshrl.u32 %v9550_v24, 16  ;;  %1082 = vst.msk [vmem:[#allocation2 + $0x70] sm:$0xf] %vm830_vm0, %v7897_v49  ;;  %v772_v42 = vadd.f32 %v9421_v50, %v733_v9  ;;  %v734_v59 = vmul.f32 %v9416_v45, %v638_v36  ;;  %v9563_v35 = vrot.slane %v1227_v13, 7  ;;  %8441 = vmatpush3.bf16.msra.mxu0 %v9122_v19  ;;  %v9125_v49 = vld [vmem:[%s11402_s4 + $0x18] sm:$0xff]  }
 0x11e   : > { %v1236_v53 = vshrl.u32 %v9555_v38, 16  ;;  %v806_v54 = vmax.f32 %v774_v25, 0.0  ;;  %v775_v11 = vadd.f32 %v9421_v50, %v736_v31  ;;  %v7419_v1 = vcombine.low %v9539_v0, %v9555_v38  ;;  %8442 = vmatprep.subr.bf16.mxu0 %v9124_v58 }
 0x11f   : > { %v804_v9 = vmax.f32 %v772_v42, 0.0  ;;  %v773_v13 = vadd.f32 %v9421_v50, %v734_v59  ;;  %v9576_v18 = vrot.slane %v1258_v40, 7  ;;  %v11487_v42 = vshll.u32 %v9503_v60, 16  ;;  %v9601_v60 = vld [vmem:[%s11402_s4 + $0x40] sm:$0xff]  }
 0x120   : > { %v9574_v36 = vrot.slane %v1236_v53, 7  ;;  %v7902_v19 = vpack.c.bf16 %v806_v54, %v806_v54  ;;  %v807_v25 = vmax.f32 %v775_v11, 0.0  ;;  %8411 = vmatmul.mubr.msk.bf16.gmra.mrb[36].mxu0 %vm1628_vm1, %v7419_v1 }
 0x121   : > { %v7900_v37 = vpack.c.bf16 %v804_v9, %v804_v9  ;;  %v805_v41 = vmax.f32 %v773_v13, 0.0  ;;  %v8384_v48 = vpop.f32.mrb[16].mxu0  ;;  %v9582_v15 = vld [vmem:[#allocation2 + $0x80] sm:$0xf]  ;;  %8443 = vmatpush3.bf16.msra.mxu0 %v9124_v58  ;;  %v1197_v59 = vor.u32 %v11487_v42, %v9521_v29  ;;  %8414 = vmatprep.mubr.msk.bf16.mxu0 %vm1628_vm1, %v7420_v2 }
 0x122   : > { %1087 = vst.msk [vmem:[#allocation2 + $0xa8] sm:$0xf] %vm830_vm0, %v7902_v19  ;;  %v7903_v53 = vpack.c.bf16 %v807_v25, %v807_v25  ;;  %v739_v54 = vmul.f32 %v8384_v48, %v9416_v45  ;;  %v651_v11 = vpop.f32.mrb[17].mxu0  ;;  %v9594_v1 = vld [vmem:[#allocation2 + $0x6c] sm:$0xf]  ;;  %v1293_v58 = vshrl.u32 %v9582_v15, 16  ;;  %8444 = vmatprep.subr.bf16.mxu0 %v9125_v49 }
 0x123   : > { %1085 = vst.msk [vmem:[#allocation2 + $0x94] sm:$0xf] %vm830_vm0, %v7900_v37  ;;  %v7901_v29 = vpack.c.bf16 %v805_v41, %v805_v41  ;;  %v737_v2 = vmul.f32 %v9416_v45, %v651_v11  ;;  %v8385_v13 = vpop.f32.mrb[18].mxu0  ;;  %v1271_v48 = vshrl.u32 %v9594_v1, 16  ;;  %v9607_v25 = vld [vmem:[#allocation2 + $0x84] sm:$0xf] }
 0x124   : > { %11488 = vst [vmem:[#allocation12_spill] sm:$0xff] %v9607_v25  ;;  %1088 = vst.msk [vmem:[#allocation2 + $0xac] sm:$0xf] %vm830_vm0, %v7903_v53  ;;  %v778_v42 = vadd.f32 %v9421_v50, %v739_v54  ;;  %v740_v9 = vmul.f32 %v8385_v13, %v9416_v45  ;;  %v654_v31 = vpop.f32.mrb[19].mxu0  ;;  %v9612_v40 = vld [vmem:[#allocation2 + $0x70] sm:$0xf] }
 0x125   : > { %v9614_v37 = vrot.slane %v1293_v58, 7  ;;  %v1302_v41 = vshrl.u32 %v9607_v25, 16  ;;  %1086 = vst.msk [vmem:[#allocation2 + $0x98] sm:$0xf] %vm830_vm0, %v7901_v29  ;;  %v776_v11 = vadd.f32 %v9421_v50, %v737_v2  ;;  %v738_v19 = vmul.f32 %v9416_v45, %v654_v31  ;;  %8445 = vmatpush3.bf16.msra.mxu0 %v9125_v49 }
 0x126   : > { %v9620_v32 = vrot.slane %v1271_v48, 7  ;;  %v1280_v53 = vshrl.u32 %v9612_v40, 16  ;;  %v810_v54 = vmax.f32 %v778_v42, 0.0  ;;  %v779_v13 = vadd.f32 %v9421_v50, %v740_v9  ;;  %8478 = vmatprep.subr.bf16.mxu0 %v9601_v60 }
 0x127   : > { %v7421_v58 = vcombine.low %v9594_v1, %v9612_v40  ;;  %v808_v29 = vmax.f32 %v776_v11, 0.0  ;;  %v777_v2 = vadd.f32 %v9421_v50, %v738_v19  ;;  %v9631_v31 = vrot.slane %v1302_v41, 7 }
 0x128   : > { %v9629_v10 = vrot.slane %v1280_v53, 7  ;;  %v7906_v48 = vpack.c.bf16 %v810_v54, %v810_v54  ;;  %v811_v34 = vmax.f32 %v779_v13, 0.0  ;;  %v7422_v9 = vcombine.low %v9582_v15, %v9607_v25 }
 0x129   : > { %11489 = vst [vmem:[#allocation13_spill] sm:$0xff] %v9631_v31  ;;  %8415 = vmatmul.mubr.msk.bf16.gmra.mrb[40].mxu0 %vm1628_vm1, %v7421_v58  ;;  %v7904_v42 = vpack.c.bf16 %v808_v29, %v808_v29  ;;  %v809_v16 = vmax.f32 %v777_v2, 0.0  ;;  %v8388_v28 = vpop.f32.mrb[20].mxu0  ;;  %v9637_v26 = vld [vmem:[#allocation2 + $0xa8] sm:$0xf]  ;;  %v11491_v19 = vrot.slane %v9511_v4, 4 }
 0x12a   : > { %11490 = vst [vmem:[#allocation14_spill] sm:$0xff] %v9637_v26  ;;  %v11492_v11 = vshll.u32 %v9487_v33, 16  ;;  %1091 = vst.msk [vmem:[#allocation2 + $0xd0] sm:$0xf] %vm830_vm0, %v7906_v48  ;;  %v7907_v54 = vpack.c.bf16 %v811_v34, %v811_v34  ;;  %8418 = vmatprep.mubr.msk.bf16.mxu0 %vm1628_vm1, %v7422_v9  ;;  %v743_v13 = vmul.f32 %v8388_v28, %v9416_v45  ;;  %v667_v58 = vpop.f32.mrb[21].mxu0  ;;  %v1337_v4 = vshrl.u32 %v9637_v26, 16 }
 0x12b   : > { %v9643_v41 = vsel %vm9387_vm8, %v11491_v19, %v1197_v59  ;;  %v9653_v29 = vld [vmem:[#allocation2 + $0x94] sm:$0xf]  ;;  %1089 = vst.msk [vmem:[#allocation2 + $0xbc] sm:$0xf] %vm830_vm0, %v7904_v42  ;;  %v7905_v2 = vpack.c.bf16 %v809_v16, %v809_v16  ;;  %v741_v33 = vmul.f32 %v9416_v45, %v667_v58  ;;  %v8389_v19 = vpop.f32.mrb[22].mxu0 }
 0x12c   : > { %v9648_v53 = vor.u32 %v11492_v11, %v9505_v61  ;;  %11493 = vst [vmem:[#allocation15_spill] sm:$0xff] %v9653_v29  ;;  %v1315_v48 = vshrl.u32 %v9653_v29, 16  ;;  %v9661_v9 = vld [vmem:[#allocation2 + $0xac] sm:$0xf]  ;;  %1092 = vst.msk [vmem:[#allocation2 + $0xd4] sm:$0xf] %vm830_vm0, %v7907_v54  ;;  %v782_v28 = vadd.f32 %v9421_v50, %v743_v13  ;;  %v744_v11 = vmul.f32 %v8389_v19, %v9416_v45 }
 0x12d   : > { %11494 = vst [vmem:[#allocation16_spill] sm:$0xff] %v9661_v9  ;;  %v670_v49 = vpop.f32.mrb[23].mxu0  ;;  %v9666_v59 = vld [vmem:[#allocation2 + $0x98] sm:$0xf]  ;;  %v9668_v42 = vrot.slane %v1337_v4, 7  ;;  %v1346_v16 = vshrl.u32 %v9661_v9, 16  ;;  %v780_v58 = vadd.f32 %v9421_v50, %v741_v33  ;;  %v7424_v20 = vcombine.low %v9637_v26, %v9661_v9 }
 0x12e   : > { %11495 = vst [vmem:[#allocation17_spill] sm:$0xff] %v9666_v59  ;;  %1090 = vst.msk [vmem:[#allocation2 + $0xc0] sm:$0xf] %vm830_vm0, %v7905_v2  ;;  %v742_v34 = vmul.f32 %v9416_v45, %v670_v49  ;;  %v9674_v21 = vrot.slane %v1315_v48, 7  ;;  %v1324_v54 = vshrl.u32 %v9666_v59, 16  ;;  %v814_v13 = vmax.f32 %v782_v28, 0.0 }
 0x12f   : > { %11496 = vst [vmem:[#allocation18_spill] sm:$0xff] %v9668_v42  ;;  %v783_v19 = vadd.f32 %v9421_v50, %v744_v11  ;;  %v7423_v4 = vcombine.low %v9653_v29, %v9666_v59  ;;  %v9681_v42 = vld [vmem:[#allocation2 + $0x94] sm:$0xf]  ;;  %v812_v14 = vmax.f32 %v780_v58, 0.0  ;;  %v9686_v49 = vrot.slane %v1346_v16, 7 }
 0x130   : > { %11497 = vst [vmem:[#allocation19_spill] sm:$0xff] %v9674_v21  ;;  %11498 = vst [vmem:[#allocation20_spill] sm:$0xff] %v9681_v42  ;;  %v781_v2 = vadd.f32 %v9421_v50, %v742_v34  ;;  %v9684_v33 = vrot.slane %v1324_v54, 7  ;;  %v9688_v48 = vld [vmem:[#allocation2 + $0x98] sm:$0xf]  ;;  %v7910_v21 = vpack.c.bf16 %v814_v13, %v814_v13  ;;  %v3062_v34 = vshrl.u32 %v9681_v42, 16 }
 0x131   : > { %11500 = vst [vmem:[#allocation22_spill] sm:$0xff] %v9686_v49  ;;  %11501 = vst [vmem:[#allocation23_spill] sm:$0xff] %v9688_v48  ;;  %v815_v28 = vmax.f32 %v783_v19, 0.0  ;;  %8419 = vmatmul.mubr.msk.bf16.gmra.mrb[44].mxu0 %vm1628_vm1, %v7423_v4  ;;  %v7908_v59 = vpack.c.bf16 %v812_v14, %v812_v14  ;;  %v8392_v58 = vpop.f32.mrb[24].mxu0  ;;  %v3065_v54 = vshll.u32 %v9681_v42, 16  ;;  %v3071_v4 = vshrl.u32 %v9688_v48, 16 }
 0x132   : > { %11499 = vst [vmem:[#allocation21_spill] sm:$0xff] %v9684_v33  ;;  %v813_v29 = vmax.f32 %v781_v2, 0.0  ;;  %1095 = vst.msk [vmem:[#allocation2 + $0xf8] sm:$0xf] %vm830_vm0, %v7910_v21  ;;  %8422 = vmatprep.mubr.msk.bf16.mxu0 %vm1628_vm1, %v7424_v20  ;;  %v747_v13 = vmul.f32 %v8392_v58, %v9416_v45  ;;  %v683_v19 = vpop.f32.mrb[25].mxu0  ;;  %v3074_v11 = vshll.u32 %v9688_v48, 16 }
 0x133   : > { %v7911_v16 = vpack.c.bf16 %v815_v28, %v815_v28  ;;  %v9701_v9 = vld [vmem:[#allocation2 + $0xbc] sm:$0xf]  ;;  %1093 = vst.msk [vmem:[#allocation2 + $0xe4] sm:$0xf] %vm830_vm0, %v7908_v59  ;;  %v745_v2 = vmul.f32 %v9416_v45, %v683_v19  ;;  %v8393_v42 = vpop.f32.mrb[26].mxu0  ;;  %v3064_v49 = vrot.slane %v3062_v34, 7 }
 0x134   : > { %11502 = vst [vmem:[#allocation24_spill] sm:$0xff] %v9701_v9  ;;  %v7909_v14 = vpack.c.bf16 %v813_v29, %v813_v29  ;;  %v1359_v21 = vshrl.u32 %v9701_v9, 16  ;;  %v786_v20 = vadd.f32 %v9421_v50, %v747_v13  ;;  %v748_v28 = vmul.f32 %v8393_v42, %v9416_v45  ;;  %v686_v58 = vpop.f32.mrb[27].mxu0 }
 0x135   : > { %1096 = vst.msk [vmem:[#allocation2 + $0xfc] sm:$0xf] %vm830_vm0, %v7911_v16  ;;  %v3073_v26 = vrot.slane %v3071_v4, 7  ;;  %v9709_v48 = vld [vmem:[#allocation2 + $0xc0] sm:$0xf]  ;;  %v784_v29 = vadd.f32 %v9421_v50, %v745_v2  ;;  %v746_v59 = vmul.f32 %v9416_v45, %v686_v58  ;;  %v3067_v34 = vor.u32 %v3065_v54, %v3064_v49 }
 0x136   : > { %11503 = vst [vmem:[#allocation25_spill] sm:$0xff] %v9709_v48  ;;  %1094 = vst.msk [vmem:[#allocation2 + $0xe8] sm:$0xf] %vm830_vm0, %v7909_v14  ;;  %v3069_v19 = vrot.slane %v3064_v49, 4  ;;  %v818_v25 = vmax.f32 %v786_v20, 0.0  ;;  %v787_v16 = vadd.f32 %v9421_v50, %v748_v28  ;;  %v9716_v31 = vrot.slane %v1359_v21, 7 }
 0x137   : > { %v3076_v13 = vor.u32 %v3074_v11, %v3073_v26  ;;  %v816_v42 = vmax.f32 %v784_v29, 0.0  ;;  %v785_v4 = vadd.f32 %v9421_v50, %v746_v59  ;;  %v3068_v33 = vsel %vm9387_vm8, %v9425_v55, %v3067_v34  ;;  %v9723_v2 = vld [vmem:[#allocation2 + $0xa8] sm:$0xf]  ;;  %v9728_v11 = vld [vmem:[#allocation2 + $0xac] sm:$0xf] }
 0x138   : > { %v1368_v14 = vshrl.u32 %v9709_v48, 16  ;;  %11504 = vst [vmem:[#allocation26_spill] sm:$0xff] %v9723_v2  ;;  %v7914_v58 = vpack.c.bf16 %v818_v25, %v818_v25  ;;  %v819_v54 = vmax.f32 %v787_v16, 0.0  ;;  %11505 = vst [vmem:[#allocation27_spill] sm:$0xff] %v9728_v11  ;;  %v9730_v21 = vld [vmem:[#allocation2 + $0xd0] sm:$0xf] }
 0x139   : > { %v3077_v49 = vsel %vm9387_vm8, %v3069_v19, %v3076_v13  ;;  %v7912_v20 = vpack.c.bf16 %v816_v42, %v816_v42  ;;  %v817_v28 = vmax.f32 %v785_v4, 0.0  ;;  %v9734_v55 = vld [vmem:[#allocation2 + $0xd4] sm:$0xf]  ;;  %v8396_v34 = vpop.f32.mrb[28].mxu0  ;;  %v7425_v19 = vcombine.low %v9701_v9, %v9709_v48 }
 0x13a   : > { %v7562_v29 = vcombine.low %v3068_v33, %v3077_v49  ;;  %v9732_v59 = vrot.slane %v1368_v14, 7  ;;  %11507 = vst [vmem:[#allocation29_spill] sm:$0xff] %v9734_v55  ;;  %1099 = vst.msk [vmem:[#allocation2 + $0x120] sm:$0xf] %vm830_vm0, %v7914_v58  ;;  %v7915_v25 = vpack.c.bf16 %v819_v54, %v819_v54  ;;  %v3084_v16 = vshrl.u32 %v9723_v2, 16  ;;  %v699_v26 = vpop.f32.mrb[29].mxu0 }
 0x13b   : > { %v3087_v13 = vshll.u32 %v9723_v2, 16  ;;  %1097 = vst.msk [vmem:[#allocation2 + $0x10c] sm:$0xf] %vm830_vm0, %v7912_v20  ;;  %v7913_v42 = vpack.c.bf16 %v817_v28, %v817_v28  ;;  %v3093_v33 = vshrl.u32 %v9728_v11, 16  ;;  %v3096_v4 = vshll.u32 %v9728_v11, 16  ;;  %v8397_v58 = vpop.f32.mrb[30].mxu0  ;;  %8423 = vmatmul.mubr.msk.bf16.gmra.mrb[48].mxu0 %vm1628_vm1, %v7425_v19 }
 0x13c   : > { %11506 = vst [vmem:[#allocation28_spill] sm:$0xff] %v9732_v59  ;;  %8538 = vmatprep.mubr.msk.bf16.mxu1 %vm1628_vm1, %v7562_v29  ;;  %v1381_v14 = vshrl.u32 %v9730_v21, 16  ;;  %1100 = vst.msk [vmem:[#allocation2 + $0x124] sm:$0xf] %vm830_vm0, %v7915_v25  ;;  %v3086_v54 = vrot.slane %v3084_v16, 7  ;;  %v1390_v2 = vshrl.u32 %v9734_v55, 16  ;;  %v7426_v11 = vcombine.low %v9730_v21, %v9734_v55 }
 0x13d   : > { %v702_v28 = vpop.f32.mrb[31].mxu0  ;;  %1098 = vst.msk [vmem:[#allocation2 + $0x110] sm:$0xf] %vm830_vm0, %v7913_v42  ;;  %v3095_v29 = vrot.slane %v3093_v33, 7  ;;  %v751_v25 = vmul.f32 %v8396_v34, %v9416_v45  ;;  %v9757_v59 = vld [vmem:[#allocation2 + $0xbc] sm:$0xf]  ;;  %v749_v9 = vmul.f32 %v9416_v45, %v699_v26  ;;  %v752_v33 = vmul.f32 %v8397_v58, %v9416_v45 }
 0x13e   : > { %v9752_v48 = vrot.slane %v1381_v14, 7  ;;  %11508 = vst [vmem:[#allocation30_spill] sm:$0xff] %v9757_v59  ;;  %v3089_v19 = vor.u32 %v3087_v13, %v3086_v54  ;;  %v3091_v16 = vrot.slane %v3086_v54, 4  ;;  %v9759_v49 = vrot.slane %v1390_v2, 7  ;;  %8426 = vmatprep.mubr.msk.bf16.mxu0 %vm1628_vm1, %v7426_v11  ;;  %v9766_v55 = vld [vmem:[#allocation2 + $0xc0] sm:$0xf] }
 0x13f   : > { %v3098_v20 = vor.u32 %v3096_v4, %v3095_v29  ;;  %v790_v42 = vadd.f32 %v9421_v50, %v751_v25  ;;  %v750_v14 = vmul.f32 %v9416_v45, %v702_v28  ;;  %v788_v2 = vadd.f32 %v9421_v50, %v749_v9  ;;  %v9117_v9 = vld [vmem:[%s11402_s4 + $0x88] sm:$0xff]  }
 0x140   : > { %11509 = vst [vmem:[#allocation31_spill] sm:$0xff] %v9759_v49  ;;  %v3090_v34 = vsel %vm9387_vm8, %v9427_v56, %v3089_v19  ;;  %v3106_v13 = vshrl.u32 %v9757_v59, 16  ;;  %v3109_v26 = vshll.u32 %v9757_v59, 16  ;;  %v791_v58 = vadd.f32 %v9421_v50, %v752_v33  ;;  %v9779_v56 = vld [vmem:[#allocation2 + $0xe4] sm:$0xf] }
 0x141   : > { %v3099_v11 = vsel %vm9387_vm8, %v3091_v16, %v3098_v20  ;;  %v822_v4 = vmax.f32 %v790_v42, 0.0  ;;  %v789_v45 = vadd.f32 %v9421_v50, %v750_v14  ;;  %v820_v28 = vmax.f32 %v788_v2, 0.0  ;;  %v9785_v16 = vld [vmem:[#allocation2 + $0xe8] sm:$0xf] }
 0x142   : > { %v7563_v54 = vcombine.low %v3090_v34, %v3099_v11  ;;  %v3108_v29 = vrot.slane %v3106_v13, 7  ;;  %v3115_v25 = vshrl.u32 %v9766_v55, 16  ;;  %v823_v59 = vmax.f32 %v791_v58, 0.0  ;;  %11510 = vst [vmem:[#allocation32_spill] sm:$0xff] %v9785_v16  ;;  %v9788_v34 = vld [vmem:[#allocation2 + $0xd0] sm:$0xf] }
 0x143   : > { %v7918_v19 = vpack.c.bf16 %v822_v4, %v822_v4  ;;  %v821_v49 = vmax.f32 %v789_v45, 0.0  ;;  %v3118_v20 = vshll.u32 %v9766_v55, 16  ;;  %v7916_v50 = vpack.c.bf16 %v820_v28, %v820_v28  ;;  %11511 = vst [vmem:[#allocation33_spill] sm:$0xff] %v9788_v34  ;;  %v9794_v58 = vld [vmem:[#allocation2 + $0xd4] sm:$0xf] }
 0x144   : > { %8539 = vmatmul.mubr.msk.bf16.vlgmr.msra.gmra.mrb[0].mxu1 %vm1628_vm1, %v7563_v54  ;;  %v3111_v42 = vor.u32 %v3109_v26, %v3108_v29  ;;  %v3113_v33 = vrot.slane %v3108_v29, 4  ;;  %v3117_v14 = vrot.slane %v3115_v25, 7  ;;  %v7919_v2 = vpack.c.bf16 %v823_v59, %v823_v59  ;;  %11512 = vst [vmem:[#allocation34_spill] sm:$0xff] %v9794_v58  ;;  %v9802_v28 = vld [vmem:[#allocation2 + $0xf8] sm:$0xf]  ;;  %v9121_v59 = vld [vmem:[%s11402_s4 + $0x90] sm:$0xff]  }
 0x145   : > { %8559 = vmatpush3.bf16.msra.mxu1 %v9360_v47  ;;  %1103 = vst.msk [vmem:[#allocation2 + $0x148] sm:$0xf] %vm830_vm0, %v7918_v19  ;;  %v7917_v13 = vpack.c.bf16 %v821_v49, %v821_v49  ;;  %v1403_v11 = vshrl.u32 %v9779_v56, 16  ;;  %1101 = vst.msk [vmem:[#allocation2 + $0x134] sm:$0xf] %vm830_vm0, %v7916_v50  ;;  %v1412_v54 = vshrl.u32 %v9785_v16, 16 }
 0x146   : > { %v3112_v26 = vsel %vm9387_vm8, %v9432_v62, %v3111_v42  ;;  %v3120_v45 = vor.u32 %v3118_v20, %v3117_v14  ;;  %11513 = vst [vmem:[#allocation35_spill] sm:$0xff] %v9802_v28  ;;  %8560 = vmatprep.subr.bf16.mxu1 %v9117_v9  ;;  %1104 = vst.msk [vmem:[#allocation2 + $0x14c] sm:$0xf] %vm830_vm0, %v7919_v2  ;;  %v7427_v62 = vcombine.low %v9779_v56, %v9785_v16  ;;  %v9815_v19 = vld [vmem:[#allocation2 + $0xfc] sm:$0xf] }
 0x147   : > { %1102 = vst.msk [vmem:[#allocation2 + $0x138] sm:$0xf] %vm830_vm0, %v7917_v13  ;;  %v9809_v49 = vrot.slane %v1403_v11, 7  ;;  %v3128_v29 = vshrl.u32 %v9788_v34, 16  ;;  %v3131_v25 = vshll.u32 %v9788_v34, 16  ;;  %11514 = vst [vmem:[#allocation36_spill] sm:$0xff] %v9815_v19 }
 0x148   : > { %v3121_v20 = vsel %vm9387_vm8, %v3113_v33, %v3120_v45  ;;  %v9819_v50 = vrot.slane %v1412_v54, 7  ;;  %v3137_v42 = vshrl.u32 %v9794_v58, 16  ;;  %v3140_v14 = vshll.u32 %v9794_v58, 16  ;;  %v9823_v2 = vld [vmem:[#allocation2 + $0xe4] sm:$0xf]  ;;  %8427 = vmatmul.mubr.msk.bf16.gmra.mrb[52].mxu0 %vm1628_vm1, %v7427_v62 }
 0x149   : > { %11515 = vst [vmem:[#allocation37_spill] sm:$0xff] %v9823_v2  ;;  %v7564_v13 = vcombine.low %v3112_v26, %v3121_v20  ;;  %v3130_v11 = vrot.slane %v3128_v29, 7  ;;  %v1425_v47 = vshrl.u32 %v9802_v28, 16  ;;  %8561 = vmatpush3.bf16.msra.mxu1 %v9117_v9  ;;  %v9828_v34 = vld [vmem:[#allocation2 + $0xe8] sm:$0xf]  ;;  %v1434_v45 = vshrl.u32 %v9815_v19, 16 }
 0x14a   : > { %11516 = vst [vmem:[#allocation38_spill] sm:$0xff] %v9828_v34  ;;  %v3139_v33 = vrot.slane %v3137_v42, 7  ;;  %v7428_v58 = vcombine.low %v9802_v28, %v9815_v19  ;;  %v9834_v16 = vld [vmem:[#allocation2 + $0x10c] sm:$0xf]  ;;  %8562 = vmatprep.subr.bf16.mxu1 %v9121_v59  ;;  %v9126_v26 = vld [vmem:[%s11402_s4 + $0x98] sm:$0xff]   ;;  %v3150_v20 = vshrl.u32 %v9823_v2, 16 }
 0x14b   : > { %11517 = vst [vmem:[#allocation39_spill] sm:$0xff] %v9834_v16  ;;  %8542 = vmatprep.mubr.msk.bf16.mxu1 %vm1628_vm1, %v7564_v13  ;;  %v3133_v9 = vor.u32 %v3131_v25, %v3130_v11  ;;  %v3135_v62 = vrot.slane %v3130_v11, 4  ;;  %v9840_v29 = vrot.slane %v1425_v47, 7  ;;  %v9843_v42 = vld [vmem:[#allocation2 + $0x110] sm:$0xf]  ;;  %v9845_v4 = vrot.slane %v1434_v45, 7 }
 0x14c   : > { %11519 = vst [vmem:[#allocation41_spill] sm:$0xff] %v9843_v42  ;;  %v3142_v54 = vor.u32 %v3140_v14, %v3139_v33  ;;  %8430 = vmatprep.mubr.msk.bf16.mxu0 %vm1628_vm1, %v7428_v58  ;;  %v3153_v19 = vshll.u32 %v9823_v2, 16  ;;  %v3159_v28 = vshrl.u32 %v9828_v34, 16  ;;  %v3152_v13 = vrot.slane %v3150_v20, 7  ;;  %v9861_v2 = vld [vmem:[#allocation2 + $0xfc] sm:$0xf] }
 0x14d   : > { %11518 = vst [vmem:[#allocation40_spill] sm:$0xff] %v9840_v29  ;;  %11520 = vst [vmem:[#allocation42_spill] sm:$0xff] %v9845_v4  ;;  %v3134_v25 = vsel %vm9387_vm8, %v9429_v57, %v3133_v9  ;;  %v3162_v47 = vshll.u32 %v9828_v34, 16  ;;  %v1447_v11 = vshrl.u32 %v9834_v16, 16  ;;  %v9855_v29 = vld [vmem:[#allocation2 + $0xf8] sm:$0xf]  ;;  %8563 = vmatpush3.bf16.msra.mxu1 %v9121_v59  ;;  %v7429_v33 = vcombine.low %v9834_v16, %v9843_v42 }
 0x14e   : > { %11521 = vst [vmem:[#allocation43_spill] sm:$0xff] %v9855_v29  ;;  %v3143_v14 = vsel %vm9387_vm8, %v3135_v62, %v3142_v54  ;;  %v3161_v58 = vrot.slane %v3159_v28, 7  ;;  %v1456_v45 = vshrl.u32 %v9843_v42, 16  ;;  %8564 = vmatprep.subr.bf16.mxu1 %v9126_v26  ;;  %v3155_v9 = vor.u32 %v3153_v19, %v3152_v13  ;;  %v9865_v4 = vld [vmem:[#allocation2 + $0x120] sm:$0xf] }
 0x14f   : > { %v7565_v57 = vcombine.low %v3134_v25, %v3143_v14  ;;  %v3157_v20 = vrot.slane %v3152_v13, 4  ;;  %v9863_v34 = vrot.slane %v1447_v11, 7  ;;  %11522 = vst [vmem:[#allocation44_spill] sm:$0xff] %v9865_v4  ;;  %v9870_v59 = vld [vmem:[%s11402_s4 + $0xa0] sm:$0xff]   ;;  %v3172_v13 = vshrl.u32 %v9855_v29, 16 }
 0x150   : > { %v3164_v28 = vor.u32 %v3162_v47, %v3161_v58  ;;  %v9872_v54 = vrot.slane %v1456_v45, 7  ;;  %v9877_v25 = vld [vmem:[#allocation2 + $0x124] sm:$0xf]  ;;  %v3156_v19 = vsel %vm9387_vm8, %v9437_v3, %v3155_v9  ;;  %v3175_v11 = vshll.u32 %v9855_v29, 16  ;;  %v9886_v14 = vld [vmem:[#allocation2 + $0x10c] sm:$0xf]  ;;  %8431 = vmatmul.mubr.msk.bf16.gmra.mrb[56].mxu0 %vm1628_vm1, %v7429_v33 }
 0x151   : > { %11524 = vst [vmem:[#allocation46_spill] sm:$0xff] %v9877_v25  ;;  %8543 = vmatmul.mubr.msk.bf16.gmra.mrb[4].mxu1 %vm1628_vm1, %v7565_v57  ;;  %v3181_v47 = vshrl.u32 %v9861_v2, 16  ;;  %11525 = vst [vmem:[#allocation47_spill] sm:$0xff] %v9886_v14  ;;  %v3184_v45 = vshll.u32 %v9861_v2, 16  ;;  %v1469_v57 = vshrl.u32 %v9865_v4, 16  ;;  %v3174_v9 = vrot.slane %v3172_v13, 7 }
 0x152   : > { %11523 = vst [vmem:[#allocation45_spill] sm:$0xff] %v9872_v54  ;;  %v3165_v58 = vsel %vm9387_vm8, %v3157_v20, %v3164_v28  ;;  %8565 = vmatpush3.bf16.msra.mxu1 %v9126_v26  ;;  %v1478_v29 = vshrl.u32 %v9877_v25, 16  ;;  %v9895_v54 = vld [vmem:[#allocation2 + $0x110] sm:$0xf]  ;;  %v7430_v20 = vcombine.low %v9865_v4, %v9877_v25  ;;  %v3194_v28 = vshrl.u32 %v9886_v14, 16 }
 0x153   : > { %v7566_v3 = vcombine.low %v3156_v19, %v3165_v58  ;;  %v3183_v42 = vrot.slane %v3181_v47, 7  ;;  %11526 = vst [vmem:[#allocation48_spill] sm:$0xff] %v9895_v54  ;;  %8598 = vmatprep.subr.bf16.mxu1 %v9870_v59  ;;  %v9898_v16 = vrot.slane %v1469_v57, 7  ;;  %v9904_v62 = vld [vmem:[#allocation2 + $0x134] sm:$0xf]  ;;  %v3177_v26 = vor.u32 %v3175_v11, %v3174_v9 }
 0x154   : > { %11528 = vst [vmem:[#allocation50_spill] sm:$0xff] %v9904_v62  ;;  %v3179_v19 = vrot.slane %v3174_v9, 4  ;;  %v9907_v47 = vrot.slane %v1478_v29, 7  ;;  %8434 = vmatprep.mubr.msk.bf16.mxu0 %vm1628_vm1, %v7430_v20  ;;  %v3196_v58 = vrot.slane %v3194_v28, 7  ;;  %v3197_v57 = vshll.u32 %v9886_v14, 16 }
 0x155   : > { %11527 = vst [vmem:[#allocation49_spill] sm:$0xff] %v9898_v16  ;;  %8546 = vmatprep.mubr.msk.bf16.mxu1 %vm1628_vm1, %v7566_v3  ;;  %v3186_v13 = vor.u32 %v3184_v45, %v3183_v42  ;;  %v3203_v33 = vshrl.u32 %v9895_v54, 16  ;;  %v3206_v25 = vshll.u32 %v9895_v54, 16  ;;  %v9913_v4 = vld [vmem:[#allocation2 + $0x138] sm:$0xf]  ;;  %v3178_v3 = vsel %vm9387_vm8, %v9434_v63, %v3177_v26 }
 0x156   : > { %11529 = vst [vmem:[#allocation51_spill] sm:$0xff] %v9907_v47  ;;  %11530 = vst [vmem:[#allocation52_spill] sm:$0xff] %v9913_v4  ;;  %v1491_v29 = vshrl.u32 %v9904_v62, 16  ;;  %v9922_v45 = vld [vmem:[#allocation2 + $0x120] sm:$0xf]  ;;  %v3199_v20 = vor.u32 %v3197_v57, %v3196_v58  ;;  %v3201_v28 = vrot.slane %v3196_v58, 4 }
 0x157   : > { %v3187_v42 = vsel %vm9387_vm8, %v3179_v19, %v3186_v13  ;;  %11531 = vst [vmem:[#allocation53_spill] sm:$0xff] %v9922_v45  ;;  %v3205_v14 = vrot.slane %v3203_v33, 7  ;;  %v9924_v54 = vld [vmem:[#allocation2 + $0x124] sm:$0xf]  ;;  %v9926_v47 = vld [vmem:[#allocation2 + $0x134] sm:$0xf]  ;;  %v7431_v19 = vcombine.low %v9904_v62, %v9913_v4 }
 0x158   : > { %v7567_v9 = vcombine.low %v3178_v3, %v3187_v42  ;;  %11532 = vst [vmem:[#allocation54_spill] sm:$0xff] %v9924_v54  ;;  %v9928_v16 = vrot.slane %v1491_v29, 7  ;;  %v1500_v63 = vshrl.u32 %v9913_v4, 16  ;;  %v9934_v13 = vld [vmem:[#allocation2 + $0x138] sm:$0xf]  ;;  %v3200_v33 = vsel %vm9387_vm8, %v9447_v17, %v3199_v20 }
 0x159   : > { %v3208_v58 = vor.u32 %v3206_v25, %v3205_v14  ;;  %v3216_v57 = vshrl.u32 %v9922_v45, 16  ;;  %v3219_v3 = vshll.u32 %v9922_v45, 16  ;;  %8435 = vmatmul.mubr.msk.bf16.gmra.mrb[60].mxu0 %vm1628_vm1, %v7431_v19  ;;  %v3225_v29 = vshrl.u32 %v9924_v54, 16  ;;  %v9954_v14 = vld [vmem:[#allocation2 + $0x148] sm:$0xf] }
 0x15a   : > { %8547 = vmatmul.mubr.msk.bf16.gmra.mrb[8].mxu1 %vm1628_vm1, %v7567_v9  ;;  %v9942_v42 = vrot.slane %v1500_v63, 7  ;;  %v3228_v26 = vshll.u32 %v9924_v54, 16  ;;  %v3238_v11 = vshrl.u32 %v9926_v47, 16  ;;  %8446 = vmatprep.mubr.msk.bf16.mxu0 %vm1628_vm1, %v9407_v23  ;;  %v3241_v17 = vshll.u32 %v9926_v47, 16  ;;  %v9957_v54 = vld [vmem:[#allocation2 + $0x14c] sm:$0xf] }
 0x15b   : > { %v3209_v9 = vsel %vm9387_vm8, %v3201_v28, %v3208_v58  ;;  %v3218_v4 = vrot.slane %v3216_v57, 7  ;;  %v3247_v25 = vshrl.u32 %v9934_v13, 16  ;;  %v3227_v63 = vrot.slane %v3225_v29, 7 }
 0x15c   : > { %11533 = vst [vmem:[#allocation55_spill] sm:$0xff] %v9942_v42  ;;  %v7568_v20 = vcombine.low %v3200_v33, %v3209_v9  ;;  %v3240_v19 = vrot.slane %v3238_v11, 7  ;;  %v3250_v45 = vshll.u32 %v9934_v13, 16  ;;  %v11534_v23 = vsel %vm9387_vm8, %v9423_v52, %v9533_v46 }
 0x15d   : > { %v3221_v42 = vor.u32 %v3219_v3, %v3218_v4  ;;  %v3223_v62 = vrot.slane %v3218_v4, 4  ;;  %v3249_v28 = vrot.slane %v3247_v25, 7  ;;  %v7453_v58 = vcombine.low %v11534_v23, %v9643_v41 }
 0x15e   : > { %8550 = vmatprep.mubr.msk.bf16.mxu1 %vm1628_vm1, %v7568_v20  ;;  %v3230_v57 = vor.u32 %v3228_v26, %v3227_v63  ;;  %v3243_v33 = vor.u32 %v3241_v17, %v3240_v19  ;;  %v3245_v29 = vrot.slane %v3240_v19, 4  ;;  %v3260_v11 = vshrl.u32 %v9954_v14, 16  ;;  %v9978_v17 = vld [vmem:[#allocation2 + $0x1c] sm:$0xf] }
 0x15f   : > { %v3222_v3 = vsel %vm9387_vm8, %v9443_v12, %v3221_v42  ;;  %v3252_v4 = vor.u32 %v3250_v45, %v3249_v28  ;;  %v3263_v9 = vshll.u32 %v9954_v14, 16  ;;  %v3269_v25 = vshrl.u32 %v9957_v54, 16  ;;  %v9142_v12 = vld [vmem:[%s11402_s4 + $0x48] sm:$0xff]  }
 0x160   : > { %v3231_v52 = vsel %vm9387_vm8, %v3223_v62, %v3230_v57  ;;  %v3244_v46 = vsel %vm9387_vm8, %v9452_v22, %v3243_v33  ;;  %v3262_v41 = vrot.slane %v3260_v11, 7  ;;  %v3272_v26 = vshll.u32 %v9957_v54, 16  ;;  %v9989_v22 = vld [vmem:[#allocation2 + $0x20] sm:$0xf] }
 0x161   : > { %v7569_v45 = vcombine.low %v3222_v3, %v3231_v52  ;;  %v3253_v42 = vsel %vm9387_vm8, %v3245_v29, %v3252_v4  ;;  %v3271_v20 = vrot.slane %v3269_v25, 7  ;;  %v1211_v62 = vsel %vm9387_vm8, %v9439_v6, %v9648_v53  ;;  %8447 = vmatmul.mubr.msk.bf16.vlgmr.msra.gmra.mrb[32].mxu0 %vm1628_vm1, %v7453_v58  ;;  %v10022_v52 = vld [vmem:[#allocation2 + $0x34] sm:$0xf]  ;;  %v11574_v58 = vld [vmem:[#allocation23_spill] sm:$0xff] }
 0x162   : > { %v7570_v63 = vcombine.low %v3244_v46, %v3253_v42  ;;  %v3265_v19 = vor.u32 %v3263_v9, %v3262_v41  ;;  %v3267_v28 = vrot.slane %v3262_v41, 4  ;;  %v1212_v23 = vrot.slane %v9505_v61, 4  ;;  %8479 = vmatpush3.bf16.msra.mxu0 %v9601_v60  ;;  %v9144_v60 = vld [vmem:[%s11402_s4 + $0x50] sm:$0xff]  }
 0x163   : > { %8551 = vmatmul.mubr.msk.bf16.gmra.mrb[12].mxu1 %vm1628_vm1, %v7569_v45  ;;  %v3274_v57 = vor.u32 %v3272_v26, %v3271_v20  ;;  %v11535_v33 = vshll.u32 %v9498_v51, 16  ;;  %v2930_v11 = vshrl.u32 %v9978_v17, 16  ;;  %v2939_v61 = vshrl.u32 %v9989_v22, 16  ;;  %8480 = vmatprep.subr.bf16.mxu0 %v9142_v12 }
 0x164   : > { %8554 = vmatprep.mubr.msk.bf16.mxu1 %vm1628_vm1, %v7570_v63  ;;  %v3266_v53 = vsel %vm9387_vm8, %v9455_v27, %v3265_v19  ;;  %v7600_v51 = vcombine.low %v9978_v17, %v9989_v22  ;;  %v11536_v9 = vshll.u32 %v9539_v0, 16  ;;  %v1234_v45 = vrot.slane %v9563_v35, 4 }
 0x165   : > { %v1219_v29 = vor.u32 %v11535_v33, %v9523_v30  ;;  %v10008_v30 = vld [vmem:[#allocation2 + $0x30] sm:$0xf]  ;;  %v3275_v3 = vsel %vm9387_vm8, %v3267_v28, %v3274_v57  ;;  %v10017_v4 = vrot.slane %v2930_v11, 7  ;;  %v10024_v26 = vrot.slane %v2939_v61, 7  ;;  %v10035_v28 = vld [vmem:[#allocation2 + $0x44] sm:$0xf] }
 0x166   : > { %v1232_v25 = vor.u32 %v11536_v9, %v9563_v35  ;;  %v7571_v46 = vcombine.low %v3266_v53, %v3275_v3  ;;  %v11537_v20 = vshll.u32 %v9555_v38, 16  ;;  %v2952_v19 = vshrl.u32 %v10008_v30, 16  ;;  %8481 = vmatpush3.bf16.msra.mxu0 %v9142_v12  ;;  %v9147_v53 = vld [vmem:[%s11402_s4 + $0x58] sm:$0xff]  }
 0x167   : > { %v1220_v27 = vsel %vm9387_vm8, %v1212_v23, %v1219_v29  ;;  %v11538_v38 = vshll.u32 %v9529_v43, 16  ;;  %v10045_v23 = vld [vmem:[#allocation2 + $0x48] sm:$0xf]  ;;  %8482 = vmatprep.subr.bf16.mxu0 %v9144_v60  ;;  %v1256_v33 = vrot.slane %v9557_v39, 4  ;;  %v11540_v29 = vshll.u32 %v9550_v24, 16 }
 0x168   : > { %v7454_v41 = vcombine.low %v1211_v62, %v1220_v27  ;;  %v1233_v42 = vsel %vm9387_vm8, %v9459_v44, %v1232_v25  ;;  %v1241_v63 = vor.u32 %v11537_v20, %v9574_v36  ;;  %v2961_v62 = vshrl.u32 %v10022_v52, 16  ;;  %11539 = vst [vmem:[#allocation56_spill] sm:$0xff] %v10045_v23  ;;  %v10064_v9 = vld [vmem:[#allocation2 + $0x58] sm:$0xf] }
 0x169   : > { %v7601_v44 = vcombine.low %v10008_v30, %v10022_v52  ;;  %v1254_v36 = vor.u32 %v11538_v38, %v9557_v39  ;;  %v10049_v12 = vrot.slane %v2952_v19, 7  ;;  %v1263_v11 = vor.u32 %v11540_v29, %v9576_v18  ;;  %11541 = vst [vmem:[#allocation57_spill] sm:$0xff] %v10064_v9  ;;  %v10090_v38 = vld [vmem:[#allocation2 + $0x6c] sm:$0xf] }
 0x16a   : > { %8450 = vmatprep.mubr.msk.bf16.mxu0 %vm1628_vm1, %v7454_v41  ;;  %v1242_v57 = vsel %vm9387_vm8, %v1234_v45, %v1241_v63  ;;  %v10058_v61 = vrot.slane %v2961_v62, 7  ;;  %v2974_v27 = vshrl.u32 %v10035_v28, 16  ;;  %v2983_v39 = vshrl.u32 %v10045_v23, 16  ;;  %v10072_v41 = vld [vmem:[#allocation2 + $0x5c] sm:$0xf]  ;;  %8483 = vmatpush3.bf16.msra.mxu0 %v9144_v60  ;;  %11545 = vst [vmem:[#allocation59_spill] sm:$0xff] %v10090_v38 }
 0x16b   : > { %v7455_v43 = vcombine.low %v1233_v42, %v1242_v57  ;;  %v1255_v3 = vsel %vm9387_vm8, %v9469_v7, %v1254_v36  ;;  %8555 = vmatmul.mubr.msk.bf16.gmra.mrb[16].mxu1 %vm1628_vm1, %v7571_v46  ;;  %v1264_v18 = vsel %vm9387_vm8, %v1256_v33, %v1263_v11  ;;  %11542 = vst [vmem:[#allocation58_spill] sm:$0xff] %v10072_v41  ;;  %v11543_v42 = vshll.u32 %v9594_v1, 16  ;;  %v10099_v33 = vld [vmem:[#allocation2 + $0x70] sm:$0xf] }
 0x16c   : > { %8566 = vmatprep.mubr.msk.bf16.mxu1 %vm1628_vm1, %v7600_v51  ;;  %v7456_v7 = vcombine.low %v1255_v3, %v1264_v18  ;;  %v10076_v45 = vrot.slane %v2974_v27, 7  ;;  %v7602_v46 = vcombine.low %v10035_v28, %v10045_v23  ;;  %v10083_v63 = vrot.slane %v2983_v39, 7  ;;  %8484 = vmatprep.subr.bf16.mxu0 %v9147_v53  ;;  %11546 = vst [vmem:[#allocation60_spill] sm:$0xff] %v10099_v33  ;;  %v11550_v18 = vld [vmem:[#allocation13_spill] sm:$0xff]  ;;  %v11551_v39 = vld [vmem:[#allocation12_spill] sm:$0xff] }
 0x16d   : > { %8451 = vmatmul.mubr.msk.bf16.gmra.mrb[36].mxu0 %vm1628_vm1, %v7455_v43  ;;  %v1276_v20 = vor.u32 %v11543_v42, %v9620_v32  ;;  %v1278_v19 = vrot.slane %v9620_v32, 4  ;;  %v11544_v60 = vshll.u32 %v9612_v40, 16  ;;  %v2996_v62 = vshrl.u32 %v10064_v9, 16 }
 0x16e   : > { %8454 = vmatprep.mubr.msk.bf16.mxu0 %vm1628_vm1, %v7456_v7  ;;  %v3005_v57 = vshrl.u32 %v10072_v41, 16  ;;  %v7603_v29 = vcombine.low %v10064_v9, %v10072_v41  ;;  %v11548_v11 = vshll.u32 %v9582_v15, 16  ;;  %8485 = vmatpush3.bf16.msra.mxu0 %v9147_v53  ;;  %v1300_v27 = vrot.slane %v9614_v37, 4  ;;  %v2125_v41 = vld [vmem:[#allocation2 + $0x30] sm:$0xf] }
 0x16f   : > { %v1285_v51 = vor.u32 %v11544_v60, %v9629_v10  ;;  %v1277_v1 = vsel %vm9387_vm8, %v9471_v8, %v1276_v20  ;;  %v10103_v40 = vrot.slane %v2996_v62, 7  ;;  %v11552_v7 = vshll.u32 %v11551_v39, 16  ;;  %v10119_v20 = vld [vmem:[%s11402_s4 + $0x60] sm:$0xff]  }
 0x170   : > { %v1298_v8 = vor.u32 %v11548_v11, %v9614_v37  ;;  %v10110_v3 = vrot.slane %v3005_v57, 7  ;;  %8518 = vmatprep.subr.bf16.mxu0 %v10119_v20  ;;  %v3018_v53 = vshrl.u32 %v10090_v38, 16  ;;  %v3027_v37 = vshrl.u32 %v10099_v33, 16  ;;  %v10131_v62 = vld [vmem:[#allocation2 + $0x80] sm:$0xf]  ;;  %v11555_v11 = vld [vmem:[#allocation19_spill] sm:$0xff] }
 0x171   : > { %v1286_v10 = vsel %vm9387_vm8, %v1278_v19, %v1285_v51  ;;  %11547 = vst [vmem:[#allocation61_spill] sm:$0xff] %v10103_v40  ;;  %v1307_v42 = vor.u32 %v11552_v7, %v11550_v18  ;;  %v11553_v19 = vld [vmem:[#allocation5_spill] sm:$0xff]  ;;  %v9133_v51 = vld [vmem:[%s11402_s4 + $0xa8] sm:$0xff]   ;;  %11554 = vst [vmem:[#allocation13_spill] sm:$0xff] %v10131_v62 }
 0x172   : > { %v7457_v43 = vcombine.low %v1277_v1, %v1286_v10  ;;  %11549 = vst [vmem:[#allocation62_spill] sm:$0xff] %v10110_v3  ;;  %v1299_v15 = vsel %vm9387_vm8, %v11553_v19, %v1298_v8  ;;  %v7604_v10 = vcombine.low %v10090_v38, %v10099_v33  ;;  %v11556_v8 = vld [vmem:[#allocation15_spill] sm:$0xff]  ;;  %v10141_v7 = vld [vmem:[#allocation2 + $0x84] sm:$0xf]  ;;  %v10144_v60 = vrot.slane %v3018_v53, 7  ;;  %v11563_v57 = vld [vmem:[#allocation17_spill] sm:$0xff] }
 0x173   : > { %v1308_v1 = vsel %vm9387_vm8, %v1300_v27, %v1307_v42  ;;  %v11557_v18 = vshll.u32 %v11556_v8, 16  ;;  %11558 = vst [vmem:[#allocation12_spill] sm:$0xff] %v10141_v7  ;;  %8567 = vmatmul.mubr.msk.bf16.vlgmr.msra.gmra.mrb[20].mxu1 %vm1628_vm1, %v7601_v44  ;;  %v10146_v32 = vrot.slane %v3027_v37, 7  ;;  %v1322_v27 = vrot.slane %v11555_v11, 4  ;;  %v11561_v42 = vld [vmem:[#allocation7_spill] sm:$0xff]  ;;  %v11565_v37 = vld [vmem:[#allocation18_spill] sm:$0xff] }
 0x174   : > { %v7458_v19 = vcombine.low %v1299_v15, %v1308_v1  ;;  %11559 = vst [vmem:[#allocation5_spill] sm:$0xff] %v10144_v60  ;;  %8599 = vmatpush3.bf16.msra.mxu1 %v9870_v59  ;;  %8570 = vmatprep.mubr.msk.bf16.mxu1 %vm1628_vm1, %v7602_v46  ;;  %v11564_v36 = vshll.u32 %v11563_v57, 16  ;;  %v3040_v44 = vshrl.u32 %v10131_v62, 16  ;;  %v3049_v53 = vshrl.u32 %v10141_v7, 16  ;;  %v11566_v1 = vld [vmem:[#allocation14_spill] sm:$0xff]  ;;  %v11570_v59 = vld [vmem:[#allocation16_spill] sm:$0xff] }
 0x175   : > { %v1320_v39 = vor.u32 %v11557_v18, %v11555_v11  ;;  %11560 = vst [vmem:[#allocation19_spill] sm:$0xff] %v10146_v32  ;;  %v11562_v18 = vld [vmem:[#allocation21_spill] sm:$0xff]  ;;  %8455 = vmatmul.mubr.msk.bf16.gmra.mrb[40].mxu0 %vm1628_vm1, %v7457_v43  ;;  %8600 = vmatprep.subr.bf16.mxu1 %v9133_v51  ;;  %v11567_v11 = vshll.u32 %v11566_v1, 16  ;;  %v11571_v15 = vshll.u32 %v11570_v59, 16  ;;  %v11581_v46 = vld [vmem:[#allocation27_spill] sm:$0xff]  ;;  %v11611_v38 = vld [vmem:[#allocation44_spill] sm:$0xff] }
 0x176   : > { %v1329_v25 = vor.u32 %v11564_v36, %v11562_v18  ;;  %v9136_v36 = vld [vmem:[%s11402_s4 + $0xb0] sm:$0xff]   ;;  %8458 = vmatprep.mubr.msk.bf16.mxu0 %vm1628_vm1, %v7458_v19  ;;  %v10173_v57 = vrot.slane %v3040_v44, 7  ;;  %v11569_v18 = vld [vmem:[#allocation22_spill] sm:$0xff]  ;;  %v10179_v1 = vrot.slane %v3049_v53, 7  ;;  %v11579_v53 = vld [vmem:[#allocation25_spill] sm:$0xff]  ;;  %v11612_v60 = vshll.u32 %v11611_v38, 16 }
 0x177   : > { %v1321_v8 = vsel %vm9387_vm8, %v11561_v42, %v1320_v39  ;;  %v1342_v39 = vor.u32 %v11567_v11, %v11565_v37  ;;  %v1344_v42 = vrot.slane %v11565_v37, 4  ;;  %v1351_v24 = vor.u32 %v11571_v15, %v11569_v18  ;;  %v11573_v11 = vld [vmem:[#allocation8_spill] sm:$0xff]  ;;  %v11628_v40 = vld [vmem:[#allocation6_spill] sm:$0xff] }
 0x178   : > { %v1330_v43 = vsel %vm9387_vm8, %v1322_v27, %v1329_v25  ;;  %11568 = vst [vmem:[#allocation15_spill] sm:$0xff] %v10173_v57  ;;  %11572 = vst [vmem:[#allocation7_spill] sm:$0xff] %v10179_v1  ;;  %v11575_v19 = vld [vmem:[#allocation20_spill] sm:$0xff]  ;;  %8601 = vmatpush3.bf16.msra.mxu1 %v9133_v51  ;;  %v1366_v15 = vrot.slane %v9716_v31, 4  ;;  %v11580_v59 = vshll.u32 %v11579_v53, 16  ;;  %v11583_v51 = vshll.u32 %v9730_v21, 16 }
 0x179   : > { %v7459_v35 = vcombine.low %v1321_v8, %v1330_v43  ;;  %v1343_v0 = vsel %vm9387_vm8, %v11573_v11, %v1342_v39  ;;  %v1352_v25 = vsel %vm9387_vm8, %v1344_v42, %v1351_v24  ;;  %v11576_v27 = vld [vmem:[#allocation24_spill] sm:$0xff]  ;;  %v11582_v39 = vld [vmem:[#allocation26_spill] sm:$0xff]  ;;  %v1388_v24 = vrot.slane %v9752_v48, 4  ;;  %8602 = vmatprep.subr.bf16.mxu1 %v9136_v36  ;;  %v11597_v1 = vld [vmem:[#allocation35_spill] sm:$0xff] }
 0x17a   : > { %v11577_v44 = vshll.u32 %v11576_v27, 16  ;;  %v11578_v8 = vld [vmem:[#allocation28_spill] sm:$0xff]  ;;  %v7460_v18 = vcombine.low %v1343_v0, %v1352_v25  ;;  %v1386_v6 = vor.u32 %v11583_v51, %v9752_v48  ;;  %v11584_v27 = vld [vmem:[#allocation9_spill] sm:$0xff]  ;;  %v11585_v25 = vld [vmem:[#allocation31_spill] sm:$0xff]  ;;  %v11618_v38 = vcombine.low %v10131_v62, %v10141_v7 }
 0x17b   : > { %v1373_v43 = vor.u32 %v11580_v59, %v11578_v8  ;;  %v1141_v42 = vld [vmem:[#allocation2 + $0xf4] sm:$0x8]  ;;  %v11586_v8 = vld [vmem:[#allocation29_spill] sm:$0xff]  ;;  %v11588_v59 = vld [vmem:[#allocation30_spill] sm:$0xff]  ;;  %8571 = vmatmul.mubr.msk.bf16.gmra.mrb[24].mxu1 %vm1628_vm1, %v7603_v29  ;;  %v11629_v23 = vshll.u32 %v11628_v40, 16 }
 0x17c   : > { %v1364_v37 = vor.u32 %v11577_v44, %v9716_v31  ;;  %v9143_v31 = vld [vmem:[%s11402_s4 + $0xb8] sm:$0xff]   ;;  %v11587_v53 = vshll.u32 %v11586_v8, 16  ;;  %v11589_v11 = vld [vmem:[#allocation10_spill] sm:$0xff]  ;;  %8574 = vmatprep.mubr.msk.bf16.mxu1 %vm1628_vm1, %v7604_v10  ;;  %v11591_v8 = vld [vmem:[#allocation32_spill] sm:$0xff]  ;;  %8603 = vmatpush3.bf16.msra.mxu1 %v9136_v36 }
 0x17d   : > { %v1374_v0 = vsel %vm9387_vm8, %v1366_v15, %v1373_v43  ;;  %v11590_v15 = vshll.u32 %v9779_v56, 16  ;;  %8459 = vmatmul.mubr.msk.bf16.gmra.mrb[44].mxu0 %vm1628_vm1, %v7459_v35  ;;  %v11596_v10 = vld [vmem:[#allocation40_spill] sm:$0xff]  ;;  %8604 = vmatprep.subr.bf16.mxu1 %v9143_v31  ;;  %v11604_v57 = vld [vmem:[#allocation39_spill] sm:$0xff] }
 0x17e   : > { %v1365_v44 = vsel %vm9387_vm8, %v11584_v27, %v1364_v37  ;;  %v1395_v21 = vor.u32 %v11587_v53, %v11585_v25  ;;  %v1387_v37 = vsel %vm9387_vm8, %v11589_v11, %v1386_v6  ;;  %v1410_v27 = vrot.slane %v9809_v49, 4  ;;  %v1144_v11 = vld [vmem:[#allocation2 + $0x108] sm:$0x8]  ;;  %8462 = vmatprep.mubr.msk.bf16.mxu0 %vm1628_vm1, %v7460_v18 }
 0x17f   : > { %v7461_v51 = vcombine.low %v1365_v44, %v1374_v0  ;;  %v1408_v43 = vor.u32 %v11590_v15, %v9809_v49  ;;  %v11592_v53 = vshll.u32 %v11591_v8, 16  ;;  %v11593_v44 = vld [vmem:[#allocation34_spill] sm:$0xff]  ;;  %v11594_v0 = vld [vmem:[#allocation33_spill] sm:$0xff]  ;;  %v1420_v6 = vshrl.u32 %v1141_v42, 16  ;;  %v11595_v15 = vld [vmem:[#allocation11_spill] sm:$0xff] }
 0x180   : > { %v1396_v25 = vsel %vm9387_vm8, %v1388_v24, %v1395_v21  ;;  %v11598_v24 = vshll.u32 %v11597_v1, 16  ;;  %v1432_v8 = vrot.slane %v11596_v10, 4  ;;  %v11599_v42 = vld [vmem:[#allocation42_spill] sm:$0xff]  ;;  %v1442_v48 = vshrl.u32 %v1144_v11, 16  ;;  %v1150_v11 = vld [vmem:[#allocation2 + $0x130] sm:$0x8]  ;;  %8605 = vmatpush3.bf16.msra.mxu1 %v9143_v31 }
 0x181   : > { %v1417_v29 = vor.u32 %v11592_v53, %v9819_v50  ;;  %v7462_v56 = vcombine.low %v1387_v37, %v1396_v25  ;;  %v1409_v49 = vsel %vm9387_vm8, %v11595_v15, %v1408_v43  ;;  %v10244_v50 = vld [vmem:[%s11402_s4 + $0xc0] sm:$0xff]   ;;  %v7404_v36 = vrot.slane %v1420_v6, 11  ;;  %v11600_v37 = vld [vmem:[#allocation36_spill] sm:$0xff]  ;;  %v11603_v53 = vld [vmem:[#allocation37_spill] sm:$0xff] }
 0x182   : > { %v1430_v21 = vor.u32 %v11598_v24, %v11596_v10  ;;  %v11601_v43 = vshll.u32 %v11600_v37, 16  ;;  %v11602_v1 = vld [vmem:[#allocation38_spill] sm:$0xff]  ;;  %v1147_v10 = vld [vmem:[#allocation2 + $0x11c] sm:$0x8]  ;;  %v11605_v33 = vshll.u32 %v11604_v57, 16  ;;  %v1454_v18 = vrot.slane %v9863_v34, 4  ;;  %8638 = vmatprep.subr.bf16.mxu1 %v10244_v50 }
 0x183   : > { %v1418_v35 = vsel %vm9387_vm8, %v1410_v27, %v1417_v29  ;;  %v11606_v6 = vld [vmem:[#allocation45_spill] sm:$0xff]  ;;  %v1464_v57 = vshrl.u32 %v1147_v10, 16  ;;  %v11616_v31 = vld [vmem:[#allocation48_spill] sm:$0xff]  ;;  %8575 = vmatmul.mubr.msk.bf16.gmra.mrb[28].mxu1 %vm1628_vm1, %v11618_v38  ;;  %v1486_v10 = vshrl.u32 %v1150_v11, 16 }
 0x184   : > { %v1439_v25 = vor.u32 %v11601_v43, %v11599_v42  ;;  %v10254_v24 = vcombine.low %v1409_v49, %v1418_v35  ;;  %v1452_v32 = vor.u32 %v11605_v33, %v9863_v34  ;;  %v1431_v27 = vsel %vm9387_vm8, %v7404_v36, %v1430_v21  ;;  %v11607_v42 = vld [vmem:[#allocation41_spill] sm:$0xff]  ;;  %v11609_v49 = vld [vmem:[#allocation43_spill] sm:$0xff]  ;;  %v11623_v11 = vld [vmem:[#allocation52_spill] sm:$0xff] }
 0x185   : > { %v11608_v37 = vshll.u32 %v11607_v42, 16  ;;  %v7405_v33 = vrot.slane %v1442_v48, 11  ;;  %v11610_v34 = vld [vmem:[#allocation49_spill] sm:$0xff]  ;;  %v7406_v48 = vrot.slane %v1464_v57, 11  ;;  %v11624_v57 = vshll.u32 %v11623_v11, 16  ;;  %8463 = vmatmul.mubr.msk.bf16.gmra.mrb[48].mxu0 %vm1628_vm1, %v7461_v51 }
 0x186   : > { %v1440_v29 = vsel %vm9387_vm8, %v1432_v8, %v1439_v25  ;;  %v1474_v21 = vor.u32 %v11612_v60, %v11610_v34  ;;  %v1476_v36 = vrot.slane %v11610_v34, 4  ;;  %v11613_v25 = vld [vmem:[#allocation51_spill] sm:$0xff]  ;;  %8466 = vmatprep.mubr.msk.bf16.mxu0 %vm1628_vm1, %v7462_v56 }
 0x187   : > { %v1461_v43 = vor.u32 %v11608_v37, %v11606_v6  ;;  %v10269_v15 = vcombine.low %v1431_v27, %v1440_v29  ;;  %v11614_v6 = vld [vmem:[#allocation46_spill] sm:$0xff]  ;;  %v11617_v27 = vld [vmem:[#allocation47_spill] sm:$0xff]  ;;  %v1453_v60 = vsel %vm9387_vm8, %v7405_v33, %v1452_v32  ;;  %v1498_v32 = vrot.slane %v9928_v16, 4 }
 0x188   : > { %v11615_v42 = vshll.u32 %v11614_v6, 16  ;;  %v2119_v6 = vld [vmem:[#allocation2 + $0x8] sm:$0xf] }
 0x189   : > { %v1462_v8 = vsel %vm9387_vm8, %v1454_v18, %v1461_v43  ;;  %v11619_v18 = vld [vmem:[#allocation50_spill] sm:$0xff]  ;;  %v11622_v33 = vld [vmem:[#allocation55_spill] sm:$0xff]  ;;  %v2171_v11 = vshrl.u32 %v2119_v6, 16 }
 0x18a   : > { %v1483_v37 = vor.u32 %v11615_v42, %v11613_v25  ;;  %v11620_v43 = vshll.u32 %v11619_v18, 16  ;;  %v836_v25 = vld [vmem:[#allocation2 + $0x10] sm:$0x1]  ;;  %v11621_v42 = vcombine.low %v11575_v19, %v11574_v58  ;;  %v10296_v29 = vcombine.low %v1453_v60, %v1462_v8  ;;  %v2120_v18 = vld [vmem:[#allocation2 + $0xc] sm:$0xf]  ;;  %v11625_v19 = vld [vmem:[#allocation54_spill] sm:$0xff] }
 0x18b   : > { %v1505_v35 = vor.u32 %v11624_v57, %v11622_v33  ;;  %v7407_v58 = vrot.slane %v1486_v10, 11  ;;  %v837_v51 = vsel %vm9391_vm9, 0, %v836_v25  ;;  %v2174_v10 = vshll.u32 %v2119_v6, 16 }
 0x18c   : > { %v1496_v34 = vor.u32 %v11620_v43, %v9928_v16  ;;  %8578 = vmatprep.mubr.msk.bf16.mxu1 %vm1628_vm1, %v11621_v42  ;;  %v1484_v38 = vsel %vm9387_vm8, %v1476_v36, %v1483_v37  ;;  %v1475_v43 = vsel %vm9387_vm8, %v7406_v48, %v1474_v21  ;;  %v11626_v42 = vld [vmem:[#allocation53_spill] sm:$0xff]  ;;  %v2123_v21 = vld [vmem:[#allocation2 + $0x20] sm:$0xf]  ;;  %838 = vst [vmem:[#allocation2 + $0x10] sm:$0x1] %v837_v51  ;;  %v2180_v57 = vshll.u32 %v2120_v18, 16 }
 0x18d   : > { %v2122_v36 = vld [vmem:[#allocation2 + $0x1c] sm:$0xf]  ;;  %v10312_v16 = vcombine.low %v1475_v43, %v1484_v38  ;;  %v1506_v37 = vsel %vm9387_vm8, %v1498_v32, %v1505_v35  ;;  %v2184_v60 = vshrl.u32 %v2120_v18, 16  ;;  %v2173_v56 = vrot.slane %v2171_v11, 4  ;;  %8467 = vmatmul.mubr.msk.bf16.gmra.mrb[52].mxu0 %vm1628_vm1, %v10254_v24 }
 0x18e   : > { %v1497_v48 = vsel %vm9387_vm8, %v7407_v58, %v1496_v34  ;;  %v2195_v38 = vshrl.u32 %v2122_v36, 16  ;;  %v2198_v43 = vshll.u32 %v2122_v36, 16  ;;  %v2176_v7 = vrot.slane %v2174_v10, 5  ;;  %v2126_v58 = vld [vmem:[#allocation2 + $0x34] sm:$0xf]  ;;  %8470 = vmatprep.mubr.msk.bf16.mxu0 %vm1628_vm1, %v10269_v15 }
 0x18f   : > { %v10320_v8 = vcombine.low %v1497_v48, %v1506_v37  ;;  %v2182_v62 = vrot.slane %v2180_v57, 5  ;;  %v2186_v35 = vrot.slane %v2184_v60, 4  ;;  %v2204_v32 = vshll.u32 %v2123_v21, 16 }
 0x190   : > { %v2197_v25 = vrot.slane %v2195_v38, 4  ;;  %v2200_v3 = vrot.slane %v2198_v43, 5  ;;  %v2208_v9 = vshrl.u32 %v2123_v21, 16  ;;  %v2216_v34 = vrot.slane %v11629_v23, 5  ;;  %v2127_v23 = vld [vmem:[#allocation2 + $0x38] sm:$0x1] }
 0x191   : > { %v11630_v6 = vcombine.low %v11582_v39, %v11581_v46  ;;  %v2177_v18 = vor.u32 %v2176_v7, %v2173_v56  ;;  %v2187_v37 = vor.u32 %v2186_v35, %v2182_v62  ;;  %v2206_v36 = vrot.slane %v2204_v32, 5  ;;  %v3953_v32 = vld [vmem:[#allocation2 + $0x20] sm:$0xf] }
 0x192   : > { %v7615_v60 = vcombine.low %v9954_v14, %v9957_v54  ;;  %v11631_v51 = vcombine.low %v11588_v59, %v9766_v55  ;;  %v2201_v11 = vor.u32 %v2200_v3, %v2197_v25  ;;  %v2210_v40 = vrot.slane %v2208_v9, 4  ;;  %v3952_v59 = vld [vmem:[#allocation2 + $0x1c] sm:$0xf] }
 0x193   : > { %8579 = vmatmul.mubr.msk.bf16.gmra.mrb[0].mxu1 %vm1628_vm1, %v11630_v6  ;;  %v2219_v21 = vshrl.u32 %v2125_v41, 16  ;;  %v2222_v48 = vshll.u32 %v2125_v41, 16  ;;  %v2178_v46 = vrot.slane %v2177_v18, 4  ;;  %v2188_v39 = vrot.slane %v2187_v37, 4  ;;  %v2121_v9 = vld [vmem:[#allocation2 + $0x10] sm:$0x1] }
 0x194   : > { %8582 = vmatprep.mubr.msk.bf16.mxu1 %vm1628_vm1, %v11631_v51  ;;  %v2228_v10 = vshll.u32 %v2126_v58, 16  ;;  %v2232_v55 = vshrl.u32 %v2126_v58, 16  ;;  %v2202_v3 = vrot.slane %v2201_v11, 4  ;;  %v2211_v41 = vor.u32 %v2210_v40, %v2206_v36  ;;  %v3954_v51 = vld [vmem:[#allocation2 + $0x24] sm:$0x1] }
 0x195   : > { %v2221_v57 = vrot.slane %v2219_v21, 4  ;;  %v2224_v56 = vrot.slane %v2222_v48, 5  ;;  %v2183_v24 = vsel %vm10338_vm12, %v2178_v46, %v2182_v62  ;;  %v2190_v38 = vshll.u32 %v2121_v9, 16  ;;  %8471 = vmatmul.mubr.msk.bf16.gmra.mrb[56].mxu0 %vm1628_vm1, %v10296_v29 }
 0x196   : > { %v2230_v43 = vrot.slane %v2228_v10, 5  ;;  %v2234_v35 = vrot.slane %v2232_v55, 4  ;;  %v2207_v25 = vsel %vm10338_vm12, %v2202_v3, %v2206_v36  ;;  %v2212_v58 = vrot.slane %v2211_v41, 4  ;;  %v903_v10 = vld [vmem:[#allocation2 + $0x4c] sm:$0x1]  ;;  %8474 = vmatprep.mubr.msk.bf16.mxu0 %vm1628_vm1, %v10312_v16 }
 0x197   : > { %v2225_v6 = vor.u32 %v2224_v56, %v2221_v57  ;;  %v2238_v18 = vshll.u32 %v2127_v23, 16  ;;  %v2192_v37 = vrot.slane %v2190_v38, 5  ;;  %v4001_v11 = vshrl.u32 %v3952_v59, 16  ;;  %v2129_v56 = vld [vmem:[#allocation2 + $0x48] sm:$0xf] }
 0x198   : > { %v2235_v15 = vor.u32 %v2234_v35, %v2230_v43  ;;  %v4004_v40 = vshll.u32 %v3952_v59, 16  ;;  %v2217_v21 = vsel %vm10338_vm12, %v2212_v58, %v2216_v34  ;;  %v4010_v46 = vshll.u32 %v3953_v32, 16  ;;  %v2128_v59 = vld [vmem:[#allocation2 + $0x44] sm:$0xf] }
 0x199   : > { %v2226_v48 = vrot.slane %v2225_v6, 4  ;;  %v2240_v62 = vrot.slane %v2238_v18, 5  ;;  %v11634_v55 = vcombine.low %v11594_v0, %v11593_v44  ;;  %v2193_v36 = vsel %vm10338_vm12, %v2188_v39, %v2192_v37 }
 0x19a   : > { %v10356_v23 = vcombine.low %v2207_v25, %v2217_v21  ;;  %v2236_v9 = vrot.slane %v2235_v15, 4  ;;  %v4003_v3 = vrot.slane %v4001_v11, 4  ;;  %v11635_v34 = vcombine.low %v11603_v53, %v11602_v1  ;;  %v3955_v53 = vld [vmem:[#allocation2 + $0x30] sm:$0xf]  ;;  %v3956_v15 = vld [vmem:[#allocation2 + $0x34] sm:$0xf] }
 0x19b   : > { %8583 = vmatmul.mubr.msk.bf16.gmra.mrb[4].mxu1 %vm1628_vm1, %v11634_v55  ;;  %v7496_v41 = vcombine.low %v2183_v24, %v2193_v36  ;;  %v2231_v57 = vsel %vm10338_vm12, %v2226_v48, %v2230_v43  ;;  %v4006_v44 = vrot.slane %v4004_v40, 5  ;;  %v4012_v0 = vrot.slane %v4010_v46, 5  ;;  %v3957_v40 = vld [vmem:[#allocation2 + $0x38] sm:$0x1] }
 0x19c   : > { %8586 = vmatprep.mubr.msk.bf16.mxu1 %vm1628_vm1, %v11635_v34  ;;  %v2241_v39 = vsel %vm10338_vm12, %v2236_v9, %v2240_v62  ;;  %v4014_v38 = vshrl.u32 %v3953_v32, 16  ;;  %v4020_v35 = vshll.u32 %v3954_v51, 16  ;;  %v904_v1 = vsel %vm9391_vm9, 0, %v903_v10  ;;  %v906_v10 = vld [vmem:[#allocation2 + $0x60] sm:$0x1] }
 0x19d   : > { %v10372_v24 = vcombine.low %v2231_v57, %v2241_v39  ;;  %v4007_v43 = vor.u32 %v4006_v44, %v4003_v3  ;;  %905 = vst [vmem:[#allocation2 + $0x4c] sm:$0x1] %v904_v1  ;;  %v2243_v25 = vshrl.u32 %v2128_v59, 16  ;;  %v2246_v58 = vshll.u32 %v2128_v59, 16  ;;  %v2131_v39 = vld [vmem:[#allocation2 + $0x58] sm:$0xf]  ;;  %8475 = vmatmul.mubr.msk.bf16.gmra.mrb[60].mxu0 %vm1628_vm1, %v10320_v8 }
 0x19e   : > { %v4016_v6 = vrot.slane %v4014_v38, 4  ;;  %v4022_v29 = vrot.slane %v4020_v35, 5  ;;  %v2252_v18 = vshll.u32 %v2129_v56, 16  ;;  %v2256_v37 = vshrl.u32 %v2129_v56, 16  ;;  %8486 = vmatprep.mubr.msk.bf16.mxu0 %vm1628_vm1, %v7496_v41 }
 0x19f   : > { %v4008_v32 = vrot.slane %v4007_v43, 4  ;;  %v2245_v51 = vrot.slane %v2243_v25, 4  ;;  %v2248_v11 = vrot.slane %v2246_v58, 5  ;;  %v4025_v21 = vshrl.u32 %v3955_v53, 16  ;;  %v2132_v43 = vld [vmem:[#allocation2 + $0x5c] sm:$0xf] }
 0x1a0   : > { %v4017_v48 = vor.u32 %v4016_v6, %v4012_v0  ;;  %v2254_v62 = vrot.slane %v2252_v18, 5  ;;  %v2258_v46 = vrot.slane %v2256_v37, 4  ;;  %v4028_v16 = vshll.u32 %v3955_v53, 16 }
 0x1a1   : > { %v4013_v55 = vsel %vm10338_vm12, %v4008_v32, %v4012_v0  ;;  %v2249_v36 = vor.u32 %v2248_v11, %v2245_v51  ;;  %v4027_v9 = vrot.slane %v4025_v21, 4  ;;  %v4034_v3 = vshll.u32 %v3956_v15, 16 }
 0x1a2   : > { %v11636_v59 = vcombine.low %v11609_v49, %v9861_v2  ;;  %v4018_v34 = vrot.slane %v4017_v48, 4  ;;  %v2259_v57 = vor.u32 %v2258_v46, %v2254_v62  ;;  %v4030_v44 = vrot.slane %v4028_v16, 5 }
 0x1a3   : > { %v4038_v56 = vshrl.u32 %v3956_v15, 16  ;;  %v11637_v38 = vcombine.low %v11617_v27, %v11616_v31  ;;  %v2250_v35 = vrot.slane %v2249_v36, 4  ;;  %v4036_v0 = vrot.slane %v4034_v3, 5  ;;  %v3958_v31 = vld [vmem:[#allocation2 + $0x44] sm:$0xf] }
 0x1a4   : > { %8587 = vmatmul.mubr.msk.bf16.gmra.mrb[8].mxu1 %vm1628_vm1, %v11636_v59  ;;  %v4044_v1 = vshll.u32 %v3957_v40, 16  ;;  %v907_v53 = vsel %vm9391_vm9, 0, %v906_v10  ;;  %v4023_v2 = vsel %vm10338_vm12, %v4018_v34, %v4022_v29  ;;  %v2130_v49 = vld [vmem:[#allocation2 + $0x4c] sm:$0x1]  ;;  %v2260_v25 = vrot.slane %v2259_v57, 4 }
 0x1a5   : > { %8590 = vmatprep.mubr.msk.bf16.mxu1 %vm1628_vm1, %v11637_v38  ;;  %v4031_v58 = vor.u32 %v4030_v44, %v4027_v9  ;;  %v4040_v6 = vrot.slane %v4038_v56, 4  ;;  %908 = vst [vmem:[#allocation2 + $0x60] sm:$0x1] %v907_v53  ;;  %v10391_v27 = vcombine.low %v4013_v55, %v4023_v2  ;;  %v2255_v18 = vsel %vm10338_vm12, %v2250_v35, %v2254_v62  ;;  %v3959_v55 = vld [vmem:[#allocation2 + $0x48] sm:$0xf] }
 0x1a6   : > { %v2262_v37 = vshll.u32 %v2130_v49, 16  ;;  %v4046_v15 = vrot.slane %v4044_v1, 5  ;;  %v2267_v51 = vshrl.u32 %v2131_v39, 16  ;;  %v2270_v11 = vshll.u32 %v2131_v39, 16  ;;  %v3960_v3 = vld [vmem:[#allocation2 + $0x4c] sm:$0x1]  ;;  %8487 = vmatmul.mubr.msk.bf16.vlgmr.msra.gmra.mrb[32].mxu0 %vm1628_vm1, %v10356_v23 }
 0x1a7   : > { %v4032_v32 = vrot.slane %v4031_v58, 4  ;;  %v4041_v8 = vor.u32 %v4040_v6, %v4036_v0  ;;  %v2276_v40 = vshll.u32 %v2132_v43, 16  ;;  %v2280_v21 = vshrl.u32 %v2132_v43, 16  ;;  %v909_v38 = vld [vmem:[#allocation2 + $0x74] sm:$0x1]  ;;  %8490 = vmatprep.mubr.msk.bf16.mxu0 %vm1628_vm1, %v10372_v24  ;;  %8519 = vmatpush3.bf16.msra.mxu0 %v10119_v20  ;;  %v9182_v24 = vld [vmem:[%s11402_s4 + $0x68] sm:$0xff]  }
 0x1a8   : > { %v2264_v29 = vrot.slane %v2262_v37, 5  ;;  %v4049_v48 = vshrl.u32 %v3958_v31, 16  ;;  %v2269_v41 = vrot.slane %v2267_v51, 4  ;;  %v2272_v10 = vrot.slane %v2270_v11, 5  ;;  %v2135_v6 = vld [vmem:[#allocation2 + $0x70] sm:$0xf]  ;;  %8520 = vmatprep.subr.bf16.mxu0 %v9182_v24 }
 0x1a9   : > { %v4037_v46 = vsel %vm10338_vm12, %v4032_v32, %v4036_v0  ;;  %v4042_v16 = vrot.slane %v4041_v8, 4  ;;  %v2278_v36 = vrot.slane %v2276_v40, 5  ;;  %v2282_v9 = vrot.slane %v2280_v21, 4  ;;  %v3961_v37 = vld [vmem:[#allocation2 + $0x58] sm:$0xf] }
 0x1aa   : > { %v2265_v62 = vsel %vm10338_vm12, %v2260_v25, %v2264_v29  ;;  %v4051_v59 = vrot.slane %v4049_v48, 4  ;;  %v11638_v34 = vcombine.low %v11626_v42, %v11625_v19  ;;  %v2273_v56 = vor.u32 %v2272_v10, %v2269_v41  ;;  %v2134_v42 = vld [vmem:[#allocation2 + $0x6c] sm:$0xf] }
 0x1ab   : > { %v7499_v57 = vcombine.low %v2255_v18, %v2265_v62  ;;  %v4047_v44 = vsel %vm10338_vm12, %v4042_v16, %v4046_v15  ;;  %v4052_v39 = vshll.u32 %v3958_v31, 16  ;;  %v11639_v35 = vcombine.low %v9926_v47, %v9934_v13  ;;  %8521 = vmatpush3.bf16.msra.mxu0 %v9182_v24 }
 0x1ac   : > { %8591 = vmatmul.mubr.msk.bf16.gmra.mrb[12].mxu1 %vm1628_vm1, %v11638_v34  ;;  %v10409_v0 = vcombine.low %v4037_v46, %v4047_v44  ;;  %v2133_v1 = vld [vmem:[#allocation2 + $0x60] sm:$0x1]  ;;  %v2283_v53 = vor.u32 %v2282_v9, %v2278_v36  ;;  %v4058_v43 = vshll.u32 %v3959_v55, 16  ;;  %v4062_v19 = vshrl.u32 %v3959_v55, 16  ;;  %v3962_v46 = vld [vmem:[#allocation2 + $0x5c] sm:$0xf] }
 0x1ad   : > { %8594 = vmatprep.mubr.msk.bf16.mxu1 %vm1628_vm1, %v11639_v35  ;;  %v2274_v2 = vrot.slane %v2273_v56, 4  ;;  %v2286_v49 = vshll.u32 %v2133_v1, 16  ;;  %v4054_v25 = vrot.slane %v4052_v39, 5  ;;  %v4068_v58 = vshll.u32 %v3960_v3, 16  ;;  %v912_v44 = vld [vmem:[#allocation2 + $0x88] sm:$0x1] }
 0x1ae   : > { %v2284_v47 = vrot.slane %v2283_v53, 4  ;;  %v4060_v13 = vrot.slane %v4058_v43, 5  ;;  %v4064_v31 = vrot.slane %v4062_v19, 4  ;;  %v910_v18 = vsel %vm9391_vm9, 0, %v909_v38  ;;  %v9183_v56 = vld [vmem:[%s11402_s4 + $0x70] sm:$0xff]   ;;  %8491 = vmatmul.mubr.msk.bf16.gmra.mrb[36].mxu0 %vm1628_vm1, %v7499_v57 }
 0x1af   : > { %v2279_v23 = vsel %vm10338_vm12, %v2274_v2, %v2278_v36  ;;  %v2288_v15 = vrot.slane %v2286_v49, 5  ;;  %v4055_v32 = vor.u32 %v4054_v25, %v4051_v59  ;;  %v4070_v8 = vrot.slane %v4068_v58, 5  ;;  %911 = vst [vmem:[#allocation2 + $0x74] sm:$0x1] %v910_v18  ;;  %v3963_v36 = vld [vmem:[#allocation2 + $0x60] sm:$0x1]  ;;  %8522 = vmatprep.subr.bf16.mxu0 %v9183_v56 }
 0x1b0   : > { %v4065_v51 = vor.u32 %v4064_v31, %v4060_v13  ;;  %v2291_v11 = vshrl.u32 %v2134_v42, 16  ;;  %v2294_v29 = vshll.u32 %v2134_v42, 16  ;;  %v2300_v40 = vshll.u32 %v2135_v6, 16  ;;  %v2137_v43 = vld [vmem:[#allocation2 + $0x80] sm:$0xf]  ;;  %8523 = vmatpush3.bf16.msra.mxu0 %v9183_v56  ;;  %v9184_v31 = vld [vmem:[%s11402_s4 + $0x78] sm:$0xff]  }
 0x1b1   : > { %v2289_v21 = vsel %vm10338_vm12, %v2284_v47, %v2288_v15  ;;  %v4056_v20 = vrot.slane %v4055_v32, 4  ;;  %v2304_v48 = vshrl.u32 %v2135_v6, 16  ;;  %v4073_v16 = vshrl.u32 %v3961_v37, 16  ;;  %v2138_v19 = vld [vmem:[#allocation2 + $0x84] sm:$0xf]  ;;  %8524 = vmatprep.subr.bf16.mxu0 %v9184_v31 }
 0x1b2   : > { %v7500_v41 = vcombine.low %v2279_v23, %v2289_v21  ;;  %v4066_v10 = vrot.slane %v4065_v51, 4  ;;  %v2293_v55 = vrot.slane %v2291_v11, 4  ;;  %v2296_v62 = vrot.slane %v2294_v29, 5  ;;  %v9150_v11 = vld [vmem:[%s11402_s4 + $0xc8] sm:$0xff]  }
 0x1b3   : > { %v4061_v9 = vsel %vm10338_vm12, %v4056_v20, %v4060_v13  ;;  %v2302_v3 = vrot.slane %v2300_v40, 5  ;;  %v2306_v59 = vrot.slane %v2304_v48, 4  ;;  %v4075_v34 = vrot.slane %v4073_v16, 4  ;;  %v3964_v13 = vld [vmem:[#allocation2 + $0x6c] sm:$0xf] }
 0x1b4   : > { %8595 = vmatmul.mubr.msk.bf16.gmra.mrb[16].mxu1 %vm1628_vm1, %v7615_v60  ;;  %v4071_v54 = vsel %vm10338_vm12, %v4066_v10, %v4070_v8  ;;  %v2297_v14 = vor.u32 %v2296_v62, %v2293_v55  ;;  %v4076_v60 = vshll.u32 %v3961_v37, 16  ;;  %v4082_v39 = vshll.u32 %v3962_v46, 16  ;;  %8494 = vmatprep.mubr.msk.bf16.mxu0 %vm1628_vm1, %v7500_v41  ;;  %v3965_v20 = vld [vmem:[#allocation2 + $0x70] sm:$0xf] }
 0x1b5   : > { %8606 = vmatprep.mubr.msk.bf16.mxu1 %vm1628_vm1, %v10391_v27  ;;  %v7646_v38 = vcombine.low %v4061_v9, %v4071_v54  ;;  %v2307_v35 = vor.u32 %v2306_v59, %v2302_v3  ;;  %v4086_v1 = vshrl.u32 %v3962_v46, 16  ;;  %v4092_v53 = vshll.u32 %v3963_v36, 16  ;;  %8525 = vmatpush3.bf16.msra.mxu0 %v9184_v31  ;;  %v915_v59 = vld [vmem:[#allocation2 + $0x9c] sm:$0x1] }
 0x1b6   : > { %v2136_v42 = vld [vmem:[#allocation2 + $0x74] sm:$0x1]  ;;  %v2298_v2 = vrot.slane %v2297_v14, 4  ;;  %v4078_v49 = vrot.slane %v4076_v60, 5  ;;  %v4084_v27 = vrot.slane %v4082_v39, 5  ;;  %v913_v25 = vsel %vm9391_vm9, 0, %v912_v44 }
 0x1b7   : > { %v2308_v58 = vrot.slane %v2307_v35, 4  ;;  %v2310_v6 = vshll.u32 %v2136_v42, 16  ;;  %v4088_v47 = vrot.slane %v4086_v1, 4  ;;  %v4094_v57 = vrot.slane %v4092_v53, 5  ;;  %914 = vst [vmem:[#allocation2 + $0x88] sm:$0x1] %v913_v25 }
 0x1b8   : > { %v2303_v18 = vsel %vm10338_vm12, %v2298_v2, %v2302_v3  ;;  %v4079_v37 = vor.u32 %v4078_v49, %v4075_v34  ;;  %v2315_v23 = vshrl.u32 %v2137_v43, 16  ;;  %v2318_v15 = vshll.u32 %v2137_v43, 16  ;;  %v3966_v55 = vld [vmem:[#allocation2 + $0x74] sm:$0x1]  ;;  %v2141_v14 = vld [vmem:[#allocation2 + $0x98] sm:$0xf] }
 0x1b9   : > { %v2312_v32 = vrot.slane %v2310_v6, 5  ;;  %v4089_v8 = vor.u32 %v4088_v47, %v4084_v27  ;;  %v2324_v24 = vshll.u32 %v2138_v19, 16  ;;  %v2328_v51 = vshrl.u32 %v2138_v19, 16  ;;  %v2140_v34 = vld [vmem:[#allocation2 + $0x94] sm:$0xf]  ;;  %v9152_v31 = vld [vmem:[%s11402_s4 + $0xd8] sm:$0xff]  }
 0x1ba   : > { %v4080_v29 = vrot.slane %v4079_v37, 4  ;;  %v2317_v40 = vrot.slane %v2315_v23, 4  ;;  %v2320_v21 = vrot.slane %v2318_v15, 5  ;;  %v4097_v48 = vshrl.u32 %v3964_v13, 16  ;;  %v3967_v2 = vld [vmem:[#allocation2 + $0x80] sm:$0xf] }
 0x1bb   : > { %v2313_v46 = vsel %vm10338_vm12, %v2308_v58, %v2312_v32  ;;  %v4090_v16 = vrot.slane %v4089_v8, 4  ;;  %v2326_v41 = vrot.slane %v2324_v24, 5  ;;  %v2330_v10 = vrot.slane %v2328_v51, 4 }
 0x1bc   : > { %8607 = vmatmul.mubr.msk.bf16.vlgmr.msra.gmra.mrb[20].mxu1 %vm1628_vm1, %v10409_v0  ;;  %v7501_v62 = vcombine.low %v2303_v18, %v2313_v46  ;;  %v4085_v36 = vsel %vm10338_vm12, %v4080_v29, %v4084_v27  ;;  %v2321_v9 = vor.u32 %v2320_v21, %v2317_v40  ;;  %v4099_v3 = vrot.slane %v4097_v48, 4 }
 0x1bd   : > { %8639 = vmatpush3.bf16.msra.mxu1 %v10244_v50  ;;  %8610 = vmatprep.mubr.msk.bf16.mxu1 %vm1628_vm1, %v7646_v38  ;;  %v4095_v0 = vsel %vm10338_vm12, %v4090_v16, %v4094_v57  ;;  %v2331_v44 = vor.u32 %v2330_v10, %v2326_v41  ;;  %v4100_v56 = vshll.u32 %v3964_v13, 16  ;;  %v4106_v54 = vshll.u32 %v3965_v20, 16  ;;  %v9151_v50 = vld [vmem:[%s11402_s4 + $0xd0] sm:$0xff]  }
 0x1be   : > { %8640 = vmatprep.subr.bf16.mxu1 %v9150_v11  ;;  %8495 = vmatmul.mubr.msk.bf16.gmra.mrb[40].mxu0 %vm1628_vm1, %v7501_v62  ;;  %v7647_v60 = vcombine.low %v4085_v36, %v4095_v0  ;;  %v2139_v39 = vld [vmem:[#allocation2 + $0x88] sm:$0x1]  ;;  %v2322_v38 = vrot.slane %v2321_v9, 4  ;;  %v4110_v35 = vshrl.u32 %v3965_v20, 16  ;;  %v4116_v1 = vshll.u32 %v3966_v55, 16  ;;  %v9153_v62 = vld [vmem:[%s11402_s4 + $0xe0] sm:$0xff]  }
 0x1bf   : > { %v2332_v53 = vrot.slane %v2331_v44, 4  ;;  %v2334_v43 = vshll.u32 %v2139_v39, 16  ;;  %v4102_v19 = vrot.slane %v4100_v56, 5  ;;  %v4108_v42 = vrot.slane %v4106_v54, 5  ;;  %v3969_v48 = vld [vmem:[#allocation2 + $0x88] sm:$0x1] }
 0x1c0   : > { %v2327_v49 = vsel %vm10338_vm12, %v2322_v38, %v2326_v41  ;;  %v4112_v27 = vrot.slane %v4110_v35, 4  ;;  %v4118_v25 = vrot.slane %v4116_v1, 5  ;;  %v916_v58 = vsel %vm9391_vm9, 0, %v915_v59  ;;  %v918_v55 = vld [vmem:[#allocation2 + $0xb0] sm:$0x1] }
 0x1c1   : > { %8641 = vmatpush3.bf16.msra.mxu1 %v9150_v11  ;;  %v2336_v6 = vrot.slane %v2334_v43, 5  ;;  %v4103_v47 = vor.u32 %v4102_v19, %v4099_v3  ;;  %917 = vst [vmem:[#allocation2 + $0x9c] sm:$0x1] %v916_v58  ;;  %v2339_v57 = vshrl.u32 %v2140_v34, 16  ;;  %v2342_v13 = vshll.u32 %v2140_v34, 16 }
 0x1c2   : > { %8642 = vmatprep.subr.bf16.mxu1 %v9151_v50  ;;  %v4113_v18 = vor.u32 %v4112_v27, %v4108_v42  ;;  %v2348_v37 = vshll.u32 %v2141_v14, 16  ;;  %v2352_v23 = vshrl.u32 %v2141_v14, 16  ;;  %v4121_v15 = vshrl.u32 %v3967_v2, 16  ;;  %v3968_v11 = vld [vmem:[#allocation2 + $0x84] sm:$0xf] }
 0x1c3   : > { %v2337_v32 = vsel %vm10338_vm12, %v2332_v53, %v2336_v6  ;;  %v4104_v8 = vrot.slane %v4103_v47, 4  ;;  %v2341_v24 = vrot.slane %v2339_v57, 4  ;;  %v2344_v51 = vrot.slane %v2342_v13, 5  ;;  %v2143_v34 = vld [vmem:[#allocation2 + $0xa8] sm:$0xf] }
 0x1c4   : > { %8611 = vmatmul.mubr.msk.bf16.gmra.mrb[24].mxu1 %vm1628_vm1, %v7647_v60  ;;  %v7502_v29 = vcombine.low %v2327_v49, %v2337_v32  ;;  %v4114_v40 = vrot.slane %v4113_v18, 4  ;;  %v2350_v21 = vrot.slane %v2348_v37, 5  ;;  %v2354_v20 = vrot.slane %v2352_v23, 4  ;;  %v2144_v0 = vld [vmem:[#allocation2 + $0xac] sm:$0xf] }
 0x1c5   : > { %8643 = vmatpush3.bf16.msra.mxu1 %v9151_v50  ;;  %v4109_v46 = vsel %vm10338_vm12, %v4104_v8, %v4108_v42  ;;  %v2345_v16 = vor.u32 %v2344_v51, %v2341_v24  ;;  %v4123_v41 = vrot.slane %v4121_v15, 4  ;;  %v4124_v10 = vshll.u32 %v3967_v2, 16  ;;  %v3970_v50 = vld [vmem:[#allocation2 + $0x94] sm:$0xf]  ;;  %v3971_v23 = vld [vmem:[#allocation2 + $0x98] sm:$0xf] }
 0x1c6   : > { %8644 = vmatprep.subr.bf16.mxu1 %v9152_v31  ;;  %8498 = vmatprep.mubr.msk.bf16.mxu0 %vm1628_vm1, %v7502_v29  ;;  %v4119_v36 = vsel %vm10338_vm12, %v4114_v40, %v4118_v25  ;;  %v2355_v9 = vor.u32 %v2354_v20, %v2350_v21  ;;  %v4130_v3 = vshll.u32 %v3968_v11, 16  ;;  %v4134_v59 = vshrl.u32 %v3968_v11, 16  ;;  %v921_v11 = vld [vmem:[#allocation2 + $0xc4] sm:$0x1] }
 0x1c7   : > { %v7648_v44 = vcombine.low %v4109_v46, %v4119_v36  ;;  %v2346_v56 = vrot.slane %v2345_v16, 4  ;;  %v4126_v54 = vrot.slane %v4124_v10, 5  ;;  %v4140_v14 = vshll.u32 %v3969_v48, 16  ;;  %v2146_v10 = vld [vmem:[#allocation2 + $0xbc] sm:$0xf] }
 0x1c8   : > { %v2142_v60 = vld [vmem:[#allocation2 + $0x9c] sm:$0x1]  ;;  %v2356_v39 = vrot.slane %v2355_v9, 4  ;;  %v4132_v38 = vrot.slane %v4130_v3, 5  ;;  %v4136_v35 = vrot.slane %v4134_v59, 4  ;;  %v919_v1 = vsel %vm9391_vm9, 0, %v918_v55 }
 0x1c9   : > { %8645 = vmatpush3.bf16.msra.mxu1 %v9152_v31  ;;  %8614 = vmatprep.mubr.msk.bf16.mxu1 %vm1628_vm1, %v7648_v44  ;;  %v2351_v53 = vsel %vm10338_vm12, %v2346_v56, %v2350_v21  ;;  %v2358_v43 = vshll.u32 %v2142_v60, 16  ;;  %v4127_v19 = vor.u32 %v4126_v54, %v4123_v41  ;;  %v4142_v42 = vrot.slane %v4140_v14, 5  ;;  %920 = vst [vmem:[#allocation2 + $0xb0] sm:$0x1] %v919_v1  ;;  %v3972_v24 = vld [vmem:[#allocation2 + $0x9c] sm:$0x1] }
 0x1ca   : > { %8678 = vmatprep.subr.bf16.mxu1 %v9153_v62  ;;  %v4137_v2 = vor.u32 %v4136_v35, %v4132_v38  ;;  %v2363_v49 = vshrl.u32 %v2143_v34, 16  ;;  %v2366_v27 = vshll.u32 %v2143_v34, 16  ;;  %v2372_v25 = vshll.u32 %v2144_v0, 16  ;;  %v2147_v55 = vld [vmem:[#allocation2 + $0xc0] sm:$0xf] }
 0x1cb   : > { %v2360_v58 = vrot.slane %v2358_v43, 5  ;;  %v4128_v6 = vrot.slane %v4127_v19, 4  ;;  %v2376_v47 = vshrl.u32 %v2144_v0, 16  ;;  %v4145_v57 = vshrl.u32 %v3970_v50, 16  ;;  %v3973_v54 = vld [vmem:[#allocation2 + $0xa8] sm:$0xf] }
 0x1cc   : > { %v4138_v13 = vrot.slane %v4137_v2, 4  ;;  %v2365_v31 = vrot.slane %v2363_v49, 4  ;;  %v2368_v18 = vrot.slane %v2366_v27, 5  ;;  %v2374_v37 = vrot.slane %v2372_v25, 5  ;;  %v3974_v2 = vld [vmem:[#allocation2 + $0xac] sm:$0xf] }
 0x1cd   : > { %v2361_v15 = vsel %vm10338_vm12, %v2356_v39, %v2360_v58  ;;  %v4133_v32 = vsel %vm10338_vm12, %v4128_v6, %v4132_v38  ;;  %v2378_v8 = vrot.slane %v2376_v47, 4  ;;  %v4147_v51 = vrot.slane %v4145_v57, 4 }
 0x1ce   : > { %v7503_v29 = vcombine.low %v2351_v53, %v2361_v15  ;;  %v4143_v40 = vsel %vm10338_vm12, %v4138_v13, %v4142_v42  ;;  %v2369_v21 = vor.u32 %v2368_v18, %v2365_v31  ;;  %v4148_v20 = vshll.u32 %v3970_v50, 16 }
 0x1cf   : > { %v7649_v48 = vcombine.low %v4133_v32, %v4143_v40  ;;  %v2379_v46 = vor.u32 %v2378_v8, %v2374_v37  ;;  %v4154_v16 = vshll.u32 %v3971_v23, 16  ;;  %v4158_v41 = vshrl.u32 %v3971_v23, 16  ;;  %v924_v8 = vld [vmem:[#allocation2 + $0xd8] sm:$0x1] }
 0x1d0   : > { %8499 = vmatmul.mubr.msk.bf16.gmra.mrb[44].mxu0 %vm1628_vm1, %v7503_v29  ;;  %v2145_v62 = vld [vmem:[#allocation2 + $0xb0] sm:$0x1]  ;;  %v2370_v36 = vrot.slane %v2369_v21, 4  ;;  %v4150_v9 = vrot.slane %v4148_v20, 5  ;;  %v4164_v3 = vshll.u32 %v3972_v24, 16  ;;  %v922_v59 = vsel %vm9391_vm9, 0, %v921_v11 }
 0x1d1   : > { %8615 = vmatmul.mubr.msk.bf16.gmra.mrb[28].mxu1 %vm1628_vm1, %v7649_v48  ;;  %v2380_v34 = vrot.slane %v2379_v46, 4  ;;  %v2382_v0 = vshll.u32 %v2145_v62, 16  ;;  %v4156_v44 = vrot.slane %v4154_v16, 5  ;;  %v4160_v56 = vrot.slane %v4158_v41, 4  ;;  %923 = vst [vmem:[#allocation2 + $0xc4] sm:$0x1] %v922_v59 }
 0x1d2   : > { %v2375_v14 = vsel %vm10338_vm12, %v2370_v36, %v2374_v37  ;;  %v4151_v50 = vor.u32 %v4150_v9, %v4147_v51  ;;  %v4166_v60 = vrot.slane %v4164_v3, 5  ;;  %v2387_v39 = vshrl.u32 %v2146_v10, 16  ;;  %v3975_v47 = vld [vmem:[#allocation2 + $0xb0] sm:$0x1]  ;;  %v2150_v41 = vld [vmem:[#allocation2 + $0xd4] sm:$0xf] }
 0x1d3   : > { %v2384_v38 = vrot.slane %v2382_v0, 5  ;;  %v4161_v35 = vor.u32 %v4160_v56, %v4156_v44  ;;  %v2390_v1 = vshll.u32 %v2146_v10, 16  ;;  %v2396_v53 = vshll.u32 %v2147_v55, 16  ;;  %v2149_v21 = vld [vmem:[#allocation2 + $0xd0] sm:$0xf] }
 0x1d4   : > { %v4152_v43 = vrot.slane %v4151_v50, 4  ;;  %v2389_v19 = vrot.slane %v2387_v39, 4  ;;  %v2400_v42 = vshrl.u32 %v2147_v55, 16  ;;  %v4169_v49 = vshrl.u32 %v3973_v54, 16  ;;  %v3976_v9 = vld [vmem:[#allocation2 + $0xbc] sm:$0xf] }
 0x1d5   : > { %v2385_v27 = vsel %vm10338_vm12, %v2380_v34, %v2384_v38  ;;  %v4162_v25 = vrot.slane %v4161_v35, 4  ;;  %v2392_v58 = vrot.slane %v2390_v1, 5  ;;  %v2398_v6 = vrot.slane %v2396_v53, 5  ;;  %v3977_v38 = vld [vmem:[#allocation2 + $0xc0] sm:$0xf] }
 0x1d6   : > { %v7504_v57 = vcombine.low %v2375_v14, %v2385_v27  ;;  %v4157_v13 = vsel %vm10338_vm12, %v4152_v43, %v4156_v44  ;;  %v2402_v31 = vrot.slane %v2400_v42, 4  ;;  %v4171_v18 = vrot.slane %v4169_v49, 4 }
 0x1d7   : > { %v4167_v37 = vsel %vm10338_vm12, %v4162_v25, %v4166_v60  ;;  %v2393_v23 = vor.u32 %v2392_v58, %v2389_v19  ;;  %v4172_v15 = vshll.u32 %v3973_v54, 16  ;;  %v4178_v32 = vshll.u32 %v3974_v2, 16  ;;  %v927_v58 = vld [vmem:[#allocation2 + $0xec] sm:$0x1] }
 0x1d8   : > { %8502 = vmatprep.mubr.msk.bf16.mxu0 %vm1628_vm1, %v7504_v57  ;;  %v7650_v24 = vcombine.low %v4157_v13, %v4167_v37  ;;  %v2148_v51 = vld [vmem:[#allocation2 + $0xc4] sm:$0x1]  ;;  %v2403_v11 = vor.u32 %v2402_v31, %v2398_v6  ;;  %v4182_v29 = vshrl.u32 %v3974_v2, 16  ;;  %v4188_v40 = vshll.u32 %v3975_v47, 16 }
 0x1d9   : > { %v2394_v20 = vrot.slane %v2393_v23, 4  ;;  %v2406_v48 = vshll.u32 %v2148_v51, 16  ;;  %v4174_v46 = vrot.slane %v4172_v15, 5  ;;  %v4180_v16 = vrot.slane %v4178_v32, 5  ;;  %v3978_v42 = vld [vmem:[#allocation2 + $0xc4] sm:$0x1] }
 0x1da   : > { %8618 = vmatprep.mubr.msk.bf16.mxu1 %vm1628_vm1, %v7650_v24  ;;  %v2404_v10 = vrot.slane %v2403_v11, 4  ;;  %v4184_v55 = vrot.slane %v4182_v29, 4  ;;  %v4190_v62 = vrot.slane %v4188_v40, 5  ;;  %v925_v36 = vsel %vm9391_vm9, 0, %v924_v8  ;;  %v2152_v15 = vld [vmem:[#allocation2 + $0xe4] sm:$0xf] }
 0x1db   : > { %v2399_v3 = vsel %vm10338_vm12, %v2394_v20, %v2398_v6  ;;  %v2408_v59 = vrot.slane %v2406_v48, 5  ;;  %v4175_v34 = vor.u32 %v4174_v46, %v4171_v18  ;;  %926 = vst [vmem:[#allocation2 + $0xd8] sm:$0x1] %v925_v36  ;;  %v2411_v0 = vshrl.u32 %v2149_v21, 16  ;;  %v2153_v32 = vld [vmem:[#allocation2 + $0xe8] sm:$0xf] }
 0x1dc   : > { %v4185_v44 = vor.u32 %v4184_v55, %v4180_v16  ;;  %v2414_v56 = vshll.u32 %v2149_v21, 16  ;;  %v2420_v54 = vshll.u32 %v2150_v41, 16  ;;  %v2424_v14 = vshrl.u32 %v2150_v41, 16  ;;  %v3979_v46 = vld [vmem:[#allocation2 + $0xd0] sm:$0xf] }
 0x1dd   : > { %v2409_v50 = vsel %vm10338_vm12, %v2404_v10, %v2408_v59  ;;  %v4176_v60 = vrot.slane %v4175_v34, 4  ;;  %v2413_v39 = vrot.slane %v2411_v0, 4  ;;  %v4193_v35 = vshrl.u32 %v3976_v9, 16 }
 0x1de   : > { %v7505_v1 = vcombine.low %v2399_v3, %v2409_v50  ;;  %v4186_v53 = vrot.slane %v4185_v44, 4  ;;  %v2416_v43 = vrot.slane %v2414_v56, 5  ;;  %v2422_v19 = vrot.slane %v2420_v54, 5  ;;  %v3980_v44 = vld [vmem:[#allocation2 + $0xd4] sm:$0xf] }
 0x1df   : > { %v4181_v2 = vsel %vm10338_vm12, %v4176_v60, %v4180_v16  ;;  %v2426_v49 = vrot.slane %v2424_v14, 4  ;;  %v4195_v27 = vrot.slane %v4193_v35, 4  ;;  %v4196_v25 = vshll.u32 %v3976_v9, 16 }
 0x1e0   : > { %8503 = vmatmul.mubr.msk.bf16.gmra.mrb[48].mxu0 %vm1628_vm1, %v7505_v1  ;;  %v4191_v6 = vsel %vm10338_vm12, %v4186_v53, %v4190_v62  ;;  %v2417_v47 = vor.u32 %v2416_v43, %v2413_v39  ;;  %v4202_v57 = vshll.u32 %v3977_v38, 16  ;;  %v4206_v13 = vshrl.u32 %v3977_v38, 16  ;;  %v930_v38 = vld [vmem:[#allocation2 + $0x100] sm:$0x1] }
 0x1e1   : > { %v7651_v31 = vcombine.low %v4181_v2, %v4191_v6  ;;  %v2427_v18 = vor.u32 %v2426_v49, %v2422_v19  ;;  %v4198_v37 = vrot.slane %v4196_v25, 5  ;;  %v4212_v23 = vshll.u32 %v3978_v42, 16  ;;  %v2156_v25 = vld [vmem:[#allocation2 + $0xfc] sm:$0xf] }
 0x1e2   : > { %v2151_v8 = vld [vmem:[#allocation2 + $0xd8] sm:$0x1]  ;;  %v2418_v24 = vrot.slane %v2417_v47, 4  ;;  %v4204_v51 = vrot.slane %v4202_v57, 5  ;;  %v4208_v11 = vrot.slane %v4206_v13, 4  ;;  %v928_v29 = vsel %vm9391_vm9, 0, %v927_v58 }
 0x1e3   : > { %8619 = vmatmul.mubr.msk.bf16.gmra.mrb[0].mxu1 %vm1628_vm1, %v7651_v31  ;;  %v2428_v40 = vrot.slane %v2427_v18, 4  ;;  %v2430_v21 = vshll.u32 %v2151_v8, 16  ;;  %v4199_v20 = vor.u32 %v4198_v37, %v4195_v27  ;;  %v4214_v48 = vrot.slane %v4212_v23, 5  ;;  %929 = vst [vmem:[#allocation2 + $0xec] sm:$0x1] %v928_v29 }
 0x1e4   : > { %v2423_v16 = vsel %vm10338_vm12, %v2418_v24, %v2422_v19  ;;  %v4209_v41 = vor.u32 %v4208_v11, %v4204_v51  ;;  %v2435_v10 = vshrl.u32 %v2152_v15, 16  ;;  %v2438_v55 = vshll.u32 %v2152_v15, 16  ;;  %v3981_v39 = vld [vmem:[#allocation2 + $0xd8] sm:$0x1]  ;;  %v3982_v15 = vld [vmem:[#allocation2 + $0xe4] sm:$0xf] }
 0x1e5   : > { %v2432_v62 = vrot.slane %v2430_v21, 5  ;;  %v4200_v36 = vrot.slane %v4199_v20, 4  ;;  %v2444_v9 = vshll.u32 %v2153_v32, 16  ;;  %v2448_v3 = vshrl.u32 %v2153_v32, 16  ;;  %v2155_v27 = vld [vmem:[#allocation2 + $0xf8] sm:$0xf] }
 0x1e6   : > { %v4210_v59 = vrot.slane %v4209_v41, 4  ;;  %v2437_v34 = vrot.slane %v2435_v10, 4  ;;  %v2440_v0 = vrot.slane %v2438_v55, 5  ;;  %v4217_v56 = vshrl.u32 %v3979_v46, 16 }
 0x1e7   : > { %v2433_v54 = vsel %vm10338_vm12, %v2428_v40, %v2432_v62  ;;  %v4205_v14 = vsel %vm10338_vm12, %v4200_v36, %v4204_v51  ;;  %v2446_v50 = vrot.slane %v2444_v9, 5  ;;  %v2450_v60 = vrot.slane %v2448_v3, 4 }
 0x1e8   : > { %v7506_v35 = vcombine.low %v2423_v16, %v2433_v54  ;;  %v4215_v1 = vsel %vm10338_vm12, %v4210_v59, %v4214_v48  ;;  %v2441_v53 = vor.u32 %v2440_v0, %v2437_v34  ;;  %v4219_v43 = vrot.slane %v4217_v56, 4  ;;  %v3983_v16 = vld [vmem:[#allocation2 + $0xe8] sm:$0xf] }
 0x1e9   : > { %v7652_v19 = vcombine.low %v4205_v14, %v4215_v1  ;;  %v2451_v42 = vor.u32 %v2450_v60, %v2446_v50  ;;  %v4220_v2 = vshll.u32 %v3979_v46, 16  ;;  %v4226_v49 = vshll.u32 %v3980_v44, 16 }
 0x1ea   : > { %8506 = vmatprep.mubr.msk.bf16.mxu0 %vm1628_vm1, %v7506_v35  ;;  %v2154_v58 = vld [vmem:[#allocation2 + $0xec] sm:$0x1]  ;;  %v2442_v6 = vrot.slane %v2441_v53, 4  ;;  %v4230_v47 = vshrl.u32 %v3980_v44, 16  ;;  %v4236_v57 = vshll.u32 %v3981_v39, 16  ;;  %v931_v13 = vsel %vm9391_vm9, 0, %v930_v38 }
 0x1eb   : > { %8622 = vmatprep.mubr.msk.bf16.mxu1 %vm1628_vm1, %v7652_v19  ;;  %v2452_v31 = vrot.slane %v2451_v42, 4  ;;  %v2454_v18 = vshll.u32 %v2154_v58, 16  ;;  %v4222_v37 = vrot.slane %v4220_v2, 5  ;;  %v4228_v23 = vrot.slane %v4226_v49, 5  ;;  %932 = vst [vmem:[#allocation2 + $0x100] sm:$0x1] %v931_v13 }
 0x1ec   : > { %v2447_v32 = vsel %vm10338_vm12, %v2442_v6, %v2446_v50  ;;  %v4232_v8 = vrot.slane %v4230_v47, 4  ;;  %v4238_v24 = vrot.slane %v4236_v57, 5  ;;  %v2459_v51 = vshrl.u32 %v2155_v27, 16  ;;  %v3984_v9 = vld [vmem:[#allocation2 + $0xec] sm:$0x1] }
 0x1ed   : > { %v2456_v11 = vrot.slane %v2454_v18, 5  ;;  %v4223_v29 = vor.u32 %v4222_v37, %v4219_v43  ;;  %v2462_v40 = vshll.u32 %v2155_v27, 16  ;;  %v2468_v21 = vshll.u32 %v2156_v25, 16  ;;  %v933_v50 = vld [vmem:[#allocation2 + $0x114] sm:$0x1] }
 0x1ee   : > { %v4233_v20 = vor.u32 %v4232_v8, %v4228_v23  ;;  %v2461_v48 = vrot.slane %v2459_v51, 4  ;;  %v2472_v46 = vshrl.u32 %v2156_v25, 16  ;;  %v4241_v41 = vshrl.u32 %v3982_v15, 16  ;;  %v2158_v53 = vld [vmem:[#allocation2 + $0x10c] sm:$0xf] }
 0x1ef   : > { %v2457_v10 = vsel %vm10338_vm12, %v2452_v31, %v2456_v11  ;;  %v4224_v55 = vrot.slane %v4223_v29, 4  ;;  %v2464_v62 = vrot.slane %v2462_v40, 5  ;;  %v2470_v36 = vrot.slane %v2468_v21, 5  ;;  %v2159_v49 = vld [vmem:[#allocation2 + $0x110] sm:$0xf] }
 0x1f0   : > { %v7507_v3 = vcombine.low %v2447_v32, %v2457_v10  ;;  %v4234_v59 = vrot.slane %v4233_v20, 4  ;;  %v2474_v34 = vrot.slane %v2472_v46, 4  ;;  %v4243_v0 = vrot.slane %v4241_v41, 4  ;;  %v3985_v47 = vld [vmem:[#allocation2 + $0xf8] sm:$0xf] }
 0x1f1   : > { %v4229_v44 = vsel %vm10338_vm12, %v4224_v55, %v4228_v23  ;;  %v2465_v56 = vor.u32 %v2464_v62, %v2461_v48  ;;  %v4244_v54 = vshll.u32 %v3982_v15, 16  ;;  %v4250_v14 = vshll.u32 %v3983_v16, 16  ;;  %v3986_v11 = vld [vmem:[#allocation2 + $0xfc] sm:$0xf]  ;;  %v936_v62 = vld [vmem:[#allocation2 + $0x128] sm:$0x1] }
 0x1f2   : > { %8507 = vmatmul.mubr.msk.bf16.gmra.mrb[52].mxu0 %vm1628_vm1, %v7507_v3  ;;  %v4239_v60 = vsel %vm10338_vm12, %v4234_v59, %v4238_v24  ;;  %v2157_v39 = vld [vmem:[#allocation2 + $0x100] sm:$0x1]  ;;  %v2475_v38 = vor.u32 %v2474_v34, %v2470_v36  ;;  %v4254_v35 = vshrl.u32 %v3983_v16, 16  ;;  %v4260_v1 = vshll.u32 %v3984_v9, 16 }
 0x1f3   : > { %v7653_v43 = vcombine.low %v4229_v44, %v4239_v60  ;;  %v2466_v19 = vrot.slane %v2465_v56, 4  ;;  %v2478_v42 = vshll.u32 %v2157_v39, 16  ;;  %v4246_v2 = vrot.slane %v4244_v54, 5  ;;  %v3987_v46 = vld [vmem:[#allocation2 + $0x100] sm:$0x1] }
 0x1f4   : > { %v2476_v27 = vrot.slane %v2475_v38, 4  ;;  %v4252_v25 = vrot.slane %v4250_v14, 5  ;;  %v4256_v58 = vrot.slane %v4254_v35, 4  ;;  %v4262_v6 = vrot.slane %v4260_v1, 5  ;;  %v2161_v34 = vld [vmem:[#allocation2 + $0x120] sm:$0xf] }
 0x1f5   : > { %8623 = vmatmul.mubr.msk.bf16.gmra.mrb[4].mxu1 %vm1628_vm1, %v7653_v43  ;;  %v2471_v57 = vsel %vm10338_vm12, %v2466_v19, %v2470_v36  ;;  %v2480_v13 = vrot.slane %v2478_v42, 5  ;;  %v4247_v31 = vor.u32 %v4246_v2, %v4243_v0  ;;  %v934_v18 = vsel %vm9391_vm9, 0, %v933_v50  ;;  %v3988_v14 = vld [vmem:[#allocation2 + $0x10c] sm:$0xf]  ;;  %v2162_v35 = vld [vmem:[#allocation2 + $0x124] sm:$0xf] }
 0x1f6   : > { %v4257_v37 = vor.u32 %v4256_v58, %v4252_v25  ;;  %935 = vst [vmem:[#allocation2 + $0x114] sm:$0x1] %v934_v18  ;;  %v2483_v23 = vshrl.u32 %v2158_v53, 16  ;;  %v2486_v15 = vshll.u32 %v2158_v53, 16  ;;  %v2492_v32 = vshll.u32 %v2159_v49, 16 }
 0x1f7   : > { %v2481_v8 = vsel %vm10338_vm12, %v2476_v27, %v2480_v13  ;;  %v4248_v24 = vrot.slane %v4247_v31, 4  ;;  %v2496_v51 = vshrl.u32 %v2159_v49, 16  ;;  %v4265_v29 = vshrl.u32 %v3985_v47, 16 }
 0x1f8   : > { %v7508_v40 = vcombine.low %v2471_v57, %v2481_v8  ;;  %v4258_v21 = vrot.slane %v4257_v37, 4  ;;  %v2485_v20 = vrot.slane %v2483_v23, 4  ;;  %v2488_v48 = vrot.slane %v2486_v15, 5  ;;  %v3989_v8 = vld [vmem:[#allocation2 + $0x110] sm:$0xf] }
 0x1f9   : > { %v4253_v16 = vsel %vm10338_vm12, %v4248_v24, %v4252_v25  ;;  %v2494_v41 = vrot.slane %v2492_v32, 5  ;;  %v2498_v10 = vrot.slane %v2496_v51, 4  ;;  %v4267_v55 = vrot.slane %v4265_v29, 4 }
 0x1fa   : > { %8510 = vmatprep.mubr.msk.bf16.mxu0 %vm1628_vm1, %v7508_v40  ;;  %v4263_v36 = vsel %vm10338_vm12, %v4258_v21, %v4262_v6  ;;  %v2489_v9 = vor.u32 %v2488_v48, %v2485_v20  ;;  %v4268_v3 = vshll.u32 %v3985_v47, 16  ;;  %v4274_v59 = vshll.u32 %v3986_v11, 16 }
 0x1fb   : > { %v7654_v0 = vcombine.low %v4253_v16, %v4263_v36  ;;  %v2499_v44 = vor.u32 %v2498_v10, %v2494_v41  ;;  %v4278_v56 = vshrl.u32 %v3986_v11, 16  ;;  %v4284_v54 = vshll.u32 %v3987_v46, 16  ;;  %v2164_v10 = vld [vmem:[#allocation2 + $0x134] sm:$0xf] }
 0x1fc   : > { %v2490_v50 = vrot.slane %v2489_v9, 4  ;;  %v4270_v60 = vrot.slane %v4268_v3, 5  ;;  %v4276_v39 = vrot.slane %v4274_v59, 5  ;;  %v937_v38 = vsel %vm9391_vm9, 0, %v936_v62 }
 0x1fd   : > { %8626 = vmatprep.mubr.msk.bf16.mxu1 %vm1628_vm1, %v7654_v0  ;;  %v2160_v1 = vld [vmem:[#allocation2 + $0x114] sm:$0x1]  ;;  %v2500_v53 = vrot.slane %v2499_v44, 4  ;;  %v4280_v43 = vrot.slane %v4278_v56, 4  ;;  %v4286_v19 = vrot.slane %v4284_v54, 5  ;;  %v2507_v42 = vshrl.u32 %v2161_v34, 16 }
 0x1fe   : > { %938 = vst [vmem:[#allocation2 + $0x128] sm:$0x1] %v937_v38  ;;  %v2495_v2 = vsel %vm10338_vm12, %v2490_v50, %v2494_v41  ;;  %v2502_v49 = vshll.u32 %v2160_v1, 16  ;;  %v4271_v27 = vor.u32 %v4270_v60, %v4267_v55  ;;  %v2510_v25 = vshll.u32 %v2161_v34, 16  ;;  %v3990_v40 = vld [vmem:[#allocation2 + $0x114] sm:$0x1] }
 0x1ff   : > { %v4281_v58 = vor.u32 %v4280_v43, %v4276_v39  ;;  %v2509_v6 = vrot.slane %v2507_v42, 4  ;;  %v2516_v47 = vshll.u32 %v2162_v35, 16  ;;  %v2520_v57 = vshrl.u32 %v2162_v35, 16  ;;  %v939_v41 = vld [vmem:[#allocation2 + $0x13c] sm:$0x1] }
 0x200   : > { %v2504_v13 = vrot.slane %v2502_v49, 5  ;;  %v4272_v31 = vrot.slane %v4271_v27, 4  ;;  %v2512_v18 = vrot.slane %v2510_v25, 5  ;;  %v4289_v37 = vshrl.u32 %v3988_v14, 16  ;;  %v2165_v56 = vld [vmem:[#allocation2 + $0x138] sm:$0xf] }
 0x201   : > { %v4282_v23 = vrot.slane %v4281_v58, 4  ;;  %v2518_v15 = vrot.slane %v2516_v47, 5  ;;  %v2522_v32 = vrot.slane %v2520_v57, 4  ;;  %v4292_v24 = vshll.u32 %v3988_v14, 16  ;;  %v3992_v49 = vld [vmem:[#allocation2 + $0x124] sm:$0xf] }
 0x202   : > { %v2505_v51 = vsel %vm10338_vm12, %v2500_v53, %v2504_v13  ;;  %v4277_v11 = vsel %vm10338_vm12, %v4272_v31, %v4276_v39  ;;  %v2513_v29 = vor.u32 %v2512_v18, %v2509_v6  ;;  %v4291_v21 = vrot.slane %v4289_v37, 4  ;;  %v3991_v39 = vld [vmem:[#allocation2 + $0x120] sm:$0xf] }
 0x203   : > { %v7509_v20 = vcombine.low %v2495_v2, %v2505_v51  ;;  %v4287_v48 = vsel %vm10338_vm12, %v4282_v23, %v4286_v19  ;;  %v2523_v46 = vor.u32 %v2522_v32, %v2518_v15  ;;  %v4294_v16 = vrot.slane %v4292_v24, 5 }
 0x204   : > { %v7655_v55 = vcombine.low %v4277_v11, %v4287_v48  ;;  %v2514_v36 = vrot.slane %v2513_v29, 4  ;;  %v4298_v9 = vshll.u32 %v3989_v8, 16  ;;  %v4302_v3 = vshrl.u32 %v3989_v8, 16  ;;  %v2876_v8 = vld [vmem:[#allocation2 + $0x18] sm:$0x8] }
 0x205   : > { %v2163_v62 = vld [vmem:[#allocation2 + $0x128] sm:$0x1]  ;;  %8511 = vmatmul.mubr.msk.bf16.gmra.mrb[56].mxu0 %vm1628_vm1, %v7509_v20  ;;  %v2524_v59 = vrot.slane %v2523_v46, 4  ;;  %v4295_v0 = vor.u32 %v4294_v16, %v4291_v21  ;;  %v4308_v44 = vshll.u32 %v3990_v40, 16  ;;  %v940_v60 = vsel %vm9391_vm9, 0, %v939_v41 }
 0x206   : > { %v2526_v34 = vshll.u32 %v2163_v62, 16  ;;  %8627 = vmatmul.mubr.msk.bf16.gmra.mrb[8].mxu1 %vm1628_vm1, %v7655_v55  ;;  %v2519_v54 = vsel %vm10338_vm12, %v2514_v36, %v2518_v15  ;;  %v4300_v14 = vrot.slane %v4298_v9, 5  ;;  %v4304_v50 = vrot.slane %v4302_v3, 4  ;;  %941 = vst [vmem:[#allocation2 + $0x13c] sm:$0x1] %v940_v60 }
 0x207   : > { %v4296_v35 = vrot.slane %v4295_v0, 4  ;;  %v4310_v1 = vrot.slane %v4308_v44, 5  ;;  %v2531_v53 = vshrl.u32 %v2164_v10, 16  ;;  %v2534_v19 = vshll.u32 %v2164_v10, 16  ;;  %v3993_v6 = vld [vmem:[#allocation2 + $0x128] sm:$0x1] }
 0x208   : > { %v2528_v38 = vrot.slane %v2526_v34, 5  ;;  %v4305_v43 = vor.u32 %v4304_v50, %v4300_v14  ;;  %v2540_v42 = vshll.u32 %v2165_v56, 16  ;;  %v2544_v2 = vshrl.u32 %v2165_v56, 16  ;;  %v3994_v46 = vld [vmem:[#allocation2 + $0x134] sm:$0xf] }
 0x209   : > { %v4301_v25 = vsel %vm10338_vm12, %v4296_v35, %v4300_v14  ;;  %v2533_v58 = vrot.slane %v2531_v53, 4  ;;  %v4313_v47 = vshrl.u32 %v3991_v39, 16  ;;  %v2536_v31 = vrot.slane %v2534_v19, 5  ;;  %v3995_v0 = vld [vmem:[#allocation2 + $0x138] sm:$0xf] }
 0x20a   : > { %v2529_v27 = vsel %vm10338_vm12, %v2524_v59, %v2528_v38  ;;  %v4306_v13 = vrot.slane %v4305_v43, 4  ;;  %v2542_v18 = vrot.slane %v2540_v42, 5  ;;  %v2546_v37 = vrot.slane %v2544_v2, 4 }
 0x20b   : > { %v7510_v57 = vcombine.low %v2519_v54, %v2529_v27  ;;  %v4315_v23 = vrot.slane %v4313_v47, 4  ;;  %v4316_v15 = vshll.u32 %v3991_v39, 16  ;;  %v4322_v32 = vshll.u32 %v3992_v49, 16 }
 0x20c   : > { %v4311_v24 = vsel %vm10338_vm12, %v4306_v13, %v4310_v1  ;;  %v2537_v51 = vor.u32 %v2536_v31, %v2533_v58  ;;  %v4326_v11 = vshrl.u32 %v3992_v49, 16  ;;  %v4332_v29 = vshll.u32 %v3993_v6, 16  ;;  %v942_v6 = vld [vmem:[#allocation2 + $0x150] sm:$0x1] }
 0x20d   : > { %8514 = vmatprep.mubr.msk.bf16.mxu0 %vm1628_vm1, %v7510_v57  ;;  %v7656_v40 = vcombine.low %v4301_v25, %v4311_v24  ;;  %v2547_v21 = vor.u32 %v2546_v37, %v2542_v18  ;;  %v4318_v20 = vrot.slane %v4316_v15, 5  ;;  %v4324_v48 = vrot.slane %v4322_v32, 5  ;;  %v2166_v16 = vld [vmem:[#allocation2 + $0x13c] sm:$0x1]  ;;  %v3998_v24 = vld [vmem:[#allocation2 + $0x14c] sm:$0xf] }
 0x20e   : > { %v2538_v41 = vrot.slane %v2537_v51, 4  ;;  %v4328_v10 = vrot.slane %v4326_v11, 4  ;;  %v4334_v55 = vrot.slane %v4332_v29, 5  ;;  %v2925_v62 = vshrl.u32 %v2876_v8, 16  ;;  %v3996_v53 = vld [vmem:[#allocation2 + $0x13c] sm:$0x1] }
 0x20f   : > { %8630 = vmatprep.mubr.msk.bf16.mxu1 %vm1628_vm1, %v7656_v40  ;;  %v2548_v36 = vrot.slane %v2547_v21, 4  ;;  %v2550_v9 = vshll.u32 %v2166_v16, 16  ;;  %v4319_v3 = vor.u32 %v4318_v20, %v4315_v23  ;;  %v11640_v59 = vshll.u32 %v9978_v17, 16 }
 0x210   : > { %v2543_v44 = vsel %vm10338_vm12, %v2538_v41, %v2542_v18  ;;  %v4329_v56 = vor.u32 %v4328_v10, %v4324_v48  ;;  %v7532_v54 = vrot.slane %v2925_v62, 11  ;;  %v2937_v14 = vrot.slane %v10017_v4, 4  ;;  %v3997_v18 = vld [vmem:[#allocation2 + $0x148] sm:$0xf] }
 0x211   : > { %v2935_v34 = vor.u32 %v11640_v59, %v10017_v4  ;;  %v2552_v50 = vrot.slane %v2550_v9, 5  ;;  %v4320_v60 = vrot.slane %v4319_v3, 4  ;;  %v11641_v39 = vshll.u32 %v9989_v22, 16  ;;  %v2879_v22 = vld [vmem:[#allocation2 + $0x2c] sm:$0x8] }
 0x212   : > { %v4337_v35 = vshrl.u32 %v3994_v46, 16  ;;  %v4330_v1 = vrot.slane %v4329_v56, 4  ;;  %v4340_v43 = vshll.u32 %v3994_v46, 16  ;;  %v4346_v19 = vshll.u32 %v3995_v0, 16  ;;  %v4707_v9 = vld [vmem:[#allocation2 + $0x2c] sm:$0x8] }
 0x213   : > { %v2944_v38 = vor.u32 %v11641_v39, %v10024_v26  ;;  %v2936_v17 = vsel %vm9387_vm8, %v7532_v54, %v2935_v34  ;;  %v2553_v42 = vsel %vm10338_vm12, %v2548_v36, %v2552_v50  ;;  %v4325_v4 = vsel %vm10338_vm12, %v4320_v60, %v4324_v48 }
 0x214   : > { %v4339_v49 = vrot.slane %v4337_v35, 4  ;;  %v7511_v26 = vcombine.low %v2543_v44, %v2553_v42  ;;  %v4335_v27 = vsel %vm10338_vm12, %v4330_v1, %v4334_v55  ;;  %v4342_v58 = vrot.slane %v4340_v43, 5  ;;  %v2882_v55 = vld [vmem:[#allocation2 + $0x40] sm:$0x8]  ;;  %v10616_v44 = vld [vmem:[#allocation2 + $0x30] sm:$0xf] }
 0x215   : > { %v2945_v2 = vsel %vm9387_vm8, %v2937_v14, %v2944_v38  ;;  %v7657_v47 = vcombine.low %v4325_v4, %v4335_v27  ;;  %v4348_v57 = vrot.slane %v4346_v19, 5  ;;  %v4350_v13 = vshrl.u32 %v3995_v0, 16  ;;  %v11645_v35 = vld [vmem:[#allocation56_spill] sm:$0xff] }
 0x216   : > { %v7556_v25 = vcombine.low %v2936_v17, %v2945_v2  ;;  %v4356_v31 = vshll.u32 %v3996_v53, 16  ;;  %8515 = vmatmul.mubr.msk.bf16.gmra.mrb[60].mxu0 %vm1628_vm1, %v7511_v26  ;;  %v4343_v37 = vor.u32 %v4342_v58, %v4339_v49  ;;  %v2947_v23 = vshrl.u32 %v2879_v22, 16  ;;  %v10627_v53 = vld [vmem:[#allocation2 + $0x34] sm:$0xf] }
 0x217   : > { %v11642_v15 = vshll.u32 %v10008_v30, 16  ;;  %v2959_v8 = vrot.slane %v10049_v12, 4  ;;  %8631 = vmatmul.mubr.msk.bf16.gmra.mrb[12].mxu1 %vm1628_vm1, %v7657_v47  ;;  %v4352_v51 = vrot.slane %v4350_v13, 4  ;;  %v11643_v29 = vshll.u32 %v10022_v52, 16  ;;  %v2885_v2 = vld [vmem:[#allocation2 + $0x54] sm:$0x8] }
 0x218   : > { %8526 = vmatprep.mubr.msk.bf16.mxu0 %vm1628_vm1, %v7556_v25  ;;  %v4358_v11 = vrot.slane %v4356_v31, 5  ;;  %v943_v21 = vsel %vm9391_vm9, 0, %v942_v6  ;;  %v4344_v20 = vrot.slane %v4343_v37, 4  ;;  %v7533_v48 = vrot.slane %v2947_v23, 11  ;;  %v10639_v47 = vld [vmem:[#allocation2 + $0x44] sm:$0xf] }
 0x219   : > { %v2957_v32 = vor.u32 %v11642_v15, %v10049_v12  ;;  %v2966_v40 = vor.u32 %v11643_v29, %v10058_v61  ;;  %944 = vst [vmem:[#allocation2 + $0x150] sm:$0x1] %v943_v21  ;;  %v4361_v30 = vshrl.u32 %v3997_v18, 16  ;;  %v4364_v46 = vshll.u32 %v3997_v18, 16  ;;  %v4710_v37 = vld [vmem:[#allocation2 + $0x40] sm:$0x8] }
 0x21a   : > { %v4353_v12 = vor.u32 %v4352_v51, %v4348_v57  ;;  %v4370_v41 = vshll.u32 %v3998_v24, 16  ;;  %v4374_v10 = vshrl.u32 %v3998_v24, 16  ;;  %v4349_v62 = vsel %vm10338_vm12, %v4344_v20, %v4348_v57  ;;  %v11648_v24 = vld [vmem:[#allocation57_spill] sm:$0xff]  ;;  %v11650_v20 = vld [vmem:[#allocation62_spill] sm:$0xff] }
 0x21b   : > { %v2967_v16 = vsel %vm9387_vm8, %v2959_v8, %v2966_v40  ;;  %v2958_v52 = vsel %vm9387_vm8, %v7533_v48, %v2957_v32  ;;  %v4363_v61 = vrot.slane %v4361_v30, 4  ;;  %v4366_v36 = vrot.slane %v4364_v46, 5  ;;  %v11647_v8 = vld [vmem:[#allocation61_spill] sm:$0xff]  ;;  %v11651_v48 = vld [vmem:[#allocation58_spill] sm:$0xff] }
 0x21c   : > { %v4354_v3 = vrot.slane %v4353_v12, 4  ;;  %v7557_v59 = vcombine.low %v2958_v52, %v2967_v16  ;;  %v4372_v34 = vrot.slane %v4370_v41, 5  ;;  %v4376_v0 = vrot.slane %v4374_v10, 4  ;;  %v10655_v41 = vld [vmem:[#allocation2 + $0x48] sm:$0xf] }
 0x21d   : > { %v4367_v56 = vor.u32 %v4366_v36, %v4363_v61  ;;  %v2969_v54 = vshrl.u32 %v2882_v55, 16  ;;  %v11644_v14 = vshll.u32 %v10035_v28, 16  ;;  %v2981_v60 = vrot.slane %v10076_v45, 4 }
 0x21e   : > { %v4359_v39 = vsel %vm10338_vm12, %v4354_v3, %v4358_v11  ;;  %v4377_v38 = vor.u32 %v4376_v0, %v4372_v34  ;;  %v11646_v1 = vshll.u32 %v11645_v35, 16  ;;  %v4756_v43 = vshrl.u32 %v4707_v9, 16  ;;  %8527 = vmatmul.mubr.msk.bf16.vlgmr.msra.gmra.mrb[32].mxu0 %vm1628_vm1, %v7557_v59 }
 0x21f   : > { %v2979_v50 = vor.u32 %v11644_v14, %v10076_v45  ;;  %v7658_v19 = vcombine.low %v4349_v62, %v4359_v39  ;;  %v4368_v42 = vrot.slane %v4367_v56, 4  ;;  %v7534_v4 = vrot.slane %v2969_v54, 11  ;;  %v2888_v62 = vld [vmem:[#allocation2 + $0x68] sm:$0x8]  ;;  %v10663_v56 = vld [vmem:[#allocation2 + $0x58] sm:$0xf] }
 0x220   : > { %v2988_v17 = vor.u32 %v11646_v1, %v10083_v63  ;;  %v4761_v28 = vshrl.u32 %v10616_v44, 16  ;;  %v3999_v45 = vld [vmem:[#allocation2 + $0x150] sm:$0x1]  ;;  %v4378_v49 = vrot.slane %v4377_v38, 4  ;;  %v7680_v26 = vrot.slane %v4756_v43, 11  ;;  %v11654_v43 = vld [vmem:[#allocation59_spill] sm:$0xff] }
 0x221   : > { %v4764_v27 = vshll.u32 %v10616_v44, 16  ;;  %8634 = vmatprep.mubr.msk.bf16.mxu1 %vm1628_vm1, %v7658_v19  ;;  %v4373_v63 = vsel %vm10338_vm12, %v4368_v42, %v4372_v34  ;;  %v4380_v25 = vshll.u32 %v3999_v45, 16  ;;  %v2980_v58 = vsel %vm9387_vm8, %v7534_v4, %v2979_v50  ;;  %v4713_v39 = vld [vmem:[#allocation2 + $0x54] sm:$0x8]  ;;  %v10674_v4 = vld [vmem:[#allocation2 + $0x5c] sm:$0xf] }
 0x222   : > { %v2989_v22 = vsel %vm9387_vm8, %v2981_v60, %v2988_v17  ;;  %v4763_v6 = vrot.slane %v4761_v28, 7  ;;  %v4770_v13 = vshrl.u32 %v10627_v53, 16  ;;  %v4773_v31 = vshll.u32 %v10627_v53, 16  ;;  %v11653_v17 = vld [vmem:[#allocation5_spill] sm:$0xff] }
 0x223   : > { %v7558_v57 = vcombine.low %v2980_v58, %v2989_v22  ;;  %v2991_v18 = vshrl.u32 %v2885_v2, 16  ;;  %v4382_v23 = vrot.slane %v4380_v25, 5  ;;  %v11649_v51 = vshll.u32 %v11648_v24, 16  ;;  %v11657_v22 = vld [vmem:[#allocation60_spill] sm:$0xff]  ;;  %v4716_v24 = vld [vmem:[#allocation2 + $0x68] sm:$0x8] }
 0x224   : > { %v4766_v15 = vor.u32 %v4764_v27, %v4763_v6  ;;  %v4768_v32 = vrot.slane %v4763_v6, 4  ;;  %v4772_v29 = vrot.slane %v4770_v13, 7  ;;  %v3003_v21 = vrot.slane %v11647_v8, 4 }
 0x225   : > { %v3001_v11 = vor.u32 %v11649_v51, %v11647_v8  ;;  %8530 = vmatprep.mubr.msk.bf16.mxu0 %vm1628_vm1, %v7558_v57  ;;  %v7535_v40 = vrot.slane %v2991_v18, 11  ;;  %v11652_v30 = vshll.u32 %v11651_v48, 16  ;;  %v4383_v12 = vsel %vm10338_vm12, %v4378_v49, %v4382_v23  ;;  %v11656_v49 = vld [vmem:[#allocation19_spill] sm:$0xff]  ;;  %v2891_v57 = vld [vmem:[#allocation2 + $0x7c] sm:$0x8] }
 0x226   : > { %v4767_v16 = vsel %vm9387_vm8, %v7680_v26, %v4766_v15  ;;  %v4778_v10 = vshrl.u32 %v4710_v37, 16  ;;  %v4783_v55 = vshrl.u32 %v10639_v47, 16  ;;  %v7659_v52 = vcombine.low %v4373_v63, %v4383_v12 }
 0x227   : > { %v3010_v46 = vor.u32 %v11652_v30, %v11650_v20  ;;  %v4775_v61 = vor.u32 %v4773_v31, %v4772_v29  ;;  %v3002_v36 = vsel %vm9387_vm8, %v7535_v40, %v3001_v11  ;;  %v4786_v0 = vshll.u32 %v10639_v47, 16  ;;  %v11659_v40 = vld [vmem:[#allocation15_spill] sm:$0xff] }
 0x228   : > { %v7681_v59 = vrot.slane %v4778_v10, 11  ;;  %v4785_v34 = vrot.slane %v4783_v55, 7  ;;  %8635 = vmatmul.mubr.msk.bf16.gmra.mrb[16].mxu1 %vm1628_vm1, %v7659_v52  ;;  %v4792_v14 = vshrl.u32 %v10655_v41, 16  ;;  %v4795_v50 = vshll.u32 %v10655_v41, 16  ;;  %v10696_v30 = vld [vmem:[#allocation2 + $0x6c] sm:$0xf] }
 0x229   : > { %v3011_v9 = vsel %vm9387_vm8, %v3003_v21, %v3010_v46  ;;  %v4776_v54 = vsel %vm9387_vm8, %v4768_v32, %v4775_v61  ;;  %v3013_v60 = vshrl.u32 %v2888_v62, 16  ;;  %v11655_v19 = vshll.u32 %v11654_v43, 16  ;;  %v11660_v21 = vld [vmem:[#allocation13_spill] sm:$0xff]  ;;  %v10698_v46 = vld [vmem:[#allocation2 + $0x70] sm:$0xf]  ;;  %v9154_v62 = vld [vmem:[%s11402_s4 + $0xe8] sm:$0xff]  }
 0x22a   : > { %v7559_v3 = vcombine.low %v3002_v36, %v3011_v9  ;;  %v7704_v38 = vcombine.low %v4767_v16, %v4776_v54  ;;  %v4788_v35 = vor.u32 %v4786_v0, %v4785_v34  ;;  %v4790_v1 = vrot.slane %v4785_v34, 4  ;;  %v11662_v36 = vld [vmem:[#allocation7_spill] sm:$0xff]  ;;  %v11663_v9 = vld [vmem:[#allocation12_spill] sm:$0xff]  ;;  %v4719_v0 = vld [vmem:[#allocation2 + $0x7c] sm:$0x8] }
 0x22b   : > { %v3023_v42 = vor.u32 %v11655_v19, %v11653_v17  ;;  %v4794_v28 = vrot.slane %v4792_v14, 7  ;;  %v7536_v2 = vrot.slane %v3013_v60, 11  ;;  %v3025_v45 = vrot.slane %v11653_v17, 4  ;;  %v10725_v19 = vld [vmem:[#allocation2 + $0x84] sm:$0xf] }
 0x22c   : > { %8531 = vmatmul.mubr.msk.bf16.gmra.mrb[36].mxu0 %vm1628_vm1, %v7559_v3  ;;  %v11658_v26 = vshll.u32 %v11657_v22, 16  ;;  %8646 = vmatprep.mubr.msk.bf16.mxu1 %vm1628_vm1, %v7704_v38  ;;  %v4789_v63 = vsel %vm9387_vm8, %v7681_v59, %v4788_v35  ;;  %v4800_v25 = vshrl.u32 %v4713_v39, 16  ;;  %v4805_v58 = vshrl.u32 %v10663_v56, 16  ;;  %v10714_v39 = vld [vmem:[#allocation2 + $0x80] sm:$0xf]  ;;  %v9155_v22 = vld [vmem:[%s11402_s4 + $0xf0] sm:$0xff]  }
 0x22d   : > { %v4808_v6 = vshll.u32 %v10663_v56, 16  ;;  %v4797_v13 = vor.u32 %v4795_v50, %v4794_v28  ;;  %v3024_v31 = vsel %vm9387_vm8, %v7536_v2, %v3023_v42  ;;  %v4814_v37 = vshrl.u32 %v10674_v4, 16  ;;  %v9185_v38 = vld [vmem:[%s11402_s4 + $0xe0] sm:$0xff]  }
 0x22e   : > { %v3032_v27 = vor.u32 %v11658_v26, %v11656_v49  ;;  %v7682_v15 = vrot.slane %v4800_v25, 11  ;;  %v4807_v32 = vrot.slane %v4805_v58, 7  ;;  %v4817_v8 = vshll.u32 %v10674_v4, 16  ;;  %v4722_v49 = vld [vmem:[#allocation2 + $0x90] sm:$0x8] }
 0x22f   : > { %v4798_v51 = vsel %vm9387_vm8, %v4790_v1, %v4797_v13  ;;  %v4816_v11 = vrot.slane %v4814_v37, 7  ;;  %v3035_v29 = vshrl.u32 %v2891_v57, 16  ;;  %v11661_v20 = vshll.u32 %v11660_v21, 16  ;;  %v10733_v58 = vld [vmem:[#allocation2 + $0x94] sm:$0xf]  ;;  %v9156_v21 = vld [vmem:[%s11402_s4 + $0xf8] sm:$0xff]  }
 0x230   : > { %v3033_v18 = vsel %vm9387_vm8, %v3025_v45, %v3032_v27  ;;  %v7705_v12 = vcombine.low %v4789_v63, %v4798_v51  ;;  %v4810_v16 = vor.u32 %v4808_v6, %v4807_v32  ;;  %v4812_v10 = vrot.slane %v4807_v32, 4  ;;  %v10741_v32 = vld [vmem:[#allocation2 + $0x98] sm:$0xf] }
 0x231   : > { %v7560_v23 = vcombine.low %v3024_v31, %v3033_v18  ;;  %v3045_v48 = vor.u32 %v11661_v20, %v11659_v40  ;;  %v3047_v55 = vrot.slane %v11659_v40, 4  ;;  %v4819_v52 = vor.u32 %v4817_v8, %v4816_v11  ;;  %v10739_v18 = vld [vmem:[#allocation2 + $0xa8] sm:$0xf]  ;;  %v4725_v40 = vld [vmem:[#allocation2 + $0xa4] sm:$0x8] }
 0x232   : > { %v7537_v61 = vrot.slane %v3035_v29, 11  ;;  %v11664_v3 = vshll.u32 %v11663_v9, 16  ;;  %v4822_v34 = vshrl.u32 %v4716_v24, 16  ;;  %8647 = vmatmul.mubr.msk.bf16.vlgmr.msra.gmra.mrb[20].mxu1 %vm1628_vm1, %v7705_v12  ;;  %v4811_v54 = vsel %vm9387_vm8, %v7682_v15, %v4810_v16 }
 0x233   : > { %8534 = vmatprep.mubr.msk.bf16.mxu0 %vm1628_vm1, %v7560_v23  ;;  %v4827_v14 = vshrl.u32 %v10696_v30, 16  ;;  %v4830_v50 = vshll.u32 %v10696_v30, 16  ;;  %v4836_v60 = vshrl.u32 %v10698_v46, 16  ;;  %8679 = vmatpush3.bf16.msra.mxu1 %v9185_v38  ;;  %v4820_v35 = vsel %vm9387_vm8, %v4812_v10, %v4819_v52  ;;  %v10767_v38 = vld [vmem:[%s11402_s4 + $0x100] sm:$0xff]  }
 0x234   : > { %v3054_v59 = vor.u32 %v11664_v3, %v11662_v36  ;;  %v3046_v1 = vsel %vm9387_vm8, %v7537_v61, %v3045_v48  ;;  %v7683_v43 = vrot.slane %v4822_v34, 11  ;;  %v7706_v42 = vcombine.low %v4811_v54, %v4820_v35  ;;  %8680 = vmatprep.subr.bf16.mxu1 %v9154_v62  ;;  %v10753_v61 = vld [vmem:[#allocation2 + $0xac] sm:$0xf]  ;;  %v10759_v34 = vld [vmem:[#allocation2 + $0xbc] sm:$0xf] }
 0x235   : > { %v4829_v2 = vrot.slane %v4827_v14, 7  ;;  %v4838_v45 = vrot.slane %v4836_v60, 7  ;;  %v4839_v26 = vshll.u32 %v10698_v46, 16  ;;  %v4844_v27 = vshrl.u32 %v4719_v0, 16  ;;  %v4728_v60 = vld [vmem:[#allocation2 + $0xb8] sm:$0x8] }
 0x236   : > { %v3055_v17 = vsel %vm9387_vm8, %v3047_v55, %v3054_v59  ;;  %v4849_v63 = vshrl.u32 %v10714_v39, 16  ;;  %v4852_v25 = vshll.u32 %v10714_v39, 16  ;;  %8650 = vmatprep.mubr.msk.bf16.mxu1 %vm1628_vm1, %v7706_v42  ;;  %v4858_v13 = vshrl.u32 %v10725_v19, 16  ;;  %v10770_v42 = vld [vmem:[#allocation2 + $0xc0] sm:$0xf] }
 0x237   : > { %v7561_v28 = vcombine.low %v3046_v1, %v3055_v17  ;;  %v4832_v6 = vor.u32 %v4830_v50, %v4829_v2  ;;  %v4834_v57 = vrot.slane %v4829_v2, 4  ;;  %v4861_v31 = vshll.u32 %v10725_v19, 16  ;;  %8681 = vmatpush3.bf16.msra.mxu1 %v9154_v62 }
 0x238   : > { %v4841_v37 = vor.u32 %v4839_v26, %v4838_v45  ;;  %v7684_v23 = vrot.slane %v4844_v27, 11  ;;  %v4851_v15 = vrot.slane %v4849_v63, 7  ;;  %v4866_v8 = vshrl.u32 %v4722_v49, 16  ;;  %8682 = vmatprep.subr.bf16.mxu1 %v9155_v22 }
 0x239   : > { %8535 = vmatmul.mubr.msk.bf16.gmra.mrb[40].mxu0 %vm1628_vm1, %v7561_v28  ;;  %v4833_v24 = vsel %vm9387_vm8, %v7683_v43, %v4832_v6  ;;  %v4860_v51 = vrot.slane %v4858_v13, 7  ;;  %v4871_v11 = vshrl.u32 %v10733_v58, 16  ;;  %v4874_v29 = vshll.u32 %v10733_v58, 16 }
 0x23a   : > { %v4842_v20 = vsel %vm9387_vm8, %v4834_v57, %v4841_v37  ;;  %v4854_v48 = vor.u32 %v4852_v25, %v4851_v15  ;;  %v4856_v12 = vrot.slane %v4851_v15, 4  ;;  %v7685_v16 = vrot.slane %v4866_v8, 11  ;;  %v4731_v25 = vld [vmem:[#allocation2 + $0xcc] sm:$0x8]  ;;  %v10782_v37 = vld [vmem:[#allocation2 + $0xd0] sm:$0xf] }
 0x23b   : > { %v7707_v10 = vcombine.low %v4833_v24, %v4842_v20  ;;  %v4863_v55 = vor.u32 %v4861_v31, %v4860_v51  ;;  %v4873_v62 = vrot.slane %v4871_v11, 7  ;;  %v4880_v52 = vshrl.u32 %v10741_v32, 16  ;;  %8683 = vmatpush3.bf16.msra.mxu1 %v9155_v22  ;;  %v10787_v51 = vld [vmem:[#allocation2 + $0xd4] sm:$0xf]  ;;  %v4734_v20 = vld [vmem:[#allocation2 + $0xe0] sm:$0x8] }
 0x23c   : > { %v4855_v36 = vsel %vm9387_vm8, %v7684_v23, %v4854_v48  ;;  %v4883_v9 = vshll.u32 %v10741_v32, 16  ;;  %v4888_v3 = vshrl.u32 %v4725_v40, 16  ;;  %v4893_v59 = vshrl.u32 %v10739_v18, 16  ;;  %8684 = vmatprep.subr.bf16.mxu1 %v9156_v21 }
 0x23d   : > { %8651 = vmatmul.mubr.msk.bf16.gmra.mrb[24].mxu1 %vm1628_vm1, %v7707_v10  ;;  %v4864_v0 = vsel %vm9387_vm8, %v4856_v12, %v4863_v55  ;;  %v4876_v54 = vor.u32 %v4874_v29, %v4873_v62  ;;  %v4878_v14 = vrot.slane %v4873_v62, 4  ;;  %v4882_v50 = vrot.slane %v4880_v52, 7  ;;  %v10792_v55 = vld [vmem:[#allocation2 + $0xe4] sm:$0xf] }
 0x23e   : > { %v7708_v35 = vcombine.low %v4855_v36, %v4864_v0  ;;  %v7686_v1 = vrot.slane %v4888_v3, 11  ;;  %v4895_v17 = vrot.slane %v4893_v59, 7  ;;  %v4896_v43 = vshll.u32 %v10739_v18, 16 }
 0x23f   : > { %v4877_v28 = vsel %vm9387_vm8, %v7685_v16, %v4876_v54  ;;  %v4885_v2 = vor.u32 %v4883_v9, %v4882_v50  ;;  %v4902_v45 = vshrl.u32 %v10753_v61, 16  ;;  %v4905_v49 = vshll.u32 %v10753_v61, 16  ;;  %8685 = vmatpush3.bf16.msra.mxu1 %v9156_v21  ;;  %v10803_v50 = vld [vmem:[#allocation2 + $0xf8] sm:$0xf] }
 0x240   : > { %8654 = vmatprep.mubr.msk.bf16.mxu1 %vm1628_vm1, %v7708_v35  ;;  %v4898_v22 = vor.u32 %v4896_v43, %v4895_v17  ;;  %v4900_v26 = vrot.slane %v4895_v17, 4  ;;  %v4910_v27 = vshrl.u32 %v4728_v60, 16  ;;  %v4915_v63 = vshrl.u32 %v10759_v34, 16  ;;  %8718 = vmatprep.subr.bf16.mxu1 %v10767_v38  ;;  %v4737_v43 = vld [vmem:[#allocation2 + $0xf4] sm:$0x8] }
 0x241   : > { %v4886_v6 = vsel %vm9387_vm8, %v4878_v14, %v4885_v2  ;;  %v4904_v57 = vrot.slane %v4902_v45, 7  ;;  %v4918_v13 = vshll.u32 %v10759_v34, 16  ;;  %v4924_v31 = vshrl.u32 %v10770_v42, 16  ;;  %v10801_v14 = vld [vmem:[#allocation2 + $0xe8] sm:$0xf] }
 0x242   : > { %v7709_v23 = vcombine.low %v4877_v28, %v4886_v6  ;;  %v4899_v15 = vsel %vm9387_vm8, %v7686_v1, %v4898_v22  ;;  %v7687_v8 = vrot.slane %v4910_v27, 11  ;;  %v4917_v24 = vrot.slane %v4915_v63, 7  ;;  %v10813_v6 = vld [vmem:[#allocation2 + $0xfc] sm:$0xf] }
 0x243   : > { %v4907_v11 = vor.u32 %v4905_v49, %v4904_v57  ;;  %v4926_v29 = vrot.slane %v4924_v31, 7  ;;  %v4927_v40 = vshll.u32 %v10770_v42, 16  ;;  %v4932_v21 = vshrl.u32 %v4731_v25, 16 }
 0x244   : > { %v4920_v48 = vor.u32 %v4918_v13, %v4917_v24  ;;  %v4922_v12 = vrot.slane %v4917_v24, 4  ;;  %v4937_v16 = vshrl.u32 %v10782_v37, 16  ;;  %v4940_v10 = vshll.u32 %v10782_v37, 16  ;;  %v4740_v24 = vld [vmem:[#allocation2 + $0x108] sm:$0x8] }
 0x245   : > { %8655 = vmatmul.mubr.msk.bf16.gmra.mrb[28].mxu1 %vm1628_vm1, %v7709_v23  ;;  %v4908_v62 = vsel %vm9387_vm8, %v4900_v26, %v4907_v11  ;;  %v4929_v52 = vor.u32 %v4927_v40, %v4926_v29  ;;  %v7688_v36 = vrot.slane %v4932_v21, 11  ;;  %v4946_v9 = vshrl.u32 %v10787_v51, 16  ;;  %v10819_v11 = vld [vmem:[#allocation2 + $0x10c] sm:$0xf] }
 0x246   : > { %v7710_v3 = vcombine.low %v4899_v15, %v4908_v62  ;;  %v4921_v59 = vsel %vm9387_vm8, %v7687_v8, %v4920_v48  ;;  %v4939_v0 = vrot.slane %v4937_v16, 7  ;;  %v4949_v54 = vshll.u32 %v10787_v51, 16 }
 0x247   : > { %v4930_v60 = vsel %vm9387_vm8, %v4922_v12, %v4929_v52  ;;  %v4948_v35 = vrot.slane %v4946_v9, 7  ;;  %v4954_v1 = vshrl.u32 %v4734_v20, 16  ;;  %v4959_v17 = vshrl.u32 %v10792_v55, 16  ;;  %v10822_v20 = vld [vmem:[#allocation2 + $0x110] sm:$0xf] }
 0x248   : > { %8658 = vmatprep.mubr.msk.bf16.mxu1 %vm1628_vm1, %v7710_v3  ;;  %v7711_v28 = vcombine.low %v4921_v59, %v4930_v60  ;;  %v4942_v2 = vor.u32 %v4940_v10, %v4939_v0  ;;  %v4944_v45 = vrot.slane %v4939_v0, 4  ;;  %v4962_v26 = vshll.u32 %v10792_v55, 16  ;;  %v10830_v3 = vld [vmem:[#allocation2 + $0x120] sm:$0xf] }
 0x249   : > { %v4951_v49 = vor.u32 %v4949_v54, %v4948_v35  ;;  %v4961_v22 = vrot.slane %v4959_v17, 7  ;;  %v4968_v27 = vshrl.u32 %v10801_v14, 16  ;;  %v7689_v25 = vrot.slane %v4954_v1, 11  ;;  %v4743_v35 = vld [vmem:[#allocation2 + $0x11c] sm:$0x8] }
 0x24a   : > { %v4943_v63 = vsel %vm9387_vm8, %v7688_v36, %v4942_v2  ;;  %v4976_v57 = vshrl.u32 %v4737_v43, 16  ;;  %v4981_v13 = vshrl.u32 %v10803_v50, 16  ;;  %v4971_v8 = vshll.u32 %v10801_v14, 16  ;;  %v10837_v2 = vld [vmem:[#allocation2 + $0x124] sm:$0xf] }
 0x24b   : > { %v4952_v31 = vsel %vm9387_vm8, %v4944_v45, %v4951_v49  ;;  %v4964_v23 = vor.u32 %v4962_v26, %v4961_v22  ;;  %v4970_v15 = vrot.slane %v4968_v27, 7  ;;  %v4984_v21 = vshll.u32 %v10803_v50, 16  ;;  %v4746_v27 = vld [vmem:[#allocation2 + $0x130] sm:$0x8] }
 0x24c   : > { %v7712_v29 = vcombine.low %v4943_v63, %v4952_v31  ;;  %v4983_v40 = vrot.slane %v4981_v13, 7  ;;  %v4966_v48 = vrot.slane %v4961_v22, 4  ;;  %v7690_v16 = vrot.slane %v4976_v57, 11  ;;  %v10843_v31 = vld [vmem:[#allocation2 + $0x134] sm:$0xf] }
 0x24d   : > { %8659 = vmatmul.mubr.msk.bf16.gmra.mrb[0].mxu1 %vm1628_vm1, %v7711_v28  ;;  %v4973_v12 = vor.u32 %v4971_v8, %v4970_v15  ;;  %v4990_v10 = vshrl.u32 %v10813_v6, 16  ;;  %v4965_v62 = vsel %vm9387_vm8, %v7689_v25, %v4964_v23  ;;  %v4998_v36 = vshrl.u32 %v4740_v24, 16 }
 0x24e   : > { %8662 = vmatprep.mubr.msk.bf16.mxu1 %vm1628_vm1, %v7712_v29  ;;  %v4986_v52 = vor.u32 %v4984_v21, %v4983_v40  ;;  %v5003_v9 = vshrl.u32 %v10819_v11, 16  ;;  %v4993_v54 = vshll.u32 %v10813_v6, 16  ;;  %v5012_v60 = vshrl.u32 %v10822_v20, 16  ;;  %v10848_v29 = vld [vmem:[#allocation2 + $0x148] sm:$0xf] }
 0x24f   : > { %v4974_v59 = vsel %vm9387_vm8, %v4966_v48, %v4973_v12  ;;  %v4992_v0 = vrot.slane %v4990_v10, 7  ;;  %v4988_v17 = vrot.slane %v4983_v40, 4  ;;  %v5006_v28 = vshll.u32 %v10819_v11, 16 }
 0x250   : > { %v7713_v1 = vcombine.low %v4965_v62, %v4974_v59  ;;  %v5005_v43 = vrot.slane %v5003_v9, 7  ;;  %v4987_v45 = vsel %vm9387_vm8, %v7690_v16, %v4986_v52  ;;  %v5014_v22 = vrot.slane %v5012_v60, 7  ;;  %v10852_v16 = vld [vmem:[#allocation2 + $0x138] sm:$0xf]  ;;  %v4749_v9 = vld [vmem:[#allocation2 + $0x144] sm:$0x8] }
 0x251   : > { %v4995_v49 = vor.u32 %v4993_v54, %v4992_v0  ;;  %v5015_v26 = vshll.u32 %v10822_v20, 16  ;;  %v7691_v63 = vrot.slane %v4998_v36, 11  ;;  %v5020_v57 = vshrl.u32 %v4743_v35, 16 }
 0x252   : > { %v5008_v25 = vor.u32 %v5006_v28, %v5005_v43  ;;  %v5025_v13 = vshrl.u32 %v10830_v3, 16  ;;  %v5010_v15 = vrot.slane %v5005_v43, 4  ;;  %v5034_v24 = vshrl.u32 %v10837_v2, 16 }
 0x253   : > { %v4996_v23 = vsel %vm9387_vm8, %v4988_v17, %v4995_v49  ;;  %v5017_v8 = vor.u32 %v5015_v26, %v5014_v22  ;;  %v5028_v48 = vshll.u32 %v10830_v3, 16  ;;  %v5037_v12 = vshll.u32 %v10837_v2, 16  ;;  %v10863_v49 = vld [vmem:[#allocation2 + $0x14c] sm:$0xf] }
 0x254   : > { %v7714_v40 = vcombine.low %v4987_v45, %v4996_v23  ;;  %v5027_v21 = vrot.slane %v5025_v13, 7  ;;  %v5036_v62 = vrot.slane %v5034_v24, 7  ;;  %v5042_v52 = vshrl.u32 %v4746_v27, 16  ;;  %v840_v13 = vld [vmem:[#allocation2 + $0x158] sm:$0x8] }
 0x255   : > { %8663 = vmatmul.mubr.msk.bf16.gmra.mrb[4].mxu1 %vm1628_vm1, %v7713_v1  ;;  %v5018_v10 = vsel %vm9387_vm8, %v5010_v15, %v5017_v8  ;;  %v5047_v36 = vshrl.u32 %v10843_v31, 16  ;;  %v5009_v59 = vsel %vm9387_vm8, %v7691_v63, %v5008_v25  ;;  %v7692_v0 = vrot.slane %v5020_v57, 11  ;;  %v10869_v23 = vld [vmem:[#allocation2 + $0x15c] sm:$0xf] }
 0x256   : > { %8666 = vmatprep.mubr.msk.bf16.mxu1 %vm1628_vm1, %v7714_v40  ;;  %v5030_v54 = vor.u32 %v5028_v48, %v5027_v21  ;;  %v5032_v60 = vrot.slane %v5027_v21, 4  ;;  %v5039_v35 = vor.u32 %v5037_v12, %v5036_v62  ;;  %v5050_v1 = vshll.u32 %v10843_v31, 16  ;;  %v10874_v21 = vld [vmem:[#allocation2 + $0x160] sm:$0xf] }
 0x257   : > { %v5049_v17 = vrot.slane %v5047_v36, 7  ;;  %v5056_v43 = vshrl.u32 %v10852_v16, 16  ;;  %v7715_v28 = vcombine.low %v5009_v59, %v5018_v10  ;;  %v7693_v45 = vrot.slane %v5042_v52, 11 }
 0x258   : > { %v5064_v22 = vshrl.u32 %v4749_v9, 16  ;;  %v5069_v26 = vshrl.u32 %v10848_v29, 16  ;;  %v5040_v27 = vsel %vm9387_vm8, %v5032_v60, %v5039_v35  ;;  %v5059_v57 = vshll.u32 %v10852_v16, 16 }
 0x259   : > { %v5052_v63 = vor.u32 %v5050_v1, %v5049_v17  ;;  %v5058_v25 = vrot.slane %v5056_v43, 7  ;;  %v5031_v15 = vsel %vm9387_vm8, %v7692_v0, %v5030_v54  ;;  %v5054_v8 = vrot.slane %v5049_v17, 4 }
 0x25a   : > { %v5071_v24 = vrot.slane %v5069_v26, 7  ;;  %v5072_v40 = vshll.u32 %v10848_v29, 16  ;;  %v7716_v48 = vcombine.low %v5031_v15, %v5040_v27  ;;  %v7694_v10 = vrot.slane %v5064_v22, 11 }
 0x25b   : > { %v5061_v12 = vor.u32 %v5059_v57, %v5058_v25  ;;  %v5078_v62 = vshrl.u32 %v10863_v49, 16  ;;  %v5053_v52 = vsel %vm9387_vm8, %v7693_v45, %v5052_v63  ;;  %v841_v59 = vsel %vm9331_vm4, 0, %v840_v13 }
 0x25c   : > { %v5074_v36 = vor.u32 %v5072_v40, %v5071_v24  ;;  %v5091_v0 = vshrl.u32 %v10869_v23, 16  ;;  %v5081_v35 = vshll.u32 %v10863_v49, 16  ;;  %842 = vst [vmem:[#allocation2 + $0x158] sm:$0x8] %v841_v59  ;;  %v5100_v17 = vshrl.u32 %v10874_v21, 16  ;;  %v9173_v40 = vld [vmem:[%s11402_s4 + $0x118] sm:$0xff]  }
 0x25d   : > { %8667 = vmatmul.mubr.msk.bf16.gmra.mrb[8].mxu1 %vm1628_vm1, %v7715_v28  ;;  %v5062_v54 = vsel %vm9387_vm8, %v5054_v8, %v5061_v12  ;;  %v5080_v60 = vrot.slane %v5078_v62, 7  ;;  %v5076_v1 = vrot.slane %v5071_v24, 4  ;;  %v5094_v45 = vshll.u32 %v10869_v23, 16  ;;  %v5783_v12 = vld [vmem:[#allocation2 + $0x30] sm:$0xf] }
 0x25e   : > { %8670 = vmatprep.mubr.msk.bf16.mxu1 %vm1628_vm1, %v7716_v48  ;;  %v5093_v43 = vrot.slane %v5091_v0, 7  ;;  %v5103_v22 = vshll.u32 %v10874_v21, 16  ;;  %v5102_v27 = vrot.slane %v5100_v17, 7  ;;  %v7748_v28 = vcombine.low %v10616_v44, %v10627_v53  ;;  %v9178_v48 = vld [vmem:[%s11405_s7 + $0x8] sm:$0xff]   ;;  %v5786_v62 = vld [vmem:[#allocation2 + $0x44] sm:$0xf] }
 0x25f   : > { %v5083_v26 = vor.u32 %v5081_v35, %v5080_v60  ;;  %v7749_v63 = vcombine.low %v10639_v47, %v10655_v41  ;;  %v7717_v25 = vcombine.low %v5053_v52, %v5062_v54  ;;  %v5075_v57 = vsel %vm9387_vm8, %v7694_v10, %v5074_v36  ;;  %v5784_v10 = vld [vmem:[#allocation2 + $0x34] sm:$0xf]  ;;  %v5785_v17 = vld [vmem:[#allocation2 + $0x38] sm:$0x1] }
 0x260   : > { %v7750_v13 = vcombine.low %v10663_v56, %v10674_v4  ;;  %v7751_v15 = vcombine.low %v10696_v30, %v10698_v46  ;;  %v5098_v24 = vrot.slane %v5093_v43, 4  ;;  %v7752_v44 = vcombine.low %v10714_v39, %v10725_v19 }
 0x261   : > { %v5084_v8 = vsel %vm9387_vm8, %v5076_v1, %v5083_v26  ;;  %v7753_v53 = vcombine.low %v10733_v58, %v10741_v32  ;;  %v5105_v47 = vor.u32 %v5103_v22, %v5102_v27  ;;  %v7754_v41 = vcombine.low %v10739_v18, %v10753_v61  ;;  %v5790_v27 = vld [vmem:[#allocation2 + $0x5c] sm:$0xf] }
 0x262   : > { %v7755_v56 = vcombine.low %v10759_v34, %v10770_v42  ;;  %v7756_v4 = vcombine.low %v10782_v37, %v10787_v51  ;;  %v7718_v30 = vcombine.low %v5075_v57, %v5084_v8  ;;  %v7757_v46 = vcombine.low %v10792_v55, %v10801_v14 }
 0x263   : > { %v7758_v39 = vcombine.low %v10803_v50, %v10813_v6  ;;  %v7759_v19 = vcombine.low %v10819_v11, %v10822_v20  ;;  %v4752_v58 = vld [vmem:[#allocation2 + $0x158] sm:$0x8]  ;;  %v7760_v18 = vcombine.low %v10830_v3, %v10837_v2  ;;  %v7761_v32 = vcombine.low %v10843_v31, %v10852_v16  ;;  %v9163_v6 = vld [vmem:[%s11402_s4 + $0x108] sm:$0xff]  }
 0x264   : > { %v7762_v61 = vcombine.low %v10848_v29, %v10863_v49  ;;  %v7763_v34 = vcombine.low %v10869_v23, %v10874_v21  ;;  %v5086_v42 = vshrl.u32 %v4752_v58, 16  ;;  %v5096_v37 = vor.u32 %v5094_v45, %v5093_v43  ;;  %v5787_v45 = vld [vmem:[#allocation2 + $0x48] sm:$0xf] }
 0x265   : > { %8671 = vmatmul.mubr.msk.bf16.gmra.mrb[12].mxu1 %vm1628_vm1, %v7717_v25  ;;  %v5106_v55 = vsel %vm9387_vm8, %v5098_v24, %v5105_v47  ;;  %v5832_v52 = vshrl.u32 %v5783_v12, 16  ;;  %v5835_v36 = vshll.u32 %v5783_v12, 16  ;;  %v5841_v9 = vshll.u32 %v5784_v10, 16  ;;  %v5789_v24 = vld [vmem:[#allocation2 + $0x58] sm:$0xf] }
 0x266   : > { %8674 = vmatprep.mubr.msk.bf16.mxu1 %vm1628_vm1, %v7718_v30  ;;  %v7695_v51 = vrot.slane %v5086_v42, 11  ;;  %v5845_v59 = vshrl.u32 %v5784_v10, 16  ;;  %v5856_v0 = vshrl.u32 %v5786_v62, 16  ;;  %v5859_v54 = vshll.u32 %v5786_v62, 16  ;;  %v5792_v47 = vld [vmem:[#allocation2 + $0x6c] sm:$0xf] }
 0x267   : > { %v5834_v60 = vrot.slane %v5832_v52, 4  ;;  %v5837_v35 = vrot.slane %v5835_v36, 5  ;;  %v10960_v1 = vrot.slane %v5841_v9, 5  ;;  %v5865_v25 = vshll.u32 %v5787_v45, 16  ;;  %v5793_v30 = vld [vmem:[#allocation2 + $0x70] sm:$0xf] }
 0x268   : > { %v5097_v14 = vsel %vm9387_vm8, %v7695_v51, %v5096_v37  ;;  %v5847_v43 = vrot.slane %v5845_v59, 4  ;;  %v5858_v22 = vrot.slane %v5856_v0, 4  ;;  %v5861_v26 = vrot.slane %v5859_v54, 5  ;;  %v5796_v42 = vld [vmem:[#allocation2 + $0x84] sm:$0xf] }
 0x269   : > { %v7719_v50 = vcombine.low %v5097_v14, %v5106_v55  ;;  %v10971_v11 = vrot.slane %v5865_v25, 5  ;;  %v5883_v58 = vshll.u32 %v5789_v24, 16  ;;  %v5791_v51 = vld [vmem:[#allocation2 + $0x60] sm:$0x1]  ;;  %v5904_v55 = vshrl.u32 %v5792_v47, 16 }
 0x26a   : > { %v5848_v57 = vor.u32 %v5847_v43, %v10960_v1  ;;  %v5862_v8 = vor.u32 %v5861_v26, %v5858_v22  ;;  %v5907_v14 = vshll.u32 %v5792_v47, 16  ;;  %v5795_v62 = vld [vmem:[#allocation2 + $0x80] sm:$0xf]  ;;  %v5794_v36 = vld [vmem:[#allocation2 + $0x74] sm:$0x1] }
 0x26b   : > { %v5885_v10 = vrot.slane %v5883_v58, 5  ;;  %v5798_v9 = vld [vmem:[#allocation2 + $0x94] sm:$0xf]  ;;  %v5799_v59 = vld [vmem:[#allocation2 + $0x98] sm:$0xf]  ;;  %v5906_v54 = vrot.slane %v5904_v55, 4 }
 0x26c   : > { %v10973_v3 = vrot.slane %v5862_v8, 4  ;;  %v5909_v29 = vrot.slane %v5907_v14, 5  ;;  %v5965_v8 = vshrl.u32 %v5799_v59, 16  ;;  %v5923_v47 = vshll.u32 %v5794_v36, 16 }
 0x26d   : > { %8675 = vmatmul.mubr.msk.bf16.gmra.mrb[16].mxu1 %vm1628_vm1, %v7719_v50  ;;  %v5913_v50 = vshll.u32 %v5793_v30, 16 }
 0x26e   : > { %8686 = vmatprep.mubr.msk.bf16.mxu1 %vm1628_vm1, %v7748_v28  ;;  %v5838_v28 = vor.u32 %v5837_v35, %v5834_v60  ;;  %v5868_v31 = vsel %vm10338_vm12, %v10973_v3, %v10971_v11  ;;  %v5928_v35 = vshrl.u32 %v5795_v62, 16  ;;  %v5967_v3 = vrot.slane %v5965_v8, 4 }
 0x26f   : > { %v11002_v49 = vrot.slane %v5913_v50, 5  ;;  %v5925_v55 = vrot.slane %v5923_v47, 5 }
 0x275   : > { %8687 = vmatmul.mubr.msk.bf16.vlgmr.msra.gmra.mrb[20].mxu1 %vm1628_vm1, %v7749_v63  ;;  %v5851_v63 = vshll.u32 %v5785_v17, 16  ;;  %v5931_v17 = vshll.u32 %v5795_v62, 16 }
 0x276   : > { %8719 = vmatpush3.bf16.msra.mxu1 %v10767_v38  ;;  %8690 = vmatprep.mubr.msk.bf16.mxu1 %vm1628_vm1, %v7750_v13  ;;  %v9177_v38 = vld [vmem:[%s11405_s7] sm:$0xff]   ;;  %v5788_v13 = vld [vmem:[#allocation2 + $0x4c] sm:$0x1] }
 0x277   : > { %8720 = vmatprep.subr.bf16.mxu1 %v9163_v6  ;;  %8758 = vmatprep.subr.bf16.mxu0 %v9177_v38  ;;  %v5875_v20 = vshll.u32 %v5788_v13, 16 }
 0x278   : > { %8759 = vmatpush3.bf16.msra.mxu0 %v9177_v38  ;;  %v5941_v38 = vshrl.u32 %v5796_v42, 16 }
 0x279   : > { %8760 = vmatprep.subr.bf16.mxu0 %v9178_v48 }
 0x27a   : > { %8721 = vmatpush3.bf16.msra.mxu1 %v9163_v6  ;;  %v5917_v6 = vshrl.u32 %v5793_v30, 16  ;;  %v5943_v43 = vrot.slane %v5941_v38, 4 }
 0x27b   : > { %8722 = vmatprep.subr.bf16.mxu1 %v9168_v5 }
 0x27c   : > { %8761 = vmatpush3.bf16.msra.mxu0 %v9178_v48 }
 0x27d   : > { %8691 = vmatmul.mubr.msk.bf16.gmra.mrb[24].mxu1 %vm1628_vm1, %v7751_v15  ;;  %v5869_v15 = vshrl.u32 %v5787_v45, 16 }
 0x27e   : > { %8694 = vmatprep.mubr.msk.bf16.mxu1 %vm1628_vm1, %v7752_v44  ;;  %8723 = vmatpush3.bf16.msra.mxu1 %v9168_v5  ;;  %v5889_v44 = vshll.u32 %v5790_v27, 16  ;;  %v10979_v5 = vrot.slane %v5875_v20, 5 }
 0x27f   : > { %8724 = vmatprep.subr.bf16.mxu1 %v9173_v40 }
 0x280   : > { %v10975_v2 = vrot.slane %v5889_v44, 5  ;;  %v5910_v44 = vor.u32 %v5909_v29, %v5906_v54 }
 0x282   : > { %8725 = vmatpush3.bf16.msra.mxu1 %v9173_v40  ;;  %v5937_v40 = vshll.u32 %v5796_v42, 16  ;;  %v5911_v21 = vrot.slane %v5910_v44, 4 }
 0x285   : > { %8695 = vmatmul.mubr.msk.bf16.gmra.mrb[28].mxu1 %vm1628_vm1, %v7753_v53  ;;  %v5893_v53 = vshrl.u32 %v5790_v27, 16  ;;  %v5797_v27 = vld [vmem:[#allocation2 + $0x88] sm:$0x1] }
 0x286   : > { %8698 = vmatprep.mubr.msk.bf16.mxu1 %vm1628_vm1, %v7754_v41  ;;  %v845_v41 = vld [vmem:[#allocation2 + $0x164] sm:$0x1]  ;;  %v5947_v20 = vshll.u32 %v5797_v27, 16 }
 0x287   : > { %v846_v37 = vsel %vm9391_vm9, 0, %v845_v41  ;;  %v5802_v41 = vld [vmem:[#allocation2 + $0xac] sm:$0xf] }
 0x288   : > { %847 = vst [vmem:[#allocation2 + $0x164] sm:$0x1] %v846_v37  ;;  %v5985_v37 = vshll.u32 %v5802_v41, 16 }
 0x28d   : > { %8699 = vmatmul.mubr.msk.bf16.gmra.mrb[0].mxu1 %vm1628_vm1, %v7755_v56  ;;  %v5839_v56 = vrot.slane %v5838_v28, 4  ;;  %v5952_v28 = vshrl.u32 %v5798_v9, 16 }
 0x28e   : > { %8702 = vmatprep.mubr.msk.bf16.mxu1 %vm1628_vm1, %v7756_v4  ;;  %v5853_v4 = vrot.slane %v5851_v63, 5  ;;  %v5955_v63 = vshll.u32 %v5798_v9, 16  ;;  %v5916_v9 = vsel %vm10338_vm12, %v5911_v21, %v11002_v49 }
 0x28f   : > { %v5844_v33 = vsel %vm10338_vm12, %v5839_v56, %v10960_v1  ;;  %v11006_v1 = vrot.slane %v5937_v40, 5  ;;  %v5930_v56 = vrot.slane %v5928_v35, 4  ;;  %v5805_v40 = vld [vmem:[#allocation2 + $0xc0] sm:$0xf] }
 0x290   : > { %v5957_v58 = vrot.slane %v5955_v63, 5  ;;  %v6013_v54 = vshrl.u32 %v5805_v40, 16 }
 0x292   : > { %v6015_v44 = vrot.slane %v6013_v54, 4 }
 0x295   : > { %8703 = vmatmul.mubr.msk.bf16.gmra.mrb[4].mxu1 %vm1628_vm1, %v7757_v46  ;;  %v5849_v46 = vrot.slane %v5848_v57, 4 }
 0x296   : > { %8706 = vmatprep.mubr.msk.bf16.mxu1 %vm1628_vm1, %v7758_v39  ;;  %v5871_v39 = vrot.slane %v5869_v15, 4  ;;  %v5961_v15 = vshll.u32 %v5799_v59, 16  ;;  %v5803_v59 = vld [vmem:[#allocation2 + $0xb0] sm:$0x1] }
 0x297   : > { %v5854_v52 = vsel %vm10338_vm12, %v5849_v46, %v5853_v4  ;;  %v5933_v4 = vrot.slane %v5931_v17, 5  ;;  %v5807_v17 = vld [vmem:[#allocation2 + $0xd0] sm:$0xf] }
 0x298   : > { %v5872_v48 = vor.u32 %v5871_v39, %v10971_v11  ;;  %v7792_v57 = vcombine.low %v5844_v33, %v5854_v52  ;;  %v5944_v11 = vor.u32 %v5943_v43, %v11006_v1  ;;  %v5800_v39 = vld [vmem:[#allocation2 + $0x9c] sm:$0x1]  ;;  %v11022_v42 = vrot.slane %v5961_v15, 5  ;;  %v5806_v15 = vld [vmem:[#allocation2 + $0xc4] sm:$0x1] }
 0x299   : > { %v5934_v14 = vor.u32 %v5933_v4, %v5930_v56  ;;  %v11030_v52 = vrot.slane %v5985_v37, 5  ;;  %v6027_v47 = vshll.u32 %v5807_v17, 16  ;;  %v6019_v21 = vshll.u32 %v5806_v15, 16 }
 0x29a   : > { %v5873_v22 = vrot.slane %v5872_v48, 4  ;;  %v5945_v50 = vrot.slane %v5944_v11, 4  ;;  %v5968_v62 = vor.u32 %v5967_v3, %v11022_v42  ;;  %v5810_v3 = vld [vmem:[#allocation2 + $0xe4] sm:$0xf] }
 0x29b   : > { %v5935_v29 = vrot.slane %v5934_v14, 4  ;;  %v5809_v14 = vld [vmem:[#allocation2 + $0xd8] sm:$0x1] }
 0x29c   : > { %v5878_v30 = vsel %vm10338_vm12, %v5873_v22, %v10979_v5  ;;  %v5971_v5 = vshll.u32 %v5800_v39, 16  ;;  %v5969_v63 = vrot.slane %v5968_v62, 4  ;;  %v6043_v54 = vshll.u32 %v5809_v14, 16 }
 0x29d   : > { %8707 = vmatmul.mubr.msk.bf16.gmra.mrb[8].mxu1 %vm1628_vm1, %v7759_v19  ;;  %v5880_v19 = vshrl.u32 %v5789_v24, 16  ;;  %v7793_v38 = vcombine.low %v5868_v31, %v5878_v30  ;;  %v6009_v31 = vshll.u32 %v5805_v40, 16  ;;  %v5940_v4 = vsel %vm10338_vm12, %v5935_v29, %v11006_v1 }
 0x29e   : > { %8710 = vmatprep.mubr.msk.bf16.mxu1 %vm1628_vm1, %v7760_v18  ;;  %v5895_v18 = vrot.slane %v5893_v53, 4  ;;  %v11039_v35 = vrot.slane %v5971_v5, 5  ;;  %v5813_v5 = vld [vmem:[#allocation2 + $0xf8] sm:$0xf] }
 0x29f   : > { %v5882_v12 = vrot.slane %v5880_v19, 4  ;;  %v5954_v19 = vrot.slane %v5952_v28, 4 }
 0x2a0   : > { %v5896_v16 = vor.u32 %v5895_v18, %v10975_v2  ;;  %v5801_v18 = vld [vmem:[#allocation2 + $0xa8] sm:$0xf]  ;;  %v5974_v1 = vsel %vm10338_vm12, %v5969_v63, %v11039_v35 }
 0x2a1   : > { %v5886_v26 = vor.u32 %v5885_v10, %v5882_v12  ;;  %v5976_v48 = vshrl.u32 %v5801_v18, 16  ;;  %v5979_v12 = vshll.u32 %v5801_v18, 16  ;;  %v5958_v10 = vor.u32 %v5957_v58, %v5954_v19 }
 0x2a2   : > { %v5897_v24 = vrot.slane %v5896_v16, 4 }
 0x2a3   : > { %v11000_v0 = vpop.f32.mrb[44].mxu0  ;;  %v5887_v46 = vrot.slane %v5886_v26, 4  ;;  %v5978_v43 = vrot.slane %v5976_v48, 4  ;;  %v5981_v22 = vrot.slane %v5979_v12, 5  ;;  %v5959_v28 = vrot.slane %v5958_v10, 4 }
 0x2a4   : > { %v11004_v60 = vpop.f32.mrb[45].mxu0  ;;  %v6051_v48 = vshll.u32 %v5810_v3, 16 }
 0x2a5   : > { %8711 = vmatmul.mubr.msk.bf16.gmra.mrb[12].mxu1 %vm1628_vm1, %v7761_v32  ;;  %v5899_v32 = vshll.u32 %v5791_v51, 16  ;;  %v11008_v45 = vpop.f32.mrb[46].mxu0  ;;  %v5989_v51 = vshrl.u32 %v5802_v41, 16  ;;  %v5892_v33 = vsel %vm10338_vm12, %v5887_v46, %v10975_v2  ;;  %v5982_v39 = vor.u32 %v5981_v22, %v5978_v43 }
 0x2a6   : > { %8714 = vmatprep.mubr.msk.bf16.mxu1 %vm1628_vm1, %v7762_v61  ;;  %v5919_v61 = vrot.slane %v5917_v6, 4  ;;  %v11010_v25 = vpop.f32.mrb[47].mxu0  ;;  %v5949_v6 = vrot.slane %v5947_v20, 5  ;;  %v5964_v37 = vsel %vm10338_vm12, %v5959_v28, %v11022_v42  ;;  %v5814_v42 = vld [vmem:[#allocation2 + $0xfc] sm:$0xf]  ;;  %v6053_v43 = vrot.slane %v6051_v48, 5 }
 0x2a7   : > { %v5901_v13 = vrot.slane %v5899_v32, 5  ;;  %v5991_v16 = vrot.slane %v5989_v51, 4  ;;  %v5804_v32 = vld [vmem:[#allocation2 + $0xbc] sm:$0xf]  ;;  %v5983_v12 = vrot.slane %v5982_v39, 4  ;;  %v6085_v29 = vshrl.u32 %v5814_v42, 16 }
 0x2a8   : > { %v5920_v53 = vor.u32 %v5919_v61, %v11002_v49  ;;  %v5950_v61 = vsel %vm10338_vm12, %v5945_v50, %v5949_v6  ;;  %v6000_v26 = vshrl.u32 %v5804_v32, 16  ;;  %v6003_v27 = vshll.u32 %v5804_v32, 16  ;;  %v5808_v49 = vld [vmem:[#allocation2 + $0xd4] sm:$0xf] }
 0x2a9   : > { %v5902_v23 = vsel %vm10338_vm12, %v5897_v24, %v5901_v13  ;;  %v5995_v13 = vshll.u32 %v5803_v59, 16  ;;  %v11046_v24 = vrot.slane %v6009_v31, 5  ;;  %v6033_v11 = vshll.u32 %v5808_v49, 16 }
 0x2aa   : > { %v7794_v36 = vcombine.low %v5892_v33, %v5902_v23  ;;  %v6037_v20 = vshrl.u32 %v5808_v49, 16  ;;  %v7796_v46 = vcombine.low %v5940_v4, %v5950_v61  ;;  %v6002_v19 = vrot.slane %v6000_v26, 4 }
 0x2ab   : > { %v6005_v58 = vrot.slane %v6003_v27, 5  ;;  %v5997_v23 = vrot.slane %v5995_v13, 5  ;;  %v6029_v6 = vrot.slane %v6027_v47, 5  ;;  %v11064_v40 = vrot.slane %v6033_v11, 5  ;;  %v5812_v27 = vld [vmem:[#allocation2 + $0xec] sm:$0x1] }
 0x2ac   : > { %v6048_v33 = vshrl.u32 %v5810_v3, 16  ;;  %v6075_v59 = vshll.u32 %v5813_v5, 16  ;;  %v5988_v22 = vsel %vm10338_vm12, %v5983_v12, %v11030_v52  ;;  %v7797_v63 = vcombine.low %v5964_v37, %v5974_v1  ;;  %v5815_v13 = vld [vmem:[#allocation2 + $0x100] sm:$0x1]  ;;  %v5820_v1 = vld [vmem:[#allocation2 + $0x124] sm:$0xf] }
 0x2ad   : > { %8715 = vmatmul.mubr.msk.bf16.gmra.mrb[16].mxu1 %vm1628_vm1, %v7763_v34  ;;  %v5921_v34 = vrot.slane %v5920_v53, 4  ;;  %v6024_v53 = vshrl.u32 %v5807_v17, 16  ;;  %v6006_v10 = vor.u32 %v6005_v58, %v6002_v19  ;;  %v6087_v11 = vrot.slane %v6085_v29, 4 }
 0x2ae   : > { %8726 = vmatprep.mubr.msk.bf16.mxu1 %vm1628_vm1, %v7792_v57  ;;  %v5992_v57 = vor.u32 %v5991_v16, %v11030_v52  ;;  %v6050_v17 = vrot.slane %v6048_v33, 4  ;;  %v6067_v19 = vshll.u32 %v5812_v27, 16  ;;  %v6091_v37 = vshll.u32 %v5815_v13, 16  ;;  %v5819_v33 = vld [vmem:[#allocation2 + $0x120] sm:$0xf] }
 0x2af   : > { %v5926_v2 = vsel %vm10338_vm12, %v5921_v34, %v5925_v55  ;;  %v5811_v34 = vld [vmem:[#allocation2 + $0xe8] sm:$0xf]  ;;  %v6016_v55 = vor.u32 %v6015_v44, %v11046_v24  ;;  %v6026_v50 = vrot.slane %v6024_v53, 4  ;;  %v6007_v26 = vrot.slane %v6006_v10, 4  ;;  %v5816_v53 = vld [vmem:[#allocation2 + $0x10c] sm:$0xf] }
 0x2b0   : > { %v7795_v56 = vcombine.low %v5916_v9, %v5926_v2  ;;  %v5993_v51 = vrot.slane %v5992_v57, 4  ;;  %v6057_v62 = vshll.u32 %v5811_v34, 16  ;;  %v6061_v16 = vshrl.u32 %v5811_v34, 16  ;;  %v5818_v10 = vld [vmem:[#allocation2 + $0x114] sm:$0x1] }
 0x2b1   : > { %v6072_v9 = vshrl.u32 %v5813_v5, 16  ;;  %v6017_v31 = vrot.slane %v6016_v55, 4  ;;  %v6081_v2 = vshll.u32 %v5814_v42, 16  ;;  %v6030_v61 = vor.u32 %v6029_v6, %v6026_v50 }
 0x2b2   : > { %v5998_v32 = vsel %vm10338_vm12, %v5993_v51, %v5997_v23  ;;  %v11074_v49 = vrot.slane %v6057_v62, 5  ;;  %v6063_v28 = vrot.slane %v6061_v16, 4  ;;  %v6077_v44 = vrot.slane %v6075_v59, 5 }
 0x2b3   : > { %v11044_v8 = vpop.f32.mrb[48].mxu0  ;;  %v7798_v57 = vcombine.low %v5988_v22, %v5998_v32  ;;  %v6074_v15 = vrot.slane %v6072_v9, 4  ;;  %v11078_v4 = vrot.slane %v6081_v2, 5  ;;  %v6031_v52 = vrot.slane %v6030_v61, 4 }
 0x2b4   : > { %v11048_v41 = vpop.f32.mrb[49].mxu0  ;;  %v6054_v39 = vor.u32 %v6053_v43, %v6050_v17  ;;  %v6012_v58 = vsel %vm10338_vm12, %v6007_v26, %v11046_v24  ;;  %v6064_v3 = vor.u32 %v6063_v28, %v11074_v49  ;;  %v6096_v23 = vshrl.u32 %v5816_v53, 16  ;;  %v5821_v43 = vld [vmem:[#allocation2 + $0x128] sm:$0x1]  ;;  %v5822_v28 = vld [vmem:[#allocation2 + $0x134] sm:$0xf] }
 0x2b5   : > { %8727 = vmatmul.mubr.msk.bf16.vlgmr.msra.gmra.mrb[20].mxu1 %vm1628_vm1, %v7793_v38  ;;  %v11053_v30 = vpop.f32.mrb[50].mxu0  ;;  %v6039_v38 = vrot.slane %v6037_v20, 4  ;;  %v5817_v20 = vld [vmem:[#allocation2 + $0x110] sm:$0xf]  ;;  %v6078_v51 = vor.u32 %v6077_v44, %v6074_v15  ;;  %v6088_v14 = vor.u32 %v6087_v11, %v11078_v4  ;;  %v6036_v6 = vsel %vm10338_vm12, %v6031_v52, %v11064_v40 }
 0x2b6   : > { %8730 = vmatprep.mubr.msk.bf16.mxu1 %vm1628_vm1, %v7794_v36  ;;  %v11055_v18 = vpop.f32.mrb[51].mxu0  ;;  %v6021_v36 = vrot.slane %v6019_v21, 5  ;;  %v6099_v21 = vshll.u32 %v5816_v53, 16  ;;  %v6105_v34 = vshll.u32 %v5817_v20, 16  ;;  %v6109_v50 = vshrl.u32 %v5817_v20, 16 }
 0x2b7   : > { %v6040_v35 = vor.u32 %v6039_v38, %v11064_v40  ;;  %v6055_v5 = vrot.slane %v6054_v39, 4  ;;  %v6069_v38 = vrot.slane %v6067_v19, 5  ;;  %v6065_v42 = vrot.slane %v6064_v3, 4  ;;  %v5826_v53 = vld [vmem:[#allocation2 + $0x14c] sm:$0xf] }
 0x2b8   : > { %v6022_v47 = vsel %vm10338_vm12, %v6017_v31, %v6021_v36  ;;  %v6093_v12 = vrot.slane %v6091_v37, 5  ;;  %v6129_v62 = vshll.u32 %v5820_v1, 16  ;;  %v6133_v16 = vshrl.u32 %v5820_v1, 16  ;;  %v5825_v19 = vld [vmem:[#allocation2 + $0x148] sm:$0xf] }
 0x2b9   : > { %v7799_v55 = vcombine.low %v6012_v58, %v6022_v47  ;;  %v6079_v36 = vrot.slane %v6078_v51, 4  ;;  %v6098_v9 = vrot.slane %v6096_v23, 4  ;;  %v6101_v59 = vrot.slane %v6099_v21, 5  ;;  %v5828_v1 = vld [vmem:[#allocation2 + $0x15c] sm:$0xf] }
 0x2ba   : > { %v11096_v31 = vrot.slane %v6105_v34, 5  ;;  %v6111_v2 = vrot.slane %v6109_v50, 4  ;;  %v6120_v29 = vshrl.u32 %v5819_v33, 16  ;;  %v6123_v61 = vshll.u32 %v5819_v33, 16 }
 0x2bb   : > { %v6060_v22 = vsel %vm10338_vm12, %v6055_v5, %v11074_v49  ;;  %v11106_v26 = vrot.slane %v6129_v62, 5  ;;  %v6135_v27 = vrot.slane %v6133_v16, 4  ;;  %v6084_v13 = vsel %vm10338_vm12, %v6079_v36, %v11078_v4 }
 0x2bc   : > { %v6102_v15 = vor.u32 %v6101_v59, %v6098_v9  ;;  %v6115_v44 = vshll.u32 %v5818_v10, 16  ;;  %v6112_v47 = vor.u32 %v6111_v2, %v11096_v31  ;;  %v6125_v11 = vrot.slane %v6123_v61, 5  ;;  %v5824_v10 = vld [vmem:[#allocation2 + $0x13c] sm:$0x1]  ;;  %v5827_v9 = vld [vmem:[#allocation2 + $0x150] sm:$0x1] }
 0x2bd   : > { %8731 = vmatmul.mubr.msk.bf16.gmra.mrb[24].mxu1 %vm1628_vm1, %v7795_v56  ;;  %v6045_v56 = vrot.slane %v6043_v54, 5  ;;  %v6089_v54 = vrot.slane %v6088_v14, 4  ;;  %v6139_v20 = vshll.u32 %v5821_v43, 16  ;;  %v6144_v52 = vshrl.u32 %v5822_v28, 16 }
 0x2be   : > { %8734 = vmatprep.mubr.msk.bf16.mxu1 %vm1628_vm1, %v7796_v46  ;;  %v6041_v46 = vrot.slane %v6040_v35, 4  ;;  %v6136_v58 = vor.u32 %v6135_v27, %v11106_v26  ;;  %v6147_v3 = vshll.u32 %v5822_v28, 16  ;;  %v6177_v37 = vshll.u32 %v5826_v53, 16 }
 0x2bf   : > { %v6094_v49 = vsel %vm10338_vm12, %v6089_v54, %v6093_v12  ;;  %v6181_v4 = vshrl.u32 %v5826_v53, 16  ;;  %v6103_v21 = vrot.slane %v6102_v15, 4  ;;  %v6117_v34 = vrot.slane %v6115_v44, 5 }
 0x2c0   : > { %v6046_v24 = vsel %vm10338_vm12, %v6041_v46, %v6045_v56  ;;  %v6122_v56 = vrot.slane %v6120_v29, 4  ;;  %v7802_v23 = vcombine.low %v6084_v13, %v6094_v49  ;;  %v6168_v50 = vshrl.u32 %v5825_v19, 16 }
 0x2c1   : > { %v7800_v17 = vcombine.low %v6036_v6, %v6046_v24  ;;  %v6171_v6 = vshll.u32 %v5825_v19, 16  ;;  %v5829_v24 = vld [vmem:[#allocation2 + $0x160] sm:$0xf]  ;;  %v6141_v5 = vrot.slane %v6139_v20, 5  ;;  %v6137_v12 = vrot.slane %v6136_v58, 4 }
 0x2c2   : > { %v6126_v14 = vor.u32 %v6125_v11, %v6122_v56  ;;  %v6149_v62 = vrot.slane %v6147_v3, 5  ;;  %v6179_v16 = vrot.slane %v6177_v37, 5  ;;  %v6183_v36 = vrot.slane %v6181_v4, 4 }
 0x2c3   : > { %v6192_v59 = vshrl.u32 %v5828_v1, 16  ;;  %v6195_v54 = vshll.u32 %v5828_v1, 16  ;;  %v6201_v2 = vshll.u32 %v5829_v24, 16  ;;  %v6205_v29 = vshrl.u32 %v5829_v24, 16 }
 0x2c4   : > { %v6127_v61 = vrot.slane %v6126_v14, 4  ;;  %v6173_v43 = vrot.slane %v6171_v6, 5  ;;  %v6184_v15 = vor.u32 %v6183_v36, %v6179_v16  ;;  %v6187_v44 = vshll.u32 %v5827_v9, 16 }
 0x2c5   : > { %8735 = vmatmul.mubr.msk.bf16.gmra.mrb[28].mxu1 %vm1628_vm1, %v7797_v63  ;;  %v11092_v48 = vpop.f32.mrb[52].mxu0  ;;  %v5823_v63 = vld [vmem:[#allocation2 + $0x138] sm:$0xf]  ;;  %v6194_v53 = vrot.slane %v6192_v59, 4  ;;  %v6197_v49 = vrot.slane %v6195_v54, 5  ;;  %v6207_v56 = vrot.slane %v6205_v29, 4 }
 0x2c6   : > { %8738 = vmatprep.mubr.msk.bf16.mxu1 %vm1628_vm1, %v7798_v57  ;;  %v11094_v32 = vpop.f32.mrb[53].mxu0  ;;  %v6070_v57 = vsel %vm10338_vm12, %v6065_v42, %v6069_v38  ;;  %v6153_v46 = vshll.u32 %v5823_v63, 16  ;;  %v6157_v39 = vshrl.u32 %v5823_v63, 16  ;;  %v6146_v38 = vrot.slane %v6144_v52, 4  ;;  %v5830_v52 = vld [vmem:[#allocation2 + $0x164] sm:$0x1] }
 0x2c7   : > { %v11098_v40 = vpop.f32.mrb[54].mxu0  ;;  %v7801_v51 = vcombine.low %v6060_v22, %v6070_v57  ;;  %v6108_v22 = vsel %vm10338_vm12, %v6103_v21, %v11096_v31  ;;  %v6163_v63 = vshll.u32 %v5824_v10, 16  ;;  %v6142_v57 = vsel %vm10338_vm12, %v6137_v12, %v6141_v5 }
 0x2c8   : > { %v11100_v35 = vpop.f32.mrb[55].mxu0  ;;  %v6155_v33 = vrot.slane %v6153_v46, 5  ;;  %v6159_v42 = vrot.slane %v6157_v39, 4  ;;  %v6150_v13 = vor.u32 %v6149_v62, %v6146_v38  ;;  %v6132_v31 = vsel %vm10338_vm12, %v6127_v61, %v11106_v26 }
 0x2c9   : > { %v7804_v39 = vcombine.low %v6132_v31, %v6142_v57  ;;  %v6165_v58 = vrot.slane %v6163_v63, 5  ;;  %v6185_v37 = vrot.slane %v6184_v15, 4  ;;  %v6189_v4 = vrot.slane %v6187_v44, 5  ;;  %v9179_v15 = vld [vmem:[%s11405_s7 + $0x10] sm:$0xff]   ;;  %v9180_v44 = vld [vmem:[%s11405_s7 + $0x18] sm:$0xff]  }
 0x2ca   : > { %v6160_v28 = vor.u32 %v6159_v42, %v6155_v33  ;;  %v6198_v21 = vor.u32 %v6197_v49, %v6194_v53  ;;  %8762 = vmatprep.subr.bf16.mxu0 %v9179_v15  ;;  %v11174_v49 = vld [vmem:[%s11403_s5] ss:$0 sm:$0xff] }
 0x2cb   : > { %8763 = vmatpush3.bf16.msra.mxu0 %v9179_v15 }
 0x2cc   : > { %v6161_v19 = vrot.slane %v6160_v28, 4  ;;  %v6199_v24 = vrot.slane %v6198_v21, 4  ;;  %8764 = vmatprep.subr.bf16.mxu0 %v9180_v44 }
 0x2cd   : > { %8739 = vmatmul.mubr.msk.bf16.gmra.mrb[0].mxu1 %vm1628_vm1, %v7799_v55  ;;  %v6113_v55 = vrot.slane %v6112_v47, 4  ;;  %v6203_v47 = vrot.slane %v6201_v2, 5 }
 0x2ce   : > { %8742 = vmatprep.mubr.msk.bf16.mxu1 %vm1628_vm1, %v7800_v17  ;;  %v6170_v17 = vrot.slane %v6168_v50, 4  ;;  %v6166_v14 = vsel %vm10338_vm12, %v6161_v19, %v6165_v58  ;;  %v6190_v50 = vsel %vm10338_vm12, %v6185_v37, %v6189_v4 }
 0x2cf   : > { %v6118_v27 = vsel %vm10338_vm12, %v6113_v55, %v6117_v34  ;;  %v6208_v26 = vor.u32 %v6207_v56, %v6203_v47  ;;  %v6211_v34 = vshll.u32 %v5830_v52, 16  ;;  %v6204_v62 = vsel %vm10338_vm12, %v6199_v24, %v6203_v47  ;;  %8765 = vmatpush3.bf16.msra.mxu0 %v9180_v44 }
 0x2d0   : > { %v7803_v11 = vcombine.low %v6108_v22, %v6118_v27  ;;  %v6174_v20 = vor.u32 %v6173_v43, %v6170_v17 }
 0x2d1   : > { %v6209_v5 = vrot.slane %v6208_v26, 4  ;;  %v6213_v38 = vrot.slane %v6211_v34, 5 }
 0x2d2   : > { %v6175_v55 = vrot.slane %v6174_v20, 4 }
 0x2d3   : > { %v6214_v36 = vsel %vm10338_vm12, %v6209_v5, %v6213_v38 }
 0x2d4   : > { %v6180_v12 = vsel %vm10338_vm12, %v6175_v55, %v6179_v16  ;;  %v7807_v9 = vcombine.low %v6204_v62, %v6214_v36 }
 0x2d5   : > { %8743 = vmatmul.mubr.msk.bf16.gmra.mrb[4].mxu1 %vm1628_vm1, %v7801_v51  ;;  %v7806_v10 = vcombine.low %v6180_v12, %v6190_v50 }
 0x2d6   : > { %8746 = vmatprep.mubr.msk.bf16.mxu1 %vm1628_vm1, %v7802_v23  ;;  %v6151_v23 = vrot.slane %v6150_v13, 4 }
 0x2d8   : > { %v11130_v46 = vpop.f32.mrb[56].mxu0  ;;  %v6156_v6 = vsel %vm10338_vm12, %v6151_v23, %v6155_v33 }
 0x2d9   : > { %v11132_v3 = vpop.f32.mrb[57].mxu0  ;;  %v7805_v42 = vcombine.low %v6156_v6, %v6166_v14 }
 0x2da   : > { %v11135_v51 = vpop.f32.mrb[58].mxu0 }
 0x2db   : > { %v11138_v1 = vpop.f32.mrb[59].mxu0 }
 0x2dd   : > { %8747 = vmatmul.mubr.msk.bf16.gmra.mrb[8].mxu1 %vm1628_vm1, %v7803_v11  ;;  %v11179_v11 = vld [vmem:[%s11404_s6] ss:$0 sm:$0xff] }
 0x2de   : > { %8750 = vmatprep.mubr.msk.bf16.mxu1 %vm1628_vm1, %v7804_v39 }
 0x2e5   : > { %8751 = vmatmul.mubr.msk.bf16.gmra.mrb[12].mxu1 %vm1628_vm1, %v7805_v42 }
 0x2e6   : > { %8754 = vmatprep.mubr.msk.bf16.mxu1 %vm1628_vm1, %v7806_v10 }
 0x2e9   : > { %v11154_v33 = vpop.f32.mrb[60].mxu0 }
 0x2ea   : > { %v11157_v59 = vpop.f32.mrb[61].mxu0 }
 0x2eb   : > { %v11159_v54 = vpop.f32.mrb[62].mxu0 }
 0x2ec   : > { %v11161_v16 = vpop.f32.mrb[63].mxu0 }
 0x2ed   : > { %8755 = vmatmul.mubr.msk.bf16.gmra.mrb[16].mxu1 %vm1628_vm1, %v7807_v9 }
 0x2f1   : > { %v8528_v2 = vpop.f32.mrb[32].mxu0 }
 0x2f2   : > { %v3439_v29 = vpop.f32.mrb[33].mxu0 }
 0x2f3   : > { %v8529_v61 = vpop.f32.mrb[34].mxu0 }
 0x2f4   : > { %v3442_v17 = vpop.f32.mrb[35].mxu0 }
 0x2ff   : > { %v8532_v43 = vpop.f32.mrb[36].mxu0 }
 0x300   : > { %v3455_v22 = vpop.f32.mrb[37].mxu0 }
 0x301   : > { %v8533_v27 = vpop.f32.mrb[38].mxu0 }
 0x302   : > { %v3458_v7 = vpop.f32.mrb[39].mxu0 }
 0x30c   : > { %v8536_v28 = vpop.f32.mrb[40].mxu0 }
 0x30d   : > { %v3471_v63 = vpop.f32.mrb[41].mxu0 }
 0x30e   : > { %v8537_v57 = vpop.f32.mrb[42].mxu0 }
 0x30f   : > { %v11163_v13 = vpop.f32.mrb[43].mxu0 }
 0x388   : > { %v8728_v53 = vpop.f32.mrb[20].mxu1 }
 0x389   : > { %v8806_v47 = vadd.f32 %v8728_v53, %v8528_v2  ;;  %v6378_v56 = vpop.f32.mrb[21].mxu1 }
 0x38a   : > { %v8807_v31 = vadd.f32 %v6378_v56, %v3439_v29  ;;  %v8729_v20 = vpop.f32.mrb[22].mxu1 }
 0x38b   : > { %v6546_v52 = vmul.f32 %v8806_v47, %v11174_v49  ;;  %v8808_v39 = vadd.f32 %v8729_v20, %v8529_v61  ;;  %v6381_v19 = vpop.f32.mrb[23].mxu1 }
 0x38c   : > { %v6544_v58 = vmul.f32 %v8807_v31, %v11174_v49  ;;  %v8809_v37 = vadd.f32 %v6381_v19, %v3442_v17 }
 0x38d   : > { %v6585_v4 = vadd.f32 %v11179_v11, %v6546_v52  ;;  %v6547_v23 = vmul.f32 %v8808_v39, %v11174_v49 }
 0x38e   : > { %v6583_v21 = vadd.f32 %v11179_v11, %v6544_v58  ;;  %v6545_v26 = vmul.f32 %v8809_v37, %v11174_v49 }
 0x38f   : > { %v6586_v34 = vadd.f32 %v11179_v11, %v6547_v23  ;;  %v6617_v50 = vmax.f32 %v6585_v4, 0.0 }
 0x390   : > { %v6584_v55 = vadd.f32 %v11179_v11, %v6545_v26  ;;  %v8732_v14 = vpop.f32.mrb[24].mxu1  ;;  %v6615_v38 = vmax.f32 %v6583_v21, 0.0 }
 0x391   : > { %v6618_v6 = vmax.f32 %v6586_v34, 0.0  ;;  %v8810_v24 = vadd.f32 %v8732_v14, %v8532_v43  ;;  %v6394_v5 = vpop.f32.mrb[25].mxu1 }
 0x392   : > { %v6616_v42 = vmax.f32 %v6584_v55, 0.0  ;;  %v8811_v12 = vadd.f32 %v6394_v5, %v3455_v22  ;;  %v8733_v10 = vpop.f32.mrb[26].mxu1 }
 0x393   : > { %v6648_v62 = vpack.c.bf16 %v6618_v6, %v6617_v50  ;;  %v6550_v36 = vmul.f32 %v8810_v24, %v11174_v49  ;;  %v8812_v9 = vadd.f32 %v8733_v10, %v8533_v27  ;;  %v6397_v2 = vpop.f32.mrb[27].mxu1 }
 0x394   : > { %v6647_v29 = vpack.c.bf16 %v6616_v42, %v6615_v38  ;;  %v6548_v61 = vmul.f32 %v8811_v12, %v11174_v49  ;;  %v8813_v17 = vadd.f32 %v6397_v2, %v3458_v7 }
 0x395   : > { %v6589_v15 = vadd.f32 %v11179_v11, %v6550_v36  ;;  %v6551_v44 = vmul.f32 %v8812_v9, %v11174_v49 }
 0x396   : > { %v6587_v43 = vadd.f32 %v11179_v11, %v6548_v61  ;;  %v6549_v53 = vmul.f32 %v8813_v17, %v11174_v49  ;;  %8766 = vmatprep.mubr.msk.bf16.mxu0 %vm1628_vm1, %v6647_v29 }
 0x397   : > { %v6590_v22 = vadd.f32 %v11179_v11, %v6551_v44  ;;  %8767 = vmatmul.mubr.msk.bf16.vlgmr.msra.gmra.mrb[64].mxu0 %vm1628_vm1, %v6648_v62  ;;  %v6621_v56 = vmax.f32 %v6589_v15, 0.0 }
 0x398   : > { %v6588_v27 = vadd.f32 %v11179_v11, %v6549_v53  ;;  %v8736_v47 = vpop.f32.mrb[28].mxu1  ;;  %v6619_v52 = vmax.f32 %v6587_v43, 0.0 }
 0x399   : > { %v6622_v31 = vmax.f32 %v6590_v22, 0.0  ;;  %v8814_v7 = vadd.f32 %v8736_v47, %v8536_v28  ;;  %v6410_v20 = vpop.f32.mrb[29].mxu1 }
 0x39a   : > { %v6620_v39 = vmax.f32 %v6588_v27, 0.0  ;;  %v8815_v19 = vadd.f32 %v6410_v20, %v3471_v63  ;;  %v8737_v58 = vpop.f32.mrb[30].mxu1 }
 0x39b   : > { %v6650_v37 = vpack.c.bf16 %v6622_v31, %v6621_v56  ;;  %v6554_v4 = vmul.f32 %v8814_v7, %v11174_v49  ;;  %v8816_v23 = vadd.f32 %v8737_v58, %v8537_v57  ;;  %v6413_v21 = vpop.f32.mrb[31].mxu1 }
 0x39c   : > { %v6649_v26 = vpack.c.bf16 %v6620_v39, %v6619_v52  ;;  %v6552_v34 = vmul.f32 %v8815_v19, %v11174_v49  ;;  %v8817_v55 = vadd.f32 %v6413_v21, %v11163_v13 }
 0x39d   : > { %v6593_v14 = vadd.f32 %v11179_v11, %v6554_v4  ;;  %v6555_v50 = vmul.f32 %v8816_v23, %v11174_v49 }
 0x39e   : > { %v6591_v28 = vadd.f32 %v11179_v11, %v6552_v34  ;;  %v6553_v6 = vmul.f32 %v8817_v55, %v11174_v49  ;;  %8770 = vmatprep.mubr.msk.bf16.mxu0 %vm1628_vm1, %v6649_v26 }
 0x39f   : > { %v6594_v63 = vadd.f32 %v11179_v11, %v6555_v50  ;;  %8771 = vmatmul.mubr.msk.bf16.gmra.mrb[68].mxu0 %vm1628_vm1, %v6650_v37  ;;  %v6625_v5 = vmax.f32 %v6593_v14, 0.0 }
 0x3a0   : > { %v6592_v57 = vadd.f32 %v11179_v11, %v6553_v6  ;;  %v8740_v24 = vpop.f32.mrb[0].mxu1  ;;  %v6623_v12 = vmax.f32 %v6591_v28, 0.0 }
 0x3a1   : > { %v6626_v38 = vmax.f32 %v6594_v63, 0.0  ;;  %v8818_v13 = vadd.f32 %v8740_v24, %v11000_v0  ;;  %v6426_v42 = vpop.f32.mrb[1].mxu1 }
 0x3a2   : > { %v6624_v10 = vmax.f32 %v6592_v57, 0.0  ;;  %v8819_v62 = vadd.f32 %v6426_v42, %v11004_v60  ;;  %v8741_v36 = vpop.f32.mrb[2].mxu1 }
 0x3a3   : > { %v6652_v9 = vpack.c.bf16 %v6626_v38, %v6625_v5  ;;  %v6558_v2 = vmul.f32 %v8818_v13, %v11174_v49  ;;  %v8820_v29 = vadd.f32 %v8741_v36, %v11008_v45  ;;  %v6429_v61 = vpop.f32.mrb[3].mxu1 }
 0x3a4   : > { %v6651_v17 = vpack.c.bf16 %v6624_v10, %v6623_v12  ;;  %v6556_v15 = vmul.f32 %v8819_v62, %v11174_v49  ;;  %v8821_v44 = vadd.f32 %v6429_v61, %v11010_v25 }
 0x3a5   : > { %v6597_v43 = vadd.f32 %v11179_v11, %v6558_v2  ;;  %v6559_v0 = vmul.f32 %v8820_v29, %v11174_v49 }
 0x3a6   : > { %v6595_v53 = vadd.f32 %v11179_v11, %v6556_v15  ;;  %v6557_v60 = vmul.f32 %v8821_v44, %v11174_v49  ;;  %8774 = vmatprep.mubr.msk.bf16.mxu0 %vm1628_vm1, %v6651_v17 }
 0x3a7   : > { %v6598_v22 = vadd.f32 %v11179_v11, %v6559_v0  ;;  %8775 = vmatmul.mubr.msk.bf16.gmra.mrb[72].mxu0 %vm1628_vm1, %v6652_v9  ;;  %v6629_v47 = vmax.f32 %v6597_v43, 0.0 }
 0x3a8   : > { %v6596_v45 = vadd.f32 %v11179_v11, %v6557_v60  ;;  %v8744_v27 = vpop.f32.mrb[4].mxu1  ;;  %v6627_v7 = vmax.f32 %v6595_v53, 0.0 }
 0x3a9   : > { %v6630_v56 = vmax.f32 %v6598_v22, 0.0  ;;  %v8822_v25 = vadd.f32 %v8744_v27, %v11044_v8  ;;  %v6442_v31 = vpop.f32.mrb[5].mxu1 }
 0x3aa   : > { %v6628_v20 = vmax.f32 %v6596_v45, 0.0  ;;  %v8823_v52 = vadd.f32 %v6442_v31, %v11048_v41  ;;  %v8745_v39 = vpop.f32.mrb[6].mxu1 }
 0x3ab   : > { %v6654_v19 = vpack.c.bf16 %v6630_v56, %v6629_v47  ;;  %v6562_v58 = vmul.f32 %v8822_v25, %v11174_v49  ;;  %v8824_v37 = vadd.f32 %v8745_v39, %v11053_v30  ;;  %v6445_v4 = vpop.f32.mrb[7].mxu1 }
 0x3ac   : > { %v6653_v23 = vpack.c.bf16 %v6628_v20, %v6627_v7  ;;  %v6560_v21 = vmul.f32 %v8823_v52, %v11174_v49  ;;  %v8825_v26 = vadd.f32 %v6445_v4, %v11055_v18 }
 0x3ad   : > { %v6601_v34 = vadd.f32 %v11179_v11, %v6562_v58  ;;  %v6563_v8 = vmul.f32 %v8824_v37, %v11174_v49 }
 0x3ae   : > { %v6599_v55 = vadd.f32 %v11179_v11, %v6560_v21  ;;  %v6561_v41 = vmul.f32 %v8825_v26, %v11174_v49  ;;  %8778 = vmatprep.mubr.msk.bf16.mxu0 %vm1628_vm1, %v6653_v23 }
 0x3af   : > { %v6602_v14 = vadd.f32 %v11179_v11, %v6563_v8  ;;  %8779 = vmatmul.mubr.msk.bf16.gmra.mrb[76].mxu0 %vm1628_vm1, %v6654_v19  ;;  %v6633_v28 = vmax.f32 %v6601_v34, 0.0 }
 0x3b0   : > { %v6600_v30 = vadd.f32 %v11179_v11, %v6561_v41  ;;  %v8748_v50 = vpop.f32.mrb[8].mxu1  ;;  %v6631_v57 = vmax.f32 %v6599_v55, 0.0 }
 0x3b1   : > { %v6634_v6 = vmax.f32 %v6602_v14, 0.0  ;;  %v8826_v18 = vadd.f32 %v8748_v50, %v11092_v48  ;;  %v6458_v63 = vpop.f32.mrb[9].mxu1 }
 0x3b2   : > { %v6632_v24 = vmax.f32 %v6600_v30, 0.0  ;;  %v8827_v5 = vadd.f32 %v6458_v63, %v11094_v32  ;;  %v8749_v38 = vpop.f32.mrb[10].mxu1 }
 0x3b3   : > { %v6656_v13 = vpack.c.bf16 %v6634_v6, %v6633_v28  ;;  %v6566_v42 = vmul.f32 %v8826_v18, %v11174_v49  ;;  %v8828_v12 = vadd.f32 %v8749_v38, %v11098_v40  ;;  %v6461_v10 = vpop.f32.mrb[11].mxu1 }
 0x3b4   : > { %v6655_v62 = vpack.c.bf16 %v6632_v24, %v6631_v57  ;;  %v6564_v36 = vmul.f32 %v8827_v5, %v11174_v49  ;;  %v8829_v9 = vadd.f32 %v6461_v10, %v11100_v35 }
 0x3b5   : > { %v6605_v2 = vadd.f32 %v11179_v11, %v6566_v42  ;;  %v6567_v48 = vmul.f32 %v8828_v12, %v11174_v49  ;;  %v8096_v42 = vld [vmem:[%s9275_s24 + $0x8] sm:$0xff]   ;;  %v7953_v12 = vld [vmem:[%s9275_s24] sm:$0xff]  }
 0x3b6   : > { %v6603_v29 = vadd.f32 %v11179_v11, %v6564_v36  ;;  %v6565_v32 = vmul.f32 %v8829_v9, %v11174_v49  ;;  %8782 = vmatprep.mubr.msk.bf16.mxu0 %vm1628_vm1, %v6655_v62  ;;  %v7958_v36 = vunpack.c.l.bf16 %v8096_v42 }
 0x3b7   : > { %v6606_v61 = vadd.f32 %v11179_v11, %v6567_v48  ;;  %8783 = vmatmul.mubr.msk.bf16.gmra.mrb[80].mxu0 %vm1628_vm1, %v6656_v13  ;;  %v6637_v15 = vmax.f32 %v6605_v2, 0.0  ;;  %v7954_v48 = vunpack.c.l.bf16 %v7953_v12 }
 0x3b8   : > { %v6604_v40 = vadd.f32 %v11179_v11, %v6565_v32  ;;  %v8752_v17 = vpop.f32.mrb[12].mxu1  ;;  %v6635_v0 = vmax.f32 %v6603_v29, 0.0 }
 0x3b9   : > { %v6638_v44 = vmax.f32 %v6606_v61, 0.0  ;;  %v8830_v35 = vadd.f32 %v8752_v17, %v11130_v46  ;;  %v6474_v43 = vpop.f32.mrb[13].mxu1 }
 0x3ba   : > { %v6636_v53 = vmax.f32 %v6604_v40, 0.0  ;;  %v8831_v60 = vadd.f32 %v6474_v43, %v11132_v3  ;;  %v8753_v22 = vpop.f32.mrb[14].mxu1  ;;  %v7959_v40 = vunpack.c.h.bf16 %v8096_v42 }
 0x3bb   : > { %v6658_v45 = vpack.c.bf16 %v6638_v44, %v6637_v15  ;;  %v6570_v27 = vmul.f32 %v8830_v35, %v11174_v49  ;;  %v8832_v47 = vadd.f32 %v8753_v22, %v11135_v51  ;;  %v6477_v56 = vpop.f32.mrb[15].mxu1  ;;  %v7955_v35 = vunpack.c.h.bf16 %v7953_v12  ;;  %v8098_v22 = vld [vmem:[%s9275_s24 + $0x18] sm:$0xff]  }
 0x3bc   : > { %v6657_v25 = vpack.c.bf16 %v6636_v53, %v6635_v0  ;;  %v6568_v31 = vmul.f32 %v8831_v60, %v11174_v49  ;;  %v8833_v7 = vadd.f32 %v6477_v56, %v11138_v1 }
 0x3bd   : > { %v6609_v20 = vadd.f32 %v11179_v11, %v6570_v27  ;;  %v6571_v46 = vmul.f32 %v8832_v47, %v11174_v49  ;;  %v8097_v27 = vld [vmem:[%s9275_s24 + $0x10] sm:$0xff]  }
 0x3be   : > { %v6607_v52 = vadd.f32 %v11179_v11, %v6568_v31  ;;  %v6569_v3 = vmul.f32 %v8833_v7, %v11174_v49  ;;  %8786 = vmatprep.mubr.msk.bf16.mxu0 %vm1628_vm1, %v6657_v25 }
 0x3bf   : > { %v6610_v39 = vadd.f32 %v11179_v11, %v6571_v46  ;;  %8787 = vmatmul.mubr.msk.bf16.gmra.mrb[84].mxu0 %vm1628_vm1, %v6658_v45  ;;  %v6641_v58 = vmax.f32 %v6609_v20, 0.0  ;;  %v7966_v20 = vunpack.c.l.bf16 %v8098_v22 }
 0x3c0   : > { %v6608_v51 = vadd.f32 %v11179_v11, %v6569_v3  ;;  %v8756_v19 = vpop.f32.mrb[16].mxu1  ;;  %v6639_v23 = vmax.f32 %v6607_v52, 0.0 }
 0x3c1   : > { %v6642_v37 = vmax.f32 %v6610_v39, 0.0  ;;  %v8834_v1 = vadd.f32 %v8756_v19, %v11154_v33  ;;  %v6490_v4 = vpop.f32.mrb[17].mxu1 }
 0x3c2   : > { %v6640_v21 = vmax.f32 %v6608_v51, 0.0  ;;  %v8835_v26 = vadd.f32 %v6490_v4, %v11157_v59  ;;  %v8757_v34 = vpop.f32.mrb[18].mxu1  ;;  %v7962_v51 = vunpack.c.l.bf16 %v8097_v27  ;;  %v7967_v4 = vunpack.c.h.bf16 %v8098_v22 }
 0x3c3   : > { %v6660_v8 = vpack.c.bf16 %v6642_v37, %v6641_v58  ;;  %v6574_v55 = vmul.f32 %v8834_v1, %v11174_v49  ;;  %v8836_v41 = vadd.f32 %v8757_v34, %v11159_v54  ;;  %v6493_v14 = vpop.f32.mrb[19].mxu1 }
 0x3c4   : > { %v6659_v30 = vpack.c.bf16 %v6640_v21, %v6639_v23  ;;  %v6572_v50 = vmul.f32 %v8835_v26, %v11174_v49  ;;  %v8837_v28 = vadd.f32 %v6493_v14, %v11161_v16 }
 0x3c5   : > { %v6613_v6 = vadd.f32 %v11179_v11, %v6574_v55  ;;  %v6575_v33 = vmul.f32 %v8836_v41, %v11174_v49 }
 0x3c6   : > { %v6611_v18 = vadd.f32 %v11179_v11, %v6572_v50  ;;  %v6573_v59 = vmul.f32 %v8837_v28, %v11174_v49  ;;  %8790 = vmatprep.mubr.msk.bf16.mxu0 %vm1628_vm1, %v6659_v30  ;;  %v11285_v49 = vld [vmem:[%s11406_s8] ss:$0 sm:$0xff]  ;;  %v8100_v50 = vld [vmem:[%s9275_s24 + $0x28] sm:$0xff]  }
 0x3c7   : > { %v6614_v54 = vadd.f32 %v11179_v11, %v6575_v33  ;;  %8791 = vmatmul.mubr.msk.bf16.gmra.mrb[88].mxu0 %vm1628_vm1, %v6660_v8  ;;  %v6645_v57 = vmax.f32 %v6613_v6, 0.0  ;;  %v7963_v8 = vunpack.c.h.bf16 %v8097_v27  ;;  %v8099_v6 = vld [vmem:[%s9275_s24 + $0x20] sm:$0xff]  }
 0x3c8   : > { %v6612_v63 = vadd.f32 %v11179_v11, %v6573_v59  ;;  %v6643_v24 = vmax.f32 %v6611_v18, 0.0  ;;  %v11292_v11 = vld [vmem:[%s11407_s9] ss:$0 sm:$0xff] }
 0x3c9   : > { %v6646_v16 = vmax.f32 %v6614_v54, 0.0 }
 0x3ca   : > { %v6644_v5 = vmax.f32 %v6612_v63, 0.0 }
 0x3cb   : > { %v6662_v38 = vpack.c.bf16 %v6646_v16, %v6645_v57  ;;  %v7974_v57 = vunpack.c.l.bf16 %v8100_v50 }
 0x3cc   : > { %v6661_v13 = vpack.c.bf16 %v6644_v5, %v6643_v24 }
 0x3ce   : > { %8794 = vmatprep.mubr.msk.bf16.mxu0 %vm1628_vm1, %v6661_v13  ;;  %v7970_v13 = vunpack.c.l.bf16 %v8099_v6 }
 0x3cf   : > { %8795 = vmatmul.mubr.msk.bf16.gmra.mrb[92].mxu0 %vm1628_vm1, %v6662_v38 }
 0x46a   : > { %v8768_v10 = vpop.f32.mrb[64].mxu0 }
 0x46b   : > { %v6913_v62 = vmul.f32 %v8768_v10, %v11285_v49  ;;  %v6777_v9 = vpop.f32.mrb[65].mxu0 }
 0x46c   : > { %v6911_v2 = vmul.f32 %v11285_v49, %v6777_v9  ;;  %v8769_v29 = vpop.f32.mrb[66].mxu0 }
 0x46d   : > { %v6952_v32 = vadd.f32 %v11292_v11, %v6913_v62  ;;  %v6914_v61 = vmul.f32 %v8769_v29, %v11285_v49  ;;  %v6780_v17 = vpop.f32.mrb[67].mxu0 }
 0x46e   : > { %v6950_v15 = vadd.f32 %v11292_v11, %v6911_v2  ;;  %v6912_v44 = vmul.f32 %v11285_v49, %v6780_v17 }
 0x46f   : > { %v7048_v43 = vadd.f32 %v7958_v36, %v6952_v32  ;;  %v6953_v0 = vadd.f32 %v11292_v11, %v6914_v61  ;;  %v7975_v36 = vunpack.c.h.bf16 %v8100_v50  ;;  %v7971_v32 = vunpack.c.h.bf16 %v8099_v6 }
 0x470   : > { %v7046_v53 = vadd.f32 %v7954_v48, %v6950_v15  ;;  %v6951_v60 = vadd.f32 %v11292_v11, %v6912_v44  ;;  %v8102_v44 = vld [vmem:[%s9275_s24 + $0x38] sm:$0xff]  }
 0x471   : > { %v7049_v45 = vadd.f32 %v7959_v40, %v6953_v0  ;;  %v7080_v25 = vmax.f32 %v7048_v43, 0.0  ;;  %v8101_v43 = vld [vmem:[%s9275_s24 + $0x30] sm:$0xff]   ;;  %v7982_v27 = vunpack.c.l.bf16 %v8102_v44 }
 0x472   : > { %v7047_v47 = vadd.f32 %v7955_v35, %v6951_v60  ;;  %v8772_v56 = vpop.f32.mrb[68].mxu0  ;;  %v7078_v52 = vmax.f32 %v7046_v53, 0.0 }
 0x473   : > { %v7081_v31 = vmax.f32 %v7049_v45, 0.0  ;;  %v6917_v7 = vmul.f32 %v8772_v56, %v11285_v49  ;;  %v6793_v46 = vpop.f32.mrb[69].mxu0 }
 0x474   : > { %v7079_v3 = vmax.f32 %v7047_v47, 0.0  ;;  %v6915_v39 = vmul.f32 %v11285_v49, %v6793_v46  ;;  %v8773_v19 = vpop.f32.mrb[70].mxu0 }
 0x475   : > { %v8024_v58 = vpack.c.bf16 %v7081_v31, %v7080_v25  ;;  %v6956_v37 = vadd.f32 %v11292_v11, %v6917_v7  ;;  %v6918_v1 = vmul.f32 %v8773_v19, %v11285_v49  ;;  %v6796_v23 = vpop.f32.mrb[71].mxu0  ;;  %v7978_v7 = vunpack.c.l.bf16 %v8101_v43 }
 0x476   : > { %v8019_v21 = vpack.c.bf16 %v7079_v3, %v7078_v52  ;;  %v6954_v26 = vadd.f32 %v11292_v11, %v6915_v39  ;;  %v6916_v34 = vmul.f32 %v11285_v49, %v6796_v23  ;;  %v7983_v39 = vunpack.c.h.bf16 %v8102_v44 }
 0x477   : > { %8111 = vst [vmem:[%s11310_s27 + $0x8] sm:$0xff] %v8024_v58   ;;  %v7052_v55 = vadd.f32 %v7966_v20, %v6956_v37  ;;  %v6957_v41 = vadd.f32 %v11292_v11, %v6918_v1  ;;  %v7979_v1 = vunpack.c.h.bf16 %v8101_v43 }
 0x478   : > { %8020 = vst [vmem:[%s11310_s27] sm:$0xff] %v8019_v21   ;;  %v7050_v14 = vadd.f32 %v7962_v51, %v6954_v26  ;;  %v6955_v30 = vadd.f32 %v11292_v11, %v6916_v34  ;;  %v8104_v34 = vld [vmem:[%s9275_s24 + $0x48] sm:$0xff]  }
 0x479   : > { %v7053_v28 = vadd.f32 %v7967_v4, %v6957_v41  ;;  %v7084_v59 = vmax.f32 %v7052_v55, 0.0  ;;  %v8103_v55 = vld [vmem:[%s9275_s24 + $0x40] sm:$0xff]   ;;  %v7990_v6 = vunpack.c.l.bf16 %v8104_v34 }
 0x47a   : > { %v7051_v33 = vadd.f32 %v7963_v8, %v6955_v30  ;;  %v8776_v18 = vpop.f32.mrb[72].mxu0  ;;  %v7082_v24 = vmax.f32 %v7050_v14, 0.0 }
 0x47b   : > { %v7085_v54 = vmax.f32 %v7053_v28, 0.0  ;;  %v6921_v63 = vmul.f32 %v8776_v18, %v11285_v49  ;;  %v6809_v16 = vpop.f32.mrb[73].mxu0 }
 0x47c   : > { %v7083_v5 = vmax.f32 %v7051_v33, 0.0  ;;  %v6919_v38 = vmul.f32 %v11285_v49, %v6809_v16  ;;  %v8777_v42 = vpop.f32.mrb[74].mxu0 }
 0x47d   : > { %v8034_v12 = vpack.c.bf16 %v7085_v54, %v7084_v59  ;;  %v6960_v10 = vadd.f32 %v11292_v11, %v6921_v63  ;;  %v6922_v62 = vmul.f32 %v8777_v42, %v11285_v49  ;;  %v6812_v9 = vpop.f32.mrb[75].mxu0  ;;  %v7986_v63 = vunpack.c.l.bf16 %v8103_v55 }
 0x47e   : > { %v8029_v2 = vpack.c.bf16 %v7083_v5, %v7082_v24  ;;  %v6958_v48 = vadd.f32 %v11292_v11, %v6919_v38  ;;  %v6920_v29 = vmul.f32 %v11285_v49, %v6812_v9  ;;  %v7991_v38 = vunpack.c.h.bf16 %v8104_v34 }
 0x47f   : > { %8113 = vst [vmem:[%s11310_s27 + $0x18] sm:$0xff] %v8034_v12   ;;  %v7056_v61 = vadd.f32 %v7974_v57, %v6960_v10  ;;  %v6961_v40 = vadd.f32 %v11292_v11, %v6922_v62  ;;  %v7987_v62 = vunpack.c.h.bf16 %v8103_v55 }
 0x480   : > { %8112 = vst [vmem:[%s11310_s27 + $0x10] sm:$0xff] %v8029_v2   ;;  %v7054_v17 = vadd.f32 %v7970_v13, %v6958_v48  ;;  %v6959_v15 = vadd.f32 %v11292_v11, %v6920_v29  ;;  %v8106_v29 = vld [vmem:[%s9275_s24 + $0x58] sm:$0xff]  }
 0x481   : > { %v7057_v35 = vadd.f32 %v7975_v36, %v6961_v40  ;;  %v7088_v60 = vmax.f32 %v7056_v61, 0.0  ;;  %v8105_v61 = vld [vmem:[%s9275_s24 + $0x50] sm:$0xff]   ;;  %v7998_v43 = vunpack.c.l.bf16 %v8106_v29 }
 0x482   : > { %v7055_v0 = vadd.f32 %v7971_v32, %v6959_v15  ;;  %v8780_v53 = vpop.f32.mrb[76].mxu0  ;;  %v7086_v56 = vmax.f32 %v7054_v17, 0.0 }
 0x483   : > { %v7089_v22 = vmax.f32 %v7057_v35, 0.0  ;;  %v6925_v45 = vmul.f32 %v8780_v53, %v11285_v49  ;;  %v6825_v47 = vpop.f32.mrb[77].mxu0 }
 0x484   : > { %v7087_v25 = vmax.f32 %v7055_v0, 0.0  ;;  %v6923_v31 = vmul.f32 %v11285_v49, %v6825_v47  ;;  %v8781_v20 = vpop.f32.mrb[78].mxu0 }
 0x485   : > { %v8044_v46 = vpack.c.bf16 %v7089_v22, %v7088_v60  ;;  %v6964_v52 = vadd.f32 %v11292_v11, %v6925_v45  ;;  %v6926_v3 = vmul.f32 %v8781_v20, %v11285_v49  ;;  %v6828_v51 = vpop.f32.mrb[79].mxu0  ;;  %v7994_v45 = vunpack.c.l.bf16 %v8105_v61 }
 0x486   : > { %v8039_v19 = vpack.c.bf16 %v7087_v25, %v7086_v56  ;;  %v6962_v58 = vadd.f32 %v11292_v11, %v6923_v31  ;;  %v6924_v37 = vmul.f32 %v11285_v49, %v6828_v51  ;;  %v7999_v31 = vunpack.c.h.bf16 %v8106_v29 }
 0x487   : > { %8115 = vst [vmem:[%s11310_s27 + $0x28] sm:$0xff] %v8044_v46   ;;  %v7060_v4 = vadd.f32 %v7982_v27, %v6964_v52  ;;  %v6965_v23 = vadd.f32 %v11292_v11, %v6926_v3  ;;  %v7995_v3 = vunpack.c.h.bf16 %v8105_v61 }
 0x488   : > { %8114 = vst [vmem:[%s11310_s27 + $0x20] sm:$0xff] %v8039_v19   ;;  %v7058_v21 = vadd.f32 %v7978_v7, %v6962_v58  ;;  %v6963_v26 = vadd.f32 %v11292_v11, %v6924_v37  ;;  %v8108_v37 = vld [vmem:[%s9275_s24 + $0x68] sm:$0xff]  }
 0x489   : > { %v7061_v8 = vadd.f32 %v7983_v39, %v6965_v23  ;;  %v7092_v30 = vmax.f32 %v7060_v4, 0.0  ;;  %v8107_v4 = vld [vmem:[%s9275_s24 + $0x60] sm:$0xff]   ;;  %v8006_v55 = vunpack.c.l.bf16 %v8108_v37 }
 0x48a   : > { %v7059_v41 = vadd.f32 %v7979_v1, %v6963_v26  ;;  %v8784_v14 = vpop.f32.mrb[80].mxu0  ;;  %v7090_v18 = vmax.f32 %v7058_v21, 0.0 }
 0x48b   : > { %v7093_v50 = vmax.f32 %v7061_v8, 0.0  ;;  %v6929_v28 = vmul.f32 %v8784_v14, %v11285_v49  ;;  %v6841_v33 = vpop.f32.mrb[81].mxu0 }
 0x48c   : > { %v7091_v59 = vmax.f32 %v7059_v41, 0.0  ;;  %v6927_v54 = vmul.f32 %v11285_v49, %v6841_v33  ;;  %v8785_v57 = vpop.f32.mrb[82].mxu0 }
 0x48d   : > { %v8054_v16 = vpack.c.bf16 %v7093_v50, %v7092_v30  ;;  %v6968_v24 = vadd.f32 %v11292_v11, %v6929_v28  ;;  %v6930_v5 = vmul.f32 %v8785_v57, %v11285_v49  ;;  %v6844_v13 = vpop.f32.mrb[83].mxu0  ;;  %v8002_v28 = vunpack.c.l.bf16 %v8107_v4 }
 0x48e   : > { %v8049_v42 = vpack.c.bf16 %v7091_v59, %v7090_v18  ;;  %v6966_v12 = vadd.f32 %v11292_v11, %v6927_v54  ;;  %v6928_v10 = vmul.f32 %v11285_v49, %v6844_v13  ;;  %v8007_v54 = vunpack.c.h.bf16 %v8108_v37 }
 0x48f   : > { %8117 = vst [vmem:[%s11310_s27 + $0x38] sm:$0xff] %v8054_v16   ;;  %v7064_v36 = vadd.f32 %v7990_v6, %v6968_v24  ;;  %v6969_v9 = vadd.f32 %v11292_v11, %v6930_v5  ;;  %v8003_v5 = vunpack.c.h.bf16 %v8107_v4 }
 0x490   : > { %8116 = vst [vmem:[%s11310_s27 + $0x30] sm:$0xff] %v8049_v42   ;;  %v7062_v2 = vadd.f32 %v7986_v63, %v6966_v12  ;;  %v6967_v48 = vadd.f32 %v11292_v11, %v6928_v10  ;;  %v8110_v10 = vld [vmem:[%s9275_s24 + $0x78] sm:$0xff]  }
 0x491   : > { %v7065_v32 = vadd.f32 %v7991_v38, %v6969_v9  ;;  %v7096_v15 = vmax.f32 %v7064_v36, 0.0  ;;  %v8109_v36 = vld [vmem:[%s9275_s24 + $0x70] sm:$0xff]   ;;  %v8014_v61 = vunpack.c.l.bf16 %v8110_v10 }
 0x492   : > { %v7063_v40 = vadd.f32 %v7987_v62, %v6967_v48  ;;  %v8788_v17 = vpop.f32.mrb[84].mxu0  ;;  %v7094_v53 = vmax.f32 %v7062_v2, 0.0 }
 0x493   : > { %v7097_v44 = vmax.f32 %v7065_v32, 0.0  ;;  %v6933_v35 = vmul.f32 %v8788_v17, %v11285_v49  ;;  %v6857_v0 = vpop.f32.mrb[85].mxu0 }
 0x494   : > { %v7095_v60 = vmax.f32 %v7063_v40, 0.0  ;;  %v6931_v22 = vmul.f32 %v11285_v49, %v6857_v0  ;;  %v8789_v27 = vpop.f32.mrb[86].mxu0 }
 0x495   : > { %v8064_v47 = vpack.c.bf16 %v7097_v44, %v7096_v15  ;;  %v6972_v56 = vadd.f32 %v11292_v11, %v6933_v35  ;;  %v6934_v25 = vmul.f32 %v8789_v27, %v11285_v49  ;;  %v6860_v7 = vpop.f32.mrb[87].mxu0  ;;  %v8010_v35 = vunpack.c.l.bf16 %v8109_v36 }
 0x496   : > { %v8059_v20 = vpack.c.bf16 %v7095_v60, %v7094_v53  ;;  %v6970_v46 = vadd.f32 %v11292_v11, %v6931_v22  ;;  %v6932_v52 = vmul.f32 %v11285_v49, %v6860_v7  ;;  %v8015_v22 = vunpack.c.h.bf16 %v8110_v10 }
 0x497   : > { %8119 = vst [vmem:[%s11310_s27 + $0x48] sm:$0xff] %v8064_v47   ;;  %v7068_v39 = vadd.f32 %v7998_v43, %v6972_v56  ;;  %v6973_v51 = vadd.f32 %v11292_v11, %v6934_v25  ;;  %v8011_v25 = vunpack.c.h.bf16 %v8109_v36 }
 0x498   : > { %8118 = vst [vmem:[%s11310_s27 + $0x40] sm:$0xff] %v8059_v20   ;;  %v7066_v19 = vadd.f32 %v7994_v45, %v6970_v46  ;;  %v6971_v58 = vadd.f32 %v11292_v11, %v6932_v52 }
 0x499   : > { %v7069_v1 = vadd.f32 %v7999_v31, %v6973_v51  ;;  %v7100_v26 = vmax.f32 %v7068_v39, 0.0 }
 0x49a   : > { %v7067_v23 = vadd.f32 %v7995_v3, %v6971_v58  ;;  %v8792_v21 = vpop.f32.mrb[88].mxu0  ;;  %v7098_v14 = vmax.f32 %v7066_v19, 0.0 }
 0x49b   : > { %v7101_v34 = vmax.f32 %v7069_v1, 0.0  ;;  %v6937_v8 = vmul.f32 %v8792_v21, %v11285_v49  ;;  %v6873_v41 = vpop.f32.mrb[89].mxu0 }
 0x49c   : > { %v7099_v30 = vmax.f32 %v7067_v23, 0.0  ;;  %v6935_v50 = vmul.f32 %v11285_v49, %v6873_v41  ;;  %v8793_v6 = vpop.f32.mrb[90].mxu0 }
 0x49d   : > { %v8074_v33 = vpack.c.bf16 %v7101_v34, %v7100_v26  ;;  %v6976_v18 = vadd.f32 %v11292_v11, %v6937_v8  ;;  %v6938_v59 = vmul.f32 %v8793_v6, %v11285_v49  ;;  %v6876_v63 = vpop.f32.mrb[91].mxu0 }
 0x49e   : > { %v8069_v57 = vpack.c.bf16 %v7099_v30, %v7098_v14  ;;  %v6974_v16 = vadd.f32 %v11292_v11, %v6935_v50  ;;  %v6936_v24 = vmul.f32 %v11285_v49, %v6876_v63 }
 0x49f   : > { %8121 = vst [vmem:[%s11310_s27 + $0x58] sm:$0xff] %v8074_v33   ;;  %v7072_v38 = vadd.f32 %v8006_v55, %v6976_v18  ;;  %v6977_v13 = vadd.f32 %v11292_v11, %v6938_v59 }
 0x4a0   : > { %8120 = vst [vmem:[%s11310_s27 + $0x50] sm:$0xff] %v8069_v57   ;;  %v7070_v42 = vadd.f32 %v8002_v28, %v6974_v16  ;;  %v6975_v12 = vadd.f32 %v11292_v11, %v6936_v24 }
 0x4a1   : > { %v7073_v62 = vadd.f32 %v8007_v54, %v6977_v13  ;;  %v7104_v48 = vmax.f32 %v7072_v38, 0.0 }
 0x4a2   : > { %v7071_v9 = vadd.f32 %v8003_v5, %v6975_v12  ;;  %v8796_v2 = vpop.f32.mrb[92].mxu0  ;;  %v7102_v17 = vmax.f32 %v7070_v42, 0.0 }
 0x4a3   : > { %v7105_v29 = vmax.f32 %v7073_v62, 0.0  ;;  %v6941_v32 = vmul.f32 %v8796_v2, %v11285_v49  ;;  %v6889_v40 = vpop.f32.mrb[93].mxu0 }
 0x4a4   : > { %v7103_v15 = vmax.f32 %v7071_v9, 0.0  ;;  %v6939_v44 = vmul.f32 %v11285_v49, %v6889_v40  ;;  %v8797_v43 = vpop.f32.mrb[94].mxu0 }
 0x4a5   : > { %v8084_v0 = vpack.c.bf16 %v7105_v29, %v7104_v48  ;;  %v6980_v53 = vadd.f32 %v11292_v11, %v6941_v32  ;;  %v6942_v60 = vmul.f32 %v8797_v43, %v11285_v49  ;;  %v6892_v45 = vpop.f32.mrb[95].mxu0 }
 0x4a6   : > { %v8079_v27 = vpack.c.bf16 %v7103_v15, %v7102_v17  ;;  %v6978_v47 = vadd.f32 %v11292_v11, %v6939_v44  ;;  %v6940_v56 = vmul.f32 %v11285_v49, %v6892_v45 }
 0x4a7   : > { %8123 = vst [vmem:[%s11310_s27 + $0x68] sm:$0xff] %v8084_v0   ;;  %v7076_v31 = vadd.f32 %v8014_v61, %v6980_v53  ;;  %v6981_v7 = vadd.f32 %v11292_v11, %v6942_v60 }
 0x4a8   : > { %8122 = vst [vmem:[%s11310_s27 + $0x60] sm:$0xff] %v8079_v27   ;;  %v7074_v20 = vadd.f32 %v8010_v35, %v6978_v47  ;;  %v6979_v46 = vadd.f32 %v11292_v11, %v6940_v56 }
 0x4a9   : > { %v7077_v52 = vadd.f32 %v8015_v22, %v6981_v7  ;;  %v7108_v39 = vmax.f32 %v7076_v31, 0.0 }
 0x4aa   : > { %v7075_v3 = vadd.f32 %v8011_v25, %v6979_v46  ;;  %v7106_v19 = vmax.f32 %v7074_v20, 0.0 }
 0x4ab   : > { %v7109_v51 = vmax.f32 %v7077_v52, 0.0 }
 0x4ac   : > { %v7107_v58 = vmax.f32 %v7075_v3, 0.0 }
 0x4ad   : > { %v8094_v37 = vpack.c.bf16 %v7109_v51, %v7108_v39 }
 0x4ae   : > { %v8089_v1 = vpack.c.bf16 %v7107_v58, %v7106_v19 }
 0x4af   : > { %8125 = vst [vmem:[%s11310_s27 + $0x78] sm:$0xff] %v8094_v37  }
 0x4b0   : > { %8124 = vst [vmem:[%s11310_s27 + $0x70] sm:$0xff] %v8089_v1  }
 0x4b1 PF: > { %s20_s13 = sadd.s32 1, %s9192_s13  }
 0x4b2   : > { %p17_p4 = scmp.ge.s32.totalorder %s20_s13, 4  }
 0x4b4   :  { %19 = sbr.rel (!%p17_p4) target bundleno = 1 (0x1), region = 101 }

</bundles_post_ra>
